<compile_context>
chip_gen: v6e
topology: v6e:2x2x1
jax: 0.10.0
libtpu: 0.0.40
codegen_flags: <defaults>
</compile_context>

<pallas_src>
import functools

import numpy as np
import jax
import jax.numpy as jnp
from jax import lax
from jax.experimental import pallas as pl
from jax.experimental.pallas import tpu as pltpu


def _round_up(v, m):
    return ((v + m - 1) // m) * m


# ----------------------------------------------------------------------------
# Fused encoder kernel (single VMEM block, no grid)
# ----------------------------------------------------------------------------
def _encoder_kernel(p1_ref, w1_ref, b1_ref, sel2_ref, w2_ref, b2_ref,
                    wfc_ref, bfc_ref, out_ref, im_ref, fcin_ref,
                    *, n_taps, n_pos, batch_pad):
    f32, bf16 = jnp.float32, jnp.bfloat16
    c1p = w1_ref.shape[1]
    c2p = w2_ref.shape[1]

    # --- conv1 (im2col matmul) + bias + ReLU ---------------------------------
    a1 = jnp.dot(p1_ref[...], w1_ref[...], preferred_element_type=f32)
    a1 = jnp.maximum(a1 + b1_ref[...], 0.0).astype(bf16)          # [R1P, C1P]

    # --- conv2: exact 0/1-selection gathers -> lane-blocked im2col scratch ---
    # sel rows for out-of-bounds taps / padded batch are all-zero, so padding
    # is handled for free.  Each gather is exact (one 1.0 per row at most).
    for t in range(n_taps):
        g = jnp.dot(sel2_ref[t], a1, preferred_element_type=f32)
        im_ref[:, t * c1p:(t + 1) * c1p] = g.astype(bf16)

    # one wide matmul against the tap-stacked conv2 weight (f32 accumulation
    # across all 9 taps), then bias + ReLU
    acc2 = jnp.dot(im_ref[...], w2_ref[...], preferred_element_type=f32)
    y2 = jnp.maximum(acc2 + b2_ref[...], 0.0)                     # [P2*NP, C2P] f32

    # --- dense tail (fc1 + heads folded into one weight) ----------------------
    # rearrange (position, batch) row-blocks into lane-blocks via cheap aligned
    # stores; then the whole dense stack is ONE matmul.
    for p in range(n_pos):
        blk = y2[p * batch_pad:(p + 1) * batch_pad, :]            # [NP, C2P]
        fcin_ref[:, p * c2p:(p + 1) * c2p] = blk.astype(bf16)

    o = jnp.dot(fcin_ref[...], wfc_ref[...], preferred_element_type=f32)
    out_ref[...] = (o + bfc_ref[...]).astype(out_ref.dtype)       # [NP, LP]


# ----------------------------------------------------------------------------
# Per-forward activation prep (tiny, runs on the raw HBM input before the kernel)
# ----------------------------------------------------------------------------
def _im2col_conv1(x):
    """x: [N, Cin, H, W] -> 3x3/stride2/pad1 patches [N*Ho*Wo, Cin*9].
    Rows in (n, ho, wo) order; columns in (cin, kh, kw) order (PyTorch flatten)."""
    N, C, H, W = x.shape
    Ho, Wo = (H + 2 - 3) // 2 + 1, (W + 2 - 3) // 2 + 1
    xp = jnp.pad(x, ((0, 0), (0, 0), (1, 1), (1, 1)))
    cols = []
    for kh in range(3):
        for kw in range(3):
            cols.append(xp[:, :, kh:kh + 2 * Ho:2, kw:kw + 2 * Wo:2])  # [N,C,Ho,Wo]
    cols = jnp.stack(cols, axis=2)                  # [N, C, 9, Ho, Wo]
    cols = cols.transpose(0, 3, 4, 1, 2)            # [N, Ho, Wo, C, 9]
    return cols.reshape(N * Ho * Wo, C * 9)


# ----------------------------------------------------------------------------
# One-time weight preparation (pad / transpose / fold / bf16, build selectors)
# ----------------------------------------------------------------------------
def prepare_params(params, img_sz, hidden_dim, latent_dim, batch):
    H, W = img_sz
    H1, W1, H2, W2 = H // 2, W // 2, H // 4, W // 4
    P1, P2 = H1 * W1, H2 * W2
    C1 = params["conv1_w"].shape[0]
    Cin = params["conv1_w"].shape[1]
    C2 = params["conv2_w"].shape[0]
    N = batch

    NP = _round_up(max(N, 8), 8)          # padded batch rows
    R1P = _round_up(N * P1, 128)          # conv1-activation rows (selector lanes)
    R2P = P2 * NP                         # conv2-activation rows, (position, batch) order
    K1P = _round_up(Cin * 9, 128)
    C1P = _round_up(C1, 128)
    C2P = _round_up(C2, 128)
    LP = _round_up(2 * latent_dim, 128)

    bf16 = jnp.bfloat16
    hp = lax.Precision.HIGHEST

    # conv1 weight/bias: (C1, Cin, 3, 3) -> [Cin*9, C1], zero-padded
    w1 = jnp.zeros((K1P, C1P), jnp.float32).at[:Cin * 9, :C1].set(
        params["conv1_w"].reshape(C1, -1).T)
    b1 = jnp.zeros((1, C1P), jnp.float32).at[0, :C1].set(params["conv1_b"])

    # conv2 tap-stacked weight [9*C1P, C2P], tap order t = kh*3 + kw
    w2t = params["conv2_w"].transpose(2, 3, 1, 0).reshape(9, C1, C2)
    w2 = jnp.zeros((9, C1P, C2P), jnp.float32).at[:, :C1, :C2].set(w2t)
    w2 = w2.reshape(9 * C1P, C2P)
    b2 = jnp.zeros((1, C2P), jnp.float32).at[0, :C2].set(params["conv2_b"])

    # constant 0/1 selection matrices: gather conv1 rows for each conv2 tap.
    # Output rows ordered (spatial position p, padded batch n); out-of-bounds
    # taps / padded batch rows stay zero.
    sel = np.zeros((9, R2P, R1P), np.float32)
    for kh in range(3):
        for kw in range(3):
            t = kh * 3 + kw
            for oh in range(H2):
                for ow in range(W2):
                    hi, wi = 2 * oh + kh - 1, 2 * ow + kw - 1
                    if 0 <= hi < H1 and 0 <= wi < W1:
                        p = oh * W2 + ow
                        for n in range(N):
                            sel[t, p * NP + n, n * P1 + hi * W1 + wi] = 1.0
    sel2 = jnp.asarray(sel, bf16)

    # fc1 + heads folded (no activation between them in the reference):
    #   mu|logvar = (W_fc1^T @ [W_mu^T | W_lv^T]) applied to flatten + folded bias
    w_heads = jnp.concatenate([params["fc_mu_w"].T, params["fc_lv_w"].T], axis=1)
    b_heads = jnp.concatenate([params["fc_mu_b"], params["fc_lv_b"]])
    wcomb_full = jnp.dot(params["fc1_w"].T, w_heads, precision=hp)   # [flat, 2L]
    bcomb = jnp.dot(params["fc1_b"], w_heads, precision=hp) + b_heads

    # fold PyTorch's NCHW flatten (index = c2*P2 + p) into (p, c2) lane order
    wcomb_pc = wcomb_full.reshape(C2, P2, 2 * latent_dim).transpose(1, 0, 2)  # [P2,C2,2L]
    wfc = jnp.zeros((P2, C2P, LP), jnp.float32).at[:, :C2, :2 * latent_dim].set(wcomb_pc)
    wfc = wfc.reshape(P2 * C2P, LP)
    bfc = jnp.zeros((1, LP), jnp.float32).at[0, :2 * latent_dim].set(bcomb)

    tensors = {
        "w1": w1.astype(bf16), "b1": b1,
        "sel2": sel2, "w2": w2.astype(bf16), "b2": b2,
        "wfc": wfc.astype(bf16), "bfc": bfc,
    }
    dims = dict(P2=P2, NP=NP, R1P=R1P, R2P=R2P, K1P=K1P,
                C1P=C1P, C2P=C2P, LP=LP, latent=latent_dim, batch=N)
    return tensors, dims


# ----------------------------------------------------------------------------
# Forward wrapper
# ----------------------------------------------------------------------------
def make_encoder_forward(dims):
    NP, R1P, R2P, K1P = dims["NP"], dims["R1P"], dims["R2P"], dims["K1P"]
    C1P, C2P, LP = dims["C1P"], dims["C2P"], dims["LP"]
    P2, latent, batch = dims["P2"], dims["latent"], dims["batch"]

    kernel = functools.partial(_encoder_kernel, n_taps=9, n_pos=P2, batch_pad=NP)
    vmem = pl.BlockSpec(memory_space=pltpu.MemorySpace.VMEM)
    call = pl.pallas_call(
        kernel,
        out_shape=jax.ShapeDtypeStruct((NP, LP), jnp.float32),
        in_specs=[vmem] * 8,
        out_specs=vmem,
        scratch_shapes=[
            pltpu.VMEM((R2P, 9 * C1P), jnp.bfloat16),   # conv2 im2col (lane-blocked)
            pltpu.VMEM((NP, P2 * C2P), jnp.bfloat16),   # fc input (lane-blocked)
        ],
    )

    @jax.jit
    def forward(tensors, x):
        assert x.shape[0] == batch, "selection matrices were built for this batch size"
        patches = _im2col_conv1(x)                                # [N*P1, Cin*9]
        p1 = jnp.zeros((R1P, K1P), jnp.bfloat16)
        p1 = p1.at[:patches.shape[0], :patches.shape[1]].set(patches.astype(jnp.bfloat16))
        out = call(p1, tensors["w1"], tensors["b1"], tensors["sel2"],
                   tensors["w2"], tensors["b2"], tensors["wfc"], tensors["bfc"])
        mu = out[:batch, :latent]
        log_var = out[:batch, latent:2 * latent]
        return mu, log_var

    return forward


# ----------------------------------------------------------------------------
# Parameter init (PyTorch-style uniform(-1/sqrt(fan_in), 1/sqrt(fan_in)))
# ----------------------------------------------------------------------------
def init_params(key, img_sz, hidden_dim, latent_dim):
    H, W = img_sz
    flat = 64 * (H // 4) * (W // 4)
    keys = jax.random.split(key, 10)

    def u(k, shape, fan_in):
        bound = 1.0 / np.sqrt(fan_in)
        return jax.random.uniform(k, shape, jnp.float32, -bound, bound)

    return {
        "conv1_w": u(keys[0], (32, 1, 3, 3), 1 * 9),
        "conv1_b": u(keys[1], (32,), 1 * 9),
        "conv2_w": u(keys[2], (64, 32, 3, 3), 32 * 9),
        "conv2_b": u(keys[3], (64,), 32 * 9),
        "fc1_w":   u(keys[4], (hidden_dim, flat), flat),
        "fc1_b":   u(keys[5], (hidden_dim,), flat),
        "fc_mu_w": u(keys[6], (latent_dim, hidden_dim), hidden_dim),
        "fc_mu_b": u(keys[7], (latent_dim,), hidden_dim),
        "fc_lv_w": u(keys[8], (latent_dim, hidden_dim), hidden_dim),
        "fc_lv_b": u(keys[9], (latent_dim,), hidden_dim),
    }


# Pure-JAX reference (mirrors the PyTorch module) for a tolerance check.
def encoder_reference(params, x):
    hp = lax.Precision.HIGHEST

    def conv(x, w, b):
        y = lax.conv_general_dilated(x, w, window_strides=(2, 2),
                                     padding=((1, 1), (1, 1)),
                                     dimension_numbers=("NCHW", "OIHW", "NCHW"),
                                     precision=hp)
        return jax.nn.relu(y + b[None, :, None, None])

    x = conv(x, params["conv1_w"], params["conv1_b"])
    x = conv(x, params["conv2_w"], params["conv2_b"])
    x = x.reshape(x.shape[0], -1)
    h = jnp.dot(x, params["fc1_w"].T, precision=hp) + params["fc1_b"]
    mu = jnp.dot(h, params["fc_mu_w"].T, precision=hp) + params["fc_mu_b"]
    lv = jnp.dot(h, params["fc_lv_w"].T, precision=hp) + params["fc_lv_b"]
    return mu, lv


if __name__ == "__main__":
    key = jax.random.PRNGKey(0)
    img_sz = (16, 16)
    hidden_dim, latent_dim, batch = 32, 8, 2

    pkey, xkey = jax.random.split(key)
    params = init_params(pkey, img_sz, hidden_dim, latent_dim)
    x = jax.random.normal(xkey, (batch, 1, img_sz[0], img_sz[1]), jnp.float32)

    tensors, dims = prepare_params(params, img_sz, hidden_dim, latent_dim, batch)
    forward = make_encoder_forward(dims)

    mu, log_var = forward(tensors, x)
    jax.block_until_ready((mu, log_var))
    assert mu.shape == (batch, latent_dim) and log_var.shape == (batch, latent_dim)

    mu_ref, lv_ref = encoder_reference(params, x)
    np.testing.assert_allclose(np.asarray(mu), np.asarray(mu_ref), rtol=5e-2, atol=2e-2)
    np.testing.assert_allclose(np.asarray(log_var), np.asarray(lv_ref), rtol=5e-2, atol=2e-2)

    print("KERNEL_OK")
</pallas_src>

<mosaic_0001>
module attributes {stable_mosaic.version = 11 : i64} {
  func.func @_encoder_kernel(%arg0: memref<128x128xbf16, #tpu.memory_space<vmem>>, %arg1: memref<128x128xbf16, #tpu.memory_space<vmem>>, %arg2: memref<1x128xf32, #tpu.memory_space<vmem>>, %arg3: memref<9x128x128xbf16, #tpu.memory_space<vmem>>, %arg4: memref<1152x128xbf16, #tpu.memory_space<vmem>>, %arg5: memref<1x128xf32, #tpu.memory_space<vmem>>, %arg6: memref<2048x128xbf16, #tpu.memory_space<vmem>>, %arg7: memref<1x128xf32, #tpu.memory_space<vmem>>, %arg8: memref<8x128xf32, #tpu.memory_space<vmem>>, %arg9: memref<128x1152xbf16, #tpu.memory_space<vmem>>, %arg10: memref<8x2048xbf16, #tpu.memory_space<vmem>>) attributes {dimension_semantics = [], scalar_prefetch = 0 : i64, scratch_operands = 2 : i64, tpu.core_type = #tpu.core_type<tc>} {
    %c0 = arith.constant 0 : index
    %c0_0 = arith.constant 0 : index
    %0 = vector.load %arg0[%c0, %c0_0] : memref<128x128xbf16, #tpu.memory_space<vmem>>, vector<128x128xbf16>
    %c0_1 = arith.constant 0 : index
    %c0_2 = arith.constant 0 : index
    %1 = vector.load %arg1[%c0_1, %c0_2] : memref<128x128xbf16, #tpu.memory_space<vmem>>, vector<128x128xbf16>
    %cst = arith.constant dense<0.000000e+00> : vector<128x128xf32>
    %2 = tpu.matmul %0, %1, %cst {dimension_numbers = #tpu.dot_dimension_numbers<[1], [0], [0], [1], [0, 0, 1, 1], [], []>} : vector<128x128xbf16>, vector<128x128xbf16>, vector<128x128xf32> -> vector<128x128xf32>
    %c0_3 = arith.constant 0 : index
    %c0_4 = arith.constant 0 : index
    %3 = vector.load %arg2[%c0_3, %c0_4] : memref<1x128xf32, #tpu.memory_space<vmem>>, vector<1x128xf32>
    %4 = vector.broadcast %3 : vector<1x128xf32> to vector<128x128xf32>
    %5 = arith.addf %2, %4 : vector<128x128xf32>
    %cst_5 = arith.constant 0.000000e+00 : f32
    %6 = vector.broadcast %cst_5 : f32 to vector<128x128xf32>
    %7 = arith.maximumf %5, %6 : vector<128x128xf32>
    %8 = arith.truncf %7 : vector<128x128xf32> to vector<128x128xbf16>
    %c0_6 = arith.constant 0 : index
    %c0_7 = arith.constant 0 : index
    %c0_8 = arith.constant 0 : index
    %9 = vector.load %arg3[%c0_6, %c0_7, %c0_8] : memref<9x128x128xbf16, #tpu.memory_space<vmem>>, vector<1x128x128xbf16>
    %10 = vector.shape_cast %9 : vector<1x128x128xbf16> to vector<128x128xbf16>
    %cst_9 = arith.constant dense<0.000000e+00> : vector<128x128xf32>
    %11 = tpu.matmul %10, %8, %cst_9 {dimension_numbers = #tpu.dot_dimension_numbers<[1], [0], [0], [1], [0, 0, 1, 1], [], []>} : vector<128x128xbf16>, vector<128x128xbf16>, vector<128x128xf32> -> vector<128x128xf32>
    %12 = arith.truncf %11 : vector<128x128xf32> to vector<128x128xbf16>
    %c0_10 = arith.constant 0 : index
    %c0_11 = arith.constant 0 : index
    %13 = vector.load %arg9[%c0_10, %c0_11] : memref<128x1152xbf16, #tpu.memory_space<vmem>>, vector<128x128xbf16>
    tpu.vector_store %arg9[%c0_10, %c0_11], %12 {strides = array<i32>} : memref<128x1152xbf16, #tpu.memory_space<vmem>>, vector<128x128xbf16>,
    %c1 = arith.constant 1 : index
    %c0_12 = arith.constant 0 : index
    %c0_13 = arith.constant 0 : index
    %14 = vector.load %arg3[%c1, %c0_12, %c0_13] : memref<9x128x128xbf16, #tpu.memory_space<vmem>>, vector<1x128x128xbf16>
    %15 = vector.shape_cast %14 : vector<1x128x128xbf16> to vector<128x128xbf16>
    %cst_14 = arith.constant dense<0.000000e+00> : vector<128x128xf32>
    %16 = tpu.matmul %15, %8, %cst_14 {dimension_numbers = #tpu.dot_dimension_numbers<[1], [0], [0], [1], [0, 0, 1, 1], [], []>} : vector<128x128xbf16>, vector<128x128xbf16>, vector<128x128xf32> -> vector<128x128xf32>
    %17 = arith.truncf %16 : vector<128x128xf32> to vector<128x128xbf16>
    %c0_15 = arith.constant 0 : index
    %c128 = arith.constant 128 : index
    %18 = vector.load %arg9[%c0_15, %c128] : memref<128x1152xbf16, #tpu.memory_space<vmem>>, vector<128x128xbf16>
    tpu.vector_store %arg9[%c0_15, %c128], %17 {strides = array<i32>} : memref<128x1152xbf16, #tpu.memory_space<vmem>>, vector<128x128xbf16>,
    %c2 = arith.constant 2 : index
    %c0_16 = arith.constant 0 : index
    %c0_17 = arith.constant 0 : index
    %19 = vector.load %arg3[%c2, %c0_16, %c0_17] : memref<9x128x128xbf16, #tpu.memory_space<vmem>>, vector<1x128x128xbf16>
    %20 = vector.shape_cast %19 : vector<1x128x128xbf16> to vector<128x128xbf16>
    %cst_18 = arith.constant dense<0.000000e+00> : vector<128x128xf32>
    %21 = tpu.matmul %20, %8, %cst_18 {dimension_numbers = #tpu.dot_dimension_numbers<[1], [0], [0], [1], [0, 0, 1, 1], [], []>} : vector<128x128xbf16>, vector<128x128xbf16>, vector<128x128xf32> -> vector<128x128xf32>
    %22 = arith.truncf %21 : vector<128x128xf32> to vector<128x128xbf16>
    %c0_19 = arith.constant 0 : index
    %c256 = arith.constant 256 : index
    %23 = vector.load %arg9[%c0_19, %c256] : memref<128x1152xbf16, #tpu.memory_space<vmem>>, vector<128x128xbf16>
    tpu.vector_store %arg9[%c0_19, %c256], %22 {strides = array<i32>} : memref<128x1152xbf16, #tpu.memory_space<vmem>>, vector<128x128xbf16>,
    %c3 = arith.constant 3 : index
    %c0_20 = arith.constant 0 : index
    %c0_21 = arith.constant 0 : index
    %24 = vector.load %arg3[%c3, %c0_20, %c0_21] : memref<9x128x128xbf16, #tpu.memory_space<vmem>>, vector<1x128x128xbf16>
    %25 = vector.shape_cast %24 : vector<1x128x128xbf16> to vector<128x128xbf16>
    %cst_22 = arith.constant dense<0.000000e+00> : vector<128x128xf32>
    %26 = tpu.matmul %25, %8, %cst_22 {dimension_numbers = #tpu.dot_dimension_numbers<[1], [0], [0], [1], [0, 0, 1, 1], [], []>} : vector<128x128xbf16>, vector<128x128xbf16>, vector<128x128xf32> -> vector<128x128xf32>
    %27 = arith.truncf %26 : vector<128x128xf32> to vector<128x128xbf16>
    %c0_23 = arith.constant 0 : index
    %c384 = arith.constant 384 : index
    %28 = vector.load %arg9[%c0_23, %c384] : memref<128x1152xbf16, #tpu.memory_space<vmem>>, vector<128x128xbf16>
    tpu.vector_store %arg9[%c0_23, %c384], %27 {strides = array<i32>} : memref<128x1152xbf16, #tpu.memory_space<vmem>>, vector<128x128xbf16>,
    %c4 = arith.constant 4 : index
    %c0_24 = arith.constant 0 : index
    %c0_25 = arith.constant 0 : index
    %29 = vector.load %arg3[%c4, %c0_24, %c0_25] : memref<9x128x128xbf16, #tpu.memory_space<vmem>>, vector<1x128x128xbf16>
    %30 = vector.shape_cast %29 : vector<1x128x128xbf16> to vector<128x128xbf16>
    %cst_26 = arith.constant dense<0.000000e+00> : vector<128x128xf32>
    %31 = tpu.matmul %30, %8, %cst_26 {dimension_numbers = #tpu.dot_dimension_numbers<[1], [0], [0], [1], [0, 0, 1, 1], [], []>} : vector<128x128xbf16>, vector<128x128xbf16>, vector<128x128xf32> -> vector<128x128xf32>
    %32 = arith.truncf %31 : vector<128x128xf32> to vector<128x128xbf16>
    %c0_27 = arith.constant 0 : index
    %c512 = arith.constant 512 : index
    %33 = vector.load %arg9[%c0_27, %c512] : memref<128x1152xbf16, #tpu.memory_space<vmem>>, vector<128x128xbf16>
    tpu.vector_store %arg9[%c0_27, %c512], %32 {strides = array<i32>} : memref<128x1152xbf16, #tpu.memory_space<vmem>>, vector<128x128xbf16>,
    %c5 = arith.constant 5 : index
    %c0_28 = arith.constant 0 : index
    %c0_29 = arith.constant 0 : index
    %34 = vector.load %arg3[%c5, %c0_28, %c0_29] : memref<9x128x128xbf16, #tpu.memory_space<vmem>>, vector<1x128x128xbf16>
    %35 = vector.shape_cast %34 : vector<1x128x128xbf16> to vector<128x128xbf16>
    %cst_30 = arith.constant dense<0.000000e+00> : vector<128x128xf32>
    %36 = tpu.matmul %35, %8, %cst_30 {dimension_numbers = #tpu.dot_dimension_numbers<[1], [0], [0], [1], [0, 0, 1, 1], [], []>} : vector<128x128xbf16>, vector<128x128xbf16>, vector<128x128xf32> -> vector<128x128xf32>
    %37 = arith.truncf %36 : vector<128x128xf32> to vector<128x128xbf16>
    %c0_31 = arith.constant 0 : index
    %c640 = arith.constant 640 : index
    %38 = vector.load %arg9[%c0_31, %c640] : memref<128x1152xbf16, #tpu.memory_space<vmem>>, vector<128x128xbf16>
    tpu.vector_store %arg9[%c0_31, %c640], %37 {strides = array<i32>} : memref<128x1152xbf16, #tpu.memory_space<vmem>>, vector<128x128xbf16>,
    %c6 = arith.constant 6 : index
    %c0_32 = arith.constant 0 : index
    %c0_33 = arith.constant 0 : index
    %39 = vector.load %arg3[%c6, %c0_32, %c0_33] : memref<9x128x128xbf16, #tpu.memory_space<vmem>>, vector<1x128x128xbf16>
    %40 = vector.shape_cast %39 : vector<1x128x128xbf16> to vector<128x128xbf16>
    %cst_34 = arith.constant dense<0.000000e+00> : vector<128x128xf32>
    %41 = tpu.matmul %40, %8, %cst_34 {dimension_numbers = #tpu.dot_dimension_numbers<[1], [0], [0], [1], [0, 0, 1, 1], [], []>} : vector<128x128xbf16>, vector<128x128xbf16>, vector<128x128xf32> -> vector<128x128xf32>
    %42 = arith.truncf %41 : vector<128x128xf32> to vector<128x128xbf16>
    %c0_35 = arith.constant 0 : index
    %c768 = arith.constant 768 : index
    %43 = vector.load %arg9[%c0_35, %c768] : memref<128x1152xbf16, #tpu.memory_space<vmem>>, vector<128x128xbf16>
    tpu.vector_store %arg9[%c0_35, %c768], %42 {strides = array<i32>} : memref<128x1152xbf16, #tpu.memory_space<vmem>>, vector<128x128xbf16>,
    %c7 = arith.constant 7 : index
    %c0_36 = arith.constant 0 : index
    %c0_37 = arith.constant 0 : index
    %44 = vector.load %arg3[%c7, %c0_36, %c0_37] : memref<9x128x128xbf16, #tpu.memory_space<vmem>>, vector<1x128x128xbf16>
    %45 = vector.shape_cast %44 : vector<1x128x128xbf16> to vector<128x128xbf16>
    %cst_38 = arith.constant dense<0.000000e+00> : vector<128x128xf32>
    %46 = tpu.matmul %45, %8, %cst_38 {dimension_numbers = #tpu.dot_dimension_numbers<[1], [0], [0], [1], [0, 0, 1, 1], [], []>} : vector<128x128xbf16>, vector<128x128xbf16>, vector<128x128xf32> -> vector<128x128xf32>
    %47 = arith.truncf %46 : vector<128x128xf32> to vector<128x128xbf16>
    %c0_39 = arith.constant 0 : index
    %c896 = arith.constant 896 : index
    %48 = vector.load %arg9[%c0_39, %c896] : memref<128x1152xbf16, #tpu.memory_space<vmem>>, vector<128x128xbf16>
    tpu.vector_store %arg9[%c0_39, %c896], %47 {strides = array<i32>} : memref<128x1152xbf16, #tpu.memory_space<vmem>>, vector<128x128xbf16>,
    %c8 = arith.constant 8 : index
    %c0_40 = arith.constant 0 : index
    %c0_41 = arith.constant 0 : index
    %49 = vector.load %arg3[%c8, %c0_40, %c0_41] : memref<9x128x128xbf16, #tpu.memory_space<vmem>>, vector<1x128x128xbf16>
    %50 = vector.shape_cast %49 : vector<1x128x128xbf16> to vector<128x128xbf16>
    %cst_42 = arith.constant dense<0.000000e+00> : vector<128x128xf32>
    %51 = tpu.matmul %50, %8, %cst_42 {dimension_numbers = #tpu.dot_dimension_numbers<[1], [0], [0], [1], [0, 0, 1, 1], [], []>} : vector<128x128xbf16>, vector<128x128xbf16>, vector<128x128xf32> -> vector<128x128xf32>
    %52 = arith.truncf %51 : vector<128x128xf32> to vector<128x128xbf16>
    %c0_43 = arith.constant 0 : index
    %c1024 = arith.constant 1024 : index
    %53 = vector.load %arg9[%c0_43, %c1024] : memref<128x1152xbf16, #tpu.memory_space<vmem>>, vector<128x128xbf16>
    tpu.vector_store %arg9[%c0_43, %c1024], %52 {strides = array<i32>} : memref<128x1152xbf16, #tpu.memory_space<vmem>>, vector<128x128xbf16>,
    %c0_44 = arith.constant 0 : index
    %c0_45 = arith.constant 0 : index
    %54 = vector.load %arg9[%c0_44, %c0_45] : memref<128x1152xbf16, #tpu.memory_space<vmem>>, vector<128x1152xbf16>
    %c0_46 = arith.constant 0 : index
    %c0_47 = arith.constant 0 : index
    %55 = vector.load %arg4[%c0_46, %c0_47] : memref<1152x128xbf16, #tpu.memory_space<vmem>>, vector<1152x128xbf16>
    %cst_48 = arith.constant dense<0.000000e+00> : vector<128x128xf32>
    %56 = tpu.matmul %54, %55, %cst_48 {dimension_numbers = #tpu.dot_dimension_numbers<[1], [0], [0], [1], [0, 0, 1, 1], [], []>} : vector<128x1152xbf16>, vector<1152x128xbf16>, vector<128x128xf32> -> vector<128x128xf32>
    %c0_49 = arith.constant 0 : index
    %c0_50 = arith.constant 0 : index
    %57 = vector.load %arg5[%c0_49, %c0_50] : memref<1x128xf32, #tpu.memory_space<vmem>>, vector<1x128xf32>
    %58 = vector.broadcast %57 : vector<1x128xf32> to vector<128x128xf32>
    %59 = arith.addf %56, %58 : vector<128x128xf32>
    %cst_51 = arith.constant 0.000000e+00 : f32
    %60 = vector.broadcast %cst_51 : f32 to vector<128x128xf32>
    %61 = arith.maximumf %59, %60 : vector<128x128xf32>
    %62 = vector.extract_strided_slice %61 {offsets = [0, 0], sizes = [8, 128], strides = [1, 1]} : vector<128x128xf32> to vector<8x128xf32>
    %63 = arith.truncf %62 : vector<8x128xf32> to vector<8x128xbf16>
    %c0_52 = arith.constant 0 : index
    %c0_53 = arith.constant 0 : index
    %64 = vector.load %arg10[%c0_52, %c0_53] : memref<8x2048xbf16, #tpu.memory_space<vmem>>, vector<8x128xbf16>
    tpu.vector_store %arg10[%c0_52, %c0_53], %63 {strides = array<i32>} : memref<8x2048xbf16, #tpu.memory_space<vmem>>, vector<8x128xbf16>,
    %65 = vector.extract_strided_slice %61 {offsets = [8, 0], sizes = [8, 128], strides = [1, 1]} : vector<128x128xf32> to vector<8x128xf32>
    %66 = arith.truncf %65 : vector<8x128xf32> to vector<8x128xbf16>
    %c0_54 = arith.constant 0 : index
    %c128_55 = arith.constant 128 : index
    %67 = vector.load %arg10[%c0_54, %c128_55] : memref<8x2048xbf16, #tpu.memory_space<vmem>>, vector<8x128xbf16>
    tpu.vector_store %arg10[%c0_54, %c128_55], %66 {strides = array<i32>} : memref<8x2048xbf16, #tpu.memory_space<vmem>>, vector<8x128xbf16>,
    %68 = vector.extract_strided_slice %61 {offsets = [16, 0], sizes = [8, 128], strides = [1, 1]} : vector<128x128xf32> to vector<8x128xf32>
    %69 = arith.truncf %68 : vector<8x128xf32> to vector<8x128xbf16>
    %c0_56 = arith.constant 0 : index
    %c256_57 = arith.constant 256 : index
    %70 = vector.load %arg10[%c0_56, %c256_57] : memref<8x2048xbf16, #tpu.memory_space<vmem>>, vector<8x128xbf16>
    tpu.vector_store %arg10[%c0_56, %c256_57], %69 {strides = array<i32>} : memref<8x2048xbf16, #tpu.memory_space<vmem>>, vector<8x128xbf16>,
    %71 = vector.extract_strided_slice %61 {offsets = [24, 0], sizes = [8, 128], strides = [1, 1]} : vector<128x128xf32> to vector<8x128xf32>
    %72 = arith.truncf %71 : vector<8x128xf32> to vector<8x128xbf16>
    %c0_58 = arith.constant 0 : index
    %c384_59 = arith.constant 384 : index
    %73 = vector.load %arg10[%c0_58, %c384_59] : memref<8x2048xbf16, #tpu.memory_space<vmem>>, vector<8x128xbf16>
    tpu.vector_store %arg10[%c0_58, %c384_59], %72 {strides = array<i32>} : memref<8x2048xbf16, #tpu.memory_space<vmem>>, vector<8x128xbf16>,
    %74 = vector.extract_strided_slice %61 {offsets = [32, 0], sizes = [8, 128], strides = [1, 1]} : vector<128x128xf32> to vector<8x128xf32>
    %75 = arith.truncf %74 : vector<8x128xf32> to vector<8x128xbf16>
    %c0_60 = arith.constant 0 : index
    %c512_61 = arith.constant 512 : index
    %76 = vector.load %arg10[%c0_60, %c512_61] : memref<8x2048xbf16, #tpu.memory_space<vmem>>, vector<8x128xbf16>
    tpu.vector_store %arg10[%c0_60, %c512_61], %75 {strides = array<i32>} : memref<8x2048xbf16, #tpu.memory_space<vmem>>, vector<8x128xbf16>,
    %77 = vector.extract_strided_slice %61 {offsets = [40, 0], sizes = [8, 128], strides = [1, 1]} : vector<128x128xf32> to vector<8x128xf32>
    %78 = arith.truncf %77 : vector<8x128xf32> to vector<8x128xbf16>
    %c0_62 = arith.constant 0 : index
    %c640_63 = arith.constant 640 : index
    %79 = vector.load %arg10[%c0_62, %c640_63] : memref<8x2048xbf16, #tpu.memory_space<vmem>>, vector<8x128xbf16>
    tpu.vector_store %arg10[%c0_62, %c640_63], %78 {strides = array<i32>} : memref<8x2048xbf16, #tpu.memory_space<vmem>>, vector<8x128xbf16>,
    %80 = vector.extract_strided_slice %61 {offsets = [48, 0], sizes = [8, 128], strides = [1, 1]} : vector<128x128xf32> to vector<8x128xf32>
    %81 = arith.truncf %80 : vector<8x128xf32> to vector<8x128xbf16>
    %c0_64 = arith.constant 0 : index
    %c768_65 = arith.constant 768 : index
    %82 = vector.load %arg10[%c0_64, %c768_65] : memref<8x2048xbf16, #tpu.memory_space<vmem>>, vector<8x128xbf16>
    tpu.vector_store %arg10[%c0_64, %c768_65], %81 {strides = array<i32>} : memref<8x2048xbf16, #tpu.memory_space<vmem>>, vector<8x128xbf16>,
    %83 = vector.extract_strided_slice %61 {offsets = [56, 0], sizes = [8, 128], strides = [1, 1]} : vector<128x128xf32> to vector<8x128xf32>
    %84 = arith.truncf %83 : vector<8x128xf32> to vector<8x128xbf16>
    %c0_66 = arith.constant 0 : index
    %c896_67 = arith.constant 896 : index
    %85 = vector.load %arg10[%c0_66, %c896_67] : memref<8x2048xbf16, #tpu.memory_space<vmem>>, vector<8x128xbf16>
    tpu.vector_store %arg10[%c0_66, %c896_67], %84 {strides = array<i32>} : memref<8x2048xbf16, #tpu.memory_space<vmem>>, vector<8x128xbf16>,
    %86 = vector.extract_strided_slice %61 {offsets = [64, 0], sizes = [8, 128], strides = [1, 1]} : vector<128x128xf32> to vector<8x128xf32>
    %87 = arith.truncf %86 : vector<8x128xf32> to vector<8x128xbf16>
    %c0_68 = arith.constant 0 : index
    %c1024_69 = arith.constant 1024 : index
    %88 = vector.load %arg10[%c0_68, %c1024_69] : memref<8x2048xbf16, #tpu.memory_space<vmem>>, vector<8x128xbf16>
    tpu.vector_store %arg10[%c0_68, %c1024_69], %87 {strides = array<i32>} : memref<8x2048xbf16, #tpu.memory_space<vmem>>, vector<8x128xbf16>,
    %89 = vector.extract_strided_slice %61 {offsets = [72, 0], sizes = [8, 128], strides = [1, 1]} : vector<128x128xf32> to vector<8x128xf32>
    %90 = arith.truncf %89 : vector<8x128xf32> to vector<8x128xbf16>
    %c0_70 = arith.constant 0 : index
    %c1152 = arith.constant 1152 : index
    %91 = vector.load %arg10[%c0_70, %c1152] : memref<8x2048xbf16, #tpu.memory_space<vmem>>, vector<8x128xbf16>
    tpu.vector_store %arg10[%c0_70, %c1152], %90 {strides = array<i32>} : memref<8x2048xbf16, #tpu.memory_space<vmem>>, vector<8x128xbf16>,
    %92 = vector.extract_strided_slice %61 {offsets = [80, 0], sizes = [8, 128], strides = [1, 1]} : vector<128x128xf32> to vector<8x128xf32>
    %93 = arith.truncf %92 : vector<8x128xf32> to vector<8x128xbf16>
    %c0_71 = arith.constant 0 : index
    %c1280 = arith.constant 1280 : index
    %94 = vector.load %arg10[%c0_71, %c1280] : memref<8x2048xbf16, #tpu.memory_space<vmem>>, vector<8x128xbf16>
    tpu.vector_store %arg10[%c0_71, %c1280], %93 {strides = array<i32>} : memref<8x2048xbf16, #tpu.memory_space<vmem>>, vector<8x128xbf16>,
    %95 = vector.extract_strided_slice %61 {offsets = [88, 0], sizes = [8, 128], strides = [1, 1]} : vector<128x128xf32> to vector<8x128xf32>
    %96 = arith.truncf %95 : vector<8x128xf32> to vector<8x128xbf16>
    %c0_72 = arith.constant 0 : index
    %c1408 = arith.constant 1408 : index
    %97 = vector.load %arg10[%c0_72, %c1408] : memref<8x2048xbf16, #tpu.memory_space<vmem>>, vector<8x128xbf16>
    tpu.vector_store %arg10[%c0_72, %c1408], %96 {strides = array<i32>} : memref<8x2048xbf16, #tpu.memory_space<vmem>>, vector<8x128xbf16>,
    %98 = vector.extract_strided_slice %61 {offsets = [96, 0], sizes = [8, 128], strides = [1, 1]} : vector<128x128xf32> to vector<8x128xf32>
    %99 = arith.truncf %98 : vector<8x128xf32> to vector<8x128xbf16>
    %c0_73 = arith.constant 0 : index
    %c1536 = arith.constant 1536 : index
    %100 = vector.load %arg10[%c0_73, %c1536] : memref<8x2048xbf16, #tpu.memory_space<vmem>>, vector<8x128xbf16>
    tpu.vector_store %arg10[%c0_73, %c1536], %99 {strides = array<i32>} : memref<8x2048xbf16, #tpu.memory_space<vmem>>, vector<8x128xbf16>,
    %101 = vector.extract_strided_slice %61 {offsets = [104, 0], sizes = [8, 128], strides = [1, 1]} : vector<128x128xf32> to vector<8x128xf32>
    %102 = arith.truncf %101 : vector<8x128xf32> to vector<8x128xbf16>
    %c0_74 = arith.constant 0 : index
    %c1664 = arith.constant 1664 : index
    %103 = vector.load %arg10[%c0_74, %c1664] : memref<8x2048xbf16, #tpu.memory_space<vmem>>, vector<8x128xbf16>
    tpu.vector_store %arg10[%c0_74, %c1664], %102 {strides = array<i32>} : memref<8x2048xbf16, #tpu.memory_space<vmem>>, vector<8x128xbf16>,
    %104 = vector.extract_strided_slice %61 {offsets = [112, 0], sizes = [8, 128], strides = [1, 1]} : vector<128x128xf32> to vector<8x128xf32>
    %105 = arith.truncf %104 : vector<8x128xf32> to vector<8x128xbf16>
    %c0_75 = arith.constant 0 : index
    %c1792 = arith.constant 1792 : index
    %106 = vector.load %arg10[%c0_75, %c1792] : memref<8x2048xbf16, #tpu.memory_space<vmem>>, vector<8x128xbf16>
    tpu.vector_store %arg10[%c0_75, %c1792], %105 {strides = array<i32>} : memref<8x2048xbf16, #tpu.memory_space<vmem>>, vector<8x128xbf16>,
    %107 = vector.extract_strided_slice %61 {offsets = [120, 0], sizes = [8, 128], strides = [1, 1]} : vector<128x128xf32> to vector<8x128xf32>
    %108 = arith.truncf %107 : vector<8x128xf32> to vector<8x128xbf16>
    %c0_76 = arith.constant 0 : index
    %c1920 = arith.constant 1920 : index
    %109 = vector.load %arg10[%c0_76, %c1920] : memref<8x2048xbf16, #tpu.memory_space<vmem>>, vector<8x128xbf16>
    tpu.vector_store %arg10[%c0_76, %c1920], %108 {strides = array<i32>} : memref<8x2048xbf16, #tpu.memory_space<vmem>>, vector<8x128xbf16>,
    %c0_77 = arith.constant 0 : index
    %c0_78 = arith.constant 0 : index
    %110 = vector.load %arg10[%c0_77, %c0_78] : memref<8x2048xbf16, #tpu.memory_space<vmem>>, vector<8x2048xbf16>
    %c0_79 = arith.constant 0 : index
    %c0_80 = arith.constant 0 : index
    %111 = vector.load %arg6[%c0_79, %c0_80] : memref<2048x128xbf16, #tpu.memory_space<vmem>>, vector<2048x128xbf16>
    %cst_81 = arith.constant dense<0.000000e+00> : vector<8x128xf32>
    %112 = tpu.matmul %110, %111, %cst_81 {dimension_numbers = #tpu.dot_dimension_numbers<[1], [0], [0], [1], [0, 0, 1, 1], [], []>} : vector<8x2048xbf16>, vector<2048x128xbf16>, vector<8x128xf32> -> vector<8x128xf32>
    %c0_82 = arith.constant 0 : index
    %c0_83 = arith.constant 0 : index
    %113 = vector.load %arg7[%c0_82, %c0_83] : memref<1x128xf32, #tpu.memory_space<vmem>>, vector<1x128xf32>
    %114 = vector.broadcast %113 : vector<1x128xf32> to vector<8x128xf32>
    %115 = arith.addf %112, %114 : vector<8x128xf32>
    %c0_84 = arith.constant 0 : index
    %c0_85 = arith.constant 0 : index
    %116 = vector.load %arg8[%c0_84, %c0_85] : memref<8x128xf32, #tpu.memory_space<vmem>>, vector<8x128xf32>
    tpu.vector_store %arg8[%c0_84, %c0_85], %115 {strides = array<i32>} : memref<8x128xf32, #tpu.memory_space<vmem>>, vector<8x128xf32>,
    return
  }
}

</mosaic_0001>

<bundles_post_ra>
// kernel: forward.1
= control target key start
LH: loop header
LB: loop body
LE: loop exit
PB: predicated region body
PF: predicated region fallthrough
CT: control target
= control target key end

     0   :  { %13 = vsyncpa [#allocation5], 0  ;;  %s8424_s0 = inlined_call_operand.vmem [shape: bf16[128,128], index: 0, kind: input, shape index: {}]   ;;  %s8425_s1 = inlined_call_operand.vmem [shape: bf16[128,128], index: 1, kind: input, shape index: {}]   ;;  %s8426_s2 = inlined_call_operand.vmem [shape: f32[1,128], index: 2, kind: input, shape index: {}]   ;;  %s8427_s3 = inlined_call_operand.vmem [shape: bf16[9,128,128], index: 3, kind: input, shape index: {}]   ;;  %s8428_s4 = inlined_call_operand.hbm [shape: bf16[1152,128], index: 4, kind: input, shape index: {}]   ;;  %s8429_s5 = inlined_call_operand.vmem [shape: f32[1,128], index: 5, kind: input, shape index: {}]   ;;  %s8430_s6 = inlined_call_operand.hbm [shape: bf16[2048,128], index: 6, kind: input, shape index: {}]   ;;  %s8431_s7 = inlined_call_operand.vmem [shape: f32[1,128], index: 7, kind: input, shape index: {}]   ;;  %s8432_s8 = inlined_call_operand.vmem [shape: f32[8,128], index: 8, kind: output, shape index: {}]  }
   0x1   :  { %14 = vsyncpa [#allocation7], 0  ;;  %s7731_s27 = smov [#allocation4]  }
   0x2   :  { %s28_s28 = sshll.u32 %s7731_s27, 4  ;;  %s29_s28 = int_to_ptr.vmem [resolvable:$true] %s28_s28 }
   0x3   :  { %s7695_s29 = scalar_lea.vmem %s29_s28, 9216  ;;  %p7700_p1 = scmp.lt.s32.totalorder %s29_s28, %s29_s28 }
   0x4   :  { %p7696_p0 = scmp.ne.s32.totalorder %s29_s28, %s7695_s29  ;;  %p7701_p2 = scmp.lt.s32.totalorder %s7695_s29, %s7695_s29 }
   0x6   :  { %p7702_p3 = por %p7701_p2, %p7700_p1 }
   0x8   :  { %p7703_p4 = pnand %p7702_p3, %p7696_p0 }
   0xa   :  { %7706 = shalt.err (!%p7703_p4)
}
   0xb   :  { %s7732_s30 = smov 64   ;;  %s7733_s9 = smov 4  }
   0xc   :  { %34 = dma.hbm_to_vmem [thread:$0]  %s8428_s4, 9216, %s29_s28, [#allocation5], %s7732_s30, %s7732_s30, %s7733_s9  }
   0xd   :  { %s7734_s12 = smov [#allocation6]  }
   0xe   :  { %s42_s13 = sshll.u32 %s7734_s12, 4  ;;  %s43_s13 = int_to_ptr.vmem [resolvable:$true] %s42_s13 }
   0xf   :  { %s7715_s14 = scalar_lea.vmem %s43_s13, 16384  ;;  %p7720_p6 = scmp.lt.s32.totalorder %s43_s13, %s43_s13 }
  0x10   :  { %p7716_p5 = scmp.ne.s32.totalorder %s43_s13, %s7715_s14  ;;  %p7721_p7 = scmp.lt.s32.totalorder %s7715_s14, %s7715_s14 }
  0x12   :  { %p7722_p8 = por %p7721_p7, %p7720_p6 }
  0x14   :  { %p7723_p9 = pnand %p7722_p8, %p7716_p5 }
  0x16   :  { %7726 = shalt.err (!%p7723_p9)
}
  0x17   :  { %48 = dma.hbm_to_vmem [thread:$0]  %s8430_s6, 16384, %s43_s13, [#allocation7], %s7732_s30, %s7732_s30, %s7733_s9  }
  0x18   :  { %7727 = dma.done.wait [#allocation5], 9216  }
  0x19   :  { %7728 = vsyncadd [#allocation5], 4294958080 }
  0x1a   :  { %7729 = dma.done.wait [#allocation7], 16384  }
  0x1b   :  { %7730 = vsyncadd [#allocation7], 4294950912  ;;  %v7299_v0 = vld [vmem:[%s8425_s1 + $0x38] sm:$0xff]   ;;  %v7300_v1 = vld [vmem:[%s8425_s1 + $0x30] sm:$0xff]  }
  0x1c   :  { %6943 = vmatprep.subr.bf16.mxu0 %v7299_v0  ;;  %v7301_v2 = vld [vmem:[%s8425_s1 + $0x28] sm:$0xff]   ;;  %v7302_v3 = vld [vmem:[%s8425_s1 + $0x20] sm:$0xff]   ;;  %v7303_v5 = vld [vmem:[%s8425_s1 + $0x18] sm:$0xff]  }
  0x1d   :  { %6944 = vmatpush3.bf16.msra.mxu0 %v7299_v0  ;;  %v7307_v4 = vld [vmem:[%s8424_s0] sm:$0xff]   ;;  %v7304_v6 = vld [vmem:[%s8425_s1 + $0x10] sm:$0xff]   ;;  %v7305_v7 = vld [vmem:[%s8425_s1 + $0x8] sm:$0xff]  }
  0x1e   :  { %6945 = vmatprep.subr.bf16.mxu0 %v7300_v1  ;;  %6959 = vmatprep.mubr.bf16.mxu0 %v7307_v4  ;;  %v7306_v8 = vld [vmem:[%s8425_s1] sm:$0xff]   ;;  %v7308_v9 = vld [vmem:[%s8424_s0 + $0x8] sm:$0xff]   ;;  %v7309_v10 = vld [vmem:[%s8424_s0 + $0x10] sm:$0xff]  }
  0x1f   :  { %v7310_v11 = vld [vmem:[%s8424_s0 + $0x18] sm:$0xff]   ;;  %v7311_v12 = vld [vmem:[%s8424_s0 + $0x20] sm:$0xff]   ;;  %v7312_v13 = vld [vmem:[%s8424_s0 + $0x28] sm:$0xff]  }
  0x20   :  { %v7313_v14 = vld [vmem:[%s8424_s0 + $0x30] sm:$0xff]   ;;  %v7314_v15 = vld [vmem:[%s8424_s0 + $0x38] sm:$0xff]   ;;  %v7315_v16 = vld [vmem:[%s8427_s3] sm:$0xff]  }
  0x21   :  { %6946 = vmatpush3.bf16.msra.mxu0 %v7300_v1  ;;  %v7316_v17 = vld [vmem:[%s8427_s3 + $0x40] sm:$0xff]   ;;  %6991 = vmatprep.mubr.bf16.mxu1 %v7315_v16  ;;  %v7322_v16 = vld [vmem:[%s8427_s3 + $0x58] sm:$0xff]  }
  0x22   :  { %6947 = vmatprep.subr.bf16.mxu0 %v7301_v2  ;;  %v5477_v31 = vld [vmem:[%s8426_s2] ss:$0 sm:$0xff] }
  0x25   :  { %6948 = vmatpush3.bf16.msra.mxu0 %v7301_v2 }
  0x26   :  { %6949 = vmatprep.subr.bf16.mxu0 %v7302_v3 }
  0x29   :  { %6950 = vmatpush3.bf16.msra.mxu0 %v7302_v3 }
  0x2a   :  { %6951 = vmatprep.subr.bf16.mxu0 %v7303_v5 }
  0x2d   :  { %6952 = vmatpush3.bf16.msra.mxu0 %v7303_v5 }
  0x2e   :  { %6953 = vmatprep.subr.bf16.mxu0 %v7304_v6 }
  0x31   :  { %6954 = vmatpush3.bf16.msra.mxu0 %v7304_v6 }
  0x32   :  { %6955 = vmatprep.subr.bf16.mxu0 %v7305_v7 }
  0x35   :  { %6956 = vmatpush3.bf16.msra.mxu0 %v7305_v7 }
  0x36   :  { %6957 = vmatprep.subr.bf16.mxu0 %v7306_v8 }
  0x39   :  { %6958 = vmatpush3.bf16.msra.mxu0 %v7306_v8 }
  0x3c   :  { %6960 = vmatmul.mubr.bf16.vlgmr.msra.gmra.mxu0 %v7308_v9 }
  0x3d   :  { %6963 = vmatprep.mubr.bf16.mxu0 %v7309_v10 }
  0x44   :  { %6964 = vmatmul.mubr.bf16.gmra.mxu0 %v7310_v11  ;;  %v7317_v11 = vld [vmem:[%s8427_s3 + $0x8] sm:$0xff]  }
  0x45   :  { %6967 = vmatprep.mubr.bf16.mxu0 %v7311_v12  ;;  %v7318_v12 = vld [vmem:[%s8427_s3 + $0x48] sm:$0xff]  }
  0x4c   :  { %6968 = vmatmul.mubr.bf16.gmra.mxu0 %v7312_v13  ;;  %v7319_v13 = vld [vmem:[%s8427_s3 + $0x10] sm:$0xff]  }
  0x4d   :  { %6971 = vmatprep.mubr.bf16.mxu0 %v7313_v14  ;;  %v7320_v14 = vld [vmem:[%s8427_s3 + $0x50] sm:$0xff]  }
  0x54   :  { %6972 = vmatmul.mubr.bf16.gmra.mxu0 %v7314_v15  ;;  %v7321_v15 = vld [vmem:[%s8427_s3 + $0x18] sm:$0xff]  }
  0x55   :  { %7023 = vmatprep.mubr.bf16.mxu0 %v7316_v17  ;;  %v7323_v17 = vld [vmem:[%s8427_s3 + $0x20] sm:$0xff]  }
  0xfc   :  { %v6961_v18 = vpop.f32.mrf.mxu0 }
  0xfd   :  { %v236_v0 = vadd.f32 %v6961_v18, %v5477_v31  ;;  %v7324_v18 = vld [vmem:[%s8427_s3 + $0x60] sm:$0xff]  }
  0xfe   :  { %v7840_v19 = vpop.f32.mrf.mxu0 }
  0xff   :  { %v292_v5 = vmax.f32 %v236_v0, 0.0  ;;  %v228_v6 = vadd.f32 %v5477_v31, %v7840_v19  ;;  %v7325_v19 = vld [vmem:[%s8427_s3 + $0x28] sm:$0xff]   ;;  %v7387_v0 = vld [vmem:[#allocation4 + $0x78] sm:$0xff]  }
 0x100   :  { %v6962_v20 = vpop.f32.mrf.mxu0 }
 0x101   :  { %v239_v61 = vadd.f32 %v6962_v20, %v5477_v31  ;;  %v290_v9 = vmax.f32 %v228_v6, 0.0  ;;  %v7326_v20 = vld [vmem:[%s8427_s3 + $0x68] sm:$0xff]   ;;  %v7388_v6 = vld [vmem:[#allocation4 + $0x38] sm:$0xff]  }
 0x102   :  { %v7842_v21 = vpop.f32.mrf.mxu0 }
 0x103   :  { %v293_v2 = vmax.f32 %v239_v61, 0.0  ;;  %v231_v3 = vadd.f32 %v5477_v31, %v7842_v21  ;;  %v7327_v21 = vld [vmem:[%s8427_s3 + $0x30] sm:$0xff]   ;;  %v7363_v61 = vld [vmem:[%s8427_s3 + $0x180] sm:$0xff]  }
 0x104   :  { %v6965_v22 = vpop.f32.mrf.mxu0 }
 0x105   :  { %v252_v54 = vadd.f32 %v6965_v22, %v5477_v31  ;;  %v7883_v7 = vpack.c.bf16 %v293_v2, %v292_v5  ;;  %v291_v8 = vmax.f32 %v231_v3, 0.0  ;;  %v7328_v22 = vld [vmem:[%s8427_s3 + $0x70] sm:$0xff]   ;;  %v7366_v2 = vld [vmem:[%s8427_s3 + $0x1c8] sm:$0xff]  }
 0x106   :  { %v243_v23 = vpop.f32.mrf.mxu0  ;;  %v7367_v3 = vld [vmem:[%s8427_s3 + $0x190] sm:$0xff]  }
 0x107   :  { %v296_v59 = vmax.f32 %v252_v54, 0.0  ;;  %v244_v60 = vadd.f32 %v5477_v31, %v243_v23  ;;  %v7889_v10 = vpack.c.bf16 %v291_v8, %v290_v9  ;;  %v7329_v23 = vld [vmem:[%s8427_s3 + $0x38] sm:$0xff]   ;;  %v7357_v54 = vld [vmem:[%s8427_s3 + $0x128] sm:$0xff]   ;;  %v7368_v5 = vld [vmem:[%s8427_s3 + $0x1d0] sm:$0xff]  }
 0x108   :  { %v6966_v24 = vpop.f32.mrf.mxu0  ;;  %v7389_v8 = vld [vmem:[#allocation4 + $0x70] sm:$0xff]  }
 0x109   :  { %v255_v51 = vadd.f32 %v6966_v24, %v5477_v31  ;;  %v294_v1 = vmax.f32 %v244_v60, 0.0  ;;  %v7330_v24 = vld [vmem:[%s8427_s3 + $0x78] sm:$0xff]   ;;  %v7390_v9 = vld [vmem:[#allocation4 + $0x30] sm:$0xff]  }
 0x10a   :  { %v246_v25 = vpop.f32.mrf.mxu0  ;;  %v7362_v60 = vld [vmem:[%s8427_s3 + $0x178] sm:$0xff]  }
 0x10b   :  { %v297_v56 = vmax.f32 %v255_v51, 0.0  ;;  %v247_v57 = vadd.f32 %v5477_v31, %v246_v25  ;;  %v7331_v25 = vld [vmem:[%s8427_s3 + $0x80] sm:$0xff]  }
 0x10c   :  { %v6969_v26 = vpop.f32.mrf.mxu0  ;;  %v7355_v51 = vld [vmem:[%s8427_s3 + $0x120] sm:$0xff]  }
 0x10d   :  { %v268_v42 = vadd.f32 %v6969_v26, %v5477_v31  ;;  %v7869_v62 = vpack.c.bf16 %v297_v56, %v296_v59  ;;  %v295_v63 = vmax.f32 %v247_v57, 0.0  ;;  %v7332_v26 = vld [vmem:[%s8427_s3 + $0xc0] sm:$0xff]   ;;  %v7359_v56 = vld [vmem:[%s8427_s3 + $0x130] sm:$0xff]   ;;  %v7361_v59 = vld [vmem:[%s8427_s3 + $0x138] sm:$0xff]  }
 0x10e   :  { %v259_v27 = vpop.f32.mrf.mxu0  ;;  %v7360_v57 = vld [vmem:[%s8427_s3 + $0x170] sm:$0xff]  }
 0x10f   :  { %v300_v49 = vmax.f32 %v268_v42, 0.0  ;;  %v260_v50 = vadd.f32 %v5477_v31, %v259_v27  ;;  %v7876_v4 = vpack.c.bf16 %v295_v63, %v294_v1  ;;  %v7333_v27 = vld [vmem:[%s8427_s3 + $0x88] sm:$0xff]   ;;  %v7348_v42 = vld [vmem:[%s8427_s3 + $0x140] sm:$0xff]  }
 0x110   :  { %v6970_v28 = vpop.f32.mrf.mxu0  ;;  %v7364_v63 = vld [vmem:[%s8427_s3 + $0x1c0] sm:$0xff]   ;;  %v7365_v1 = vld [vmem:[%s8427_s3 + $0x188] sm:$0xff]  }
 0x111   :  { %v271_v38 = vadd.f32 %v6970_v28, %v5477_v31  ;;  %v298_v55 = vmax.f32 %v260_v50, 0.0  ;;  %v7334_v28 = vld [vmem:[%s8427_s3 + $0xc8] sm:$0xff]   ;;  %v7354_v50 = vld [vmem:[%s8427_s3 + $0x158] sm:$0xff]  }
 0x112   :  { %v262_v29 = vpop.f32.mrf.mxu0 }
 0x113   :  { %v301_v46 = vmax.f32 %v271_v38, 0.0  ;;  %v263_v47 = vadd.f32 %v5477_v31, %v262_v29  ;;  %v7335_v29 = vld [vmem:[%s8427_s3 + $0x90] sm:$0xff]  }
 0x114   :  { %v6973_v30 = vpop.f32.mrf.mxu0  ;;  %v7344_v38 = vld [vmem:[%s8427_s3 + $0xf0] sm:$0xff]  }
 0x115   :  { %v284_v33 = vadd.f32 %v6973_v30, %v5477_v31  ;;  %v7857_v52 = vpack.c.bf16 %v301_v46, %v300_v49  ;;  %v299_v53 = vmax.f32 %v263_v47, 0.0  ;;  %v7336_v30 = vld [vmem:[%s8427_s3 + $0xd0] sm:$0xff]   ;;  %v7353_v49 = vld [vmem:[%s8427_s3 + $0x118] sm:$0xff]  }
 0x116   :  { %v275_v32 = vpop.f32.mrf.mxu0  ;;  %v7351_v46 = vld [vmem:[%s8427_s3 + $0x110] sm:$0xff]  }
 0x117   :  { %v276_v35 = vadd.f32 %v5477_v31, %v275_v32  ;;  %v304_v39 = vmax.f32 %v284_v33, 0.0  ;;  %v7863_v58 = vpack.c.bf16 %v299_v53, %v298_v55  ;;  %v7338_v32 = vld [vmem:[%s8427_s3 + $0xd8] sm:$0xff]   ;;  %v7339_v33 = vld [vmem:[%s8427_s3 + $0xa0] sm:$0xff]   ;;  %v7352_v47 = vld [vmem:[%s8427_s3 + $0x150] sm:$0xff]  }
 0x118   :  { %v6974_v34 = vpop.f32.mrf.mxu0  ;;  %v7356_v53 = vld [vmem:[%s8427_s3 + $0x160] sm:$0xff]   ;;  %v7358_v55 = vld [vmem:[%s8427_s3 + $0x168] sm:$0xff]  }
 0x119   :  { %v287_v36 = vadd.f32 %v6974_v34, %v5477_v31  ;;  %v302_v43 = vmax.f32 %v276_v35, 0.0  ;;  %v7340_v34 = vld [vmem:[%s8427_s3 + $0xe0] sm:$0xff]   ;;  %v7341_v35 = vld [vmem:[%s8427_s3 + $0xa8] sm:$0xff]  }
 0x11a   :  { %v278_v37 = vpop.f32.mrf.mxu0 }
 0x11b   :  { %v305_v40 = vmax.f32 %v287_v36, 0.0  ;;  %v279_v41 = vadd.f32 %v5477_v31, %v278_v37  ;;  %v7337_v31 = vld [vmem:[%s8427_s3 + $0x98] sm:$0xff]   ;;  %v7342_v36 = vld [vmem:[%s8427_s3 + $0xe8] sm:$0xff]   ;;  %v7343_v37 = vld [vmem:[%s8427_s3 + $0xb0] sm:$0xff]  }
 0x11d   :  { %v7847_v44 = vpack.c.bf16 %v305_v40, %v304_v39  ;;  %v303_v45 = vmax.f32 %v279_v41, 0.0  ;;  %v7345_v39 = vld [vmem:[%s8427_s3 + $0xb8] sm:$0xff]   ;;  %v7347_v41 = vld [vmem:[%s8427_s3 + $0x100] sm:$0xff]  }
 0x11e   :  { %v7346_v40 = vld [vmem:[%s8427_s3 + $0xf8] sm:$0xff]  }
 0x11f   :  { %v7849_v48 = vpack.c.bf16 %v303_v45, %v302_v43  ;;  %6975 = vmatprep.subr.bf16.mxu1 %v7847_v44  ;;  %7007 = vmatprep.subr.bf16.mxu0 %v7847_v44  ;;  %v7349_v43 = vld [vmem:[%s8427_s3 + $0x108] sm:$0xff]  }
 0x120   :  { %6976 = vmatpush3.bf16.msra.mxu1 %v7847_v44  ;;  %7008 = vmatpush3.bf16.msra.mxu0 %v7847_v44  ;;  %v7350_v45 = vld [vmem:[%s8427_s3 + $0x148] sm:$0xff]  }
 0x121   :  { %6977 = vmatprep.subr.bf16.mxu1 %v7849_v48  ;;  %7009 = vmatprep.subr.bf16.mxu0 %v7849_v48 }
 0x124   :  { %6978 = vmatpush3.bf16.msra.mxu1 %v7849_v48  ;;  %7010 = vmatpush3.bf16.msra.mxu0 %v7849_v48 }
 0x125   :  { %6979 = vmatprep.subr.bf16.mxu1 %v7857_v52  ;;  %7011 = vmatprep.subr.bf16.mxu0 %v7857_v52 }
 0x128   :  { %6980 = vmatpush3.bf16.msra.mxu1 %v7857_v52  ;;  %7012 = vmatpush3.bf16.msra.mxu0 %v7857_v52 }
 0x129   :  { %6981 = vmatprep.subr.bf16.mxu1 %v7863_v58  ;;  %7013 = vmatprep.subr.bf16.mxu0 %v7863_v58 }
 0x12c   :  { %6982 = vmatpush3.bf16.msra.mxu1 %v7863_v58  ;;  %7014 = vmatpush3.bf16.msra.mxu0 %v7863_v58 }
 0x12d   :  { %6983 = vmatprep.subr.bf16.mxu1 %v7869_v62  ;;  %7015 = vmatprep.subr.bf16.mxu0 %v7869_v62 }
 0x130   :  { %6984 = vmatpush3.bf16.msra.mxu1 %v7869_v62  ;;  %7016 = vmatpush3.bf16.msra.mxu0 %v7869_v62 }
 0x131   :  { %6985 = vmatprep.subr.bf16.mxu1 %v7876_v4  ;;  %7017 = vmatprep.subr.bf16.mxu0 %v7876_v4 }
 0x134   :  { %6986 = vmatpush3.bf16.msra.mxu1 %v7876_v4  ;;  %7018 = vmatpush3.bf16.msra.mxu0 %v7876_v4 }
 0x135   :  { %6987 = vmatprep.subr.bf16.mxu1 %v7883_v7  ;;  %7019 = vmatprep.subr.bf16.mxu0 %v7883_v7 }
 0x138   :  { %6988 = vmatpush3.bf16.msra.mxu1 %v7883_v7  ;;  %7020 = vmatpush3.bf16.msra.mxu0 %v7883_v7 }
 0x139   :  { %6989 = vmatprep.subr.bf16.mxu1 %v7889_v10  ;;  %7021 = vmatprep.subr.bf16.mxu0 %v7889_v10 }
 0x13c   :  { %6990 = vmatpush3.bf16.msra.mxu1 %v7889_v10  ;;  %7022 = vmatpush3.bf16.msra.mxu0 %v7889_v10 }
 0x13d   :  { %7039 = vmatprep.subr.bf16.mxu1 %v7847_v44  ;;  %7071 = vmatprep.subr.bf16.mxu0 %v7847_v44 }
 0x13f   :  { %6992 = vmatmul.mubr.bf16.vlgmr.msra.gmra.mxu1 %v7317_v11  ;;  %7024 = vmatmul.mubr.bf16.vlgmr.msra.gmra.mxu0 %v7318_v12  ;;  %v7369_v11 = vld [vmem:[%s8427_s3 + $0x198] sm:$0xff]  }
 0x140   :  { %7040 = vmatpush3.bf16.msra.mxu1 %v7847_v44  ;;  %7072 = vmatpush3.bf16.msra.mxu0 %v7847_v44  ;;  %v7370_v12 = vld [vmem:[%s8427_s3 + $0x1d8] sm:$0xff]  }
 0x141   :  { %7041 = vmatprep.subr.bf16.mxu1 %v7849_v48  ;;  %7073 = vmatprep.subr.bf16.mxu0 %v7849_v48 }
 0x142   :  { %6995 = vmatprep.mubr.bf16.mxu1 %v7319_v13  ;;  %7027 = vmatprep.mubr.bf16.mxu0 %v7320_v14  ;;  %v7372_v13 = vld [vmem:[%s8427_s3 + $0x1e0] sm:$0xff]   ;;  %v7391_v14 = vld [vmem:[#allocation4 + $0x68] sm:$0xff]  }
 0x144   :  { %7042 = vmatpush3.bf16.msra.mxu1 %v7849_v48  ;;  %7074 = vmatpush3.bf16.msra.mxu0 %v7849_v48 }
 0x145   :  { %7043 = vmatprep.subr.bf16.mxu1 %v7857_v52  ;;  %7075 = vmatprep.subr.bf16.mxu0 %v7857_v52 }
 0x147   :  { %6996 = vmatmul.mubr.bf16.gmra.mxu1 %v7321_v15  ;;  %7028 = vmatmul.mubr.bf16.gmra.mxu0 %v7322_v16  ;;  %v7392_v15 = vld [vmem:[#allocation4 + $0x28] sm:$0xff]   ;;  %v7393_v16 = vld [vmem:[#allocation4 + $0x60] sm:$0xff]  }
 0x148   :  { %7044 = vmatpush3.bf16.msra.mxu1 %v7857_v52  ;;  %7076 = vmatpush3.bf16.msra.mxu0 %v7857_v52 }
 0x149   :  { %7045 = vmatprep.subr.bf16.mxu1 %v7863_v58  ;;  %7077 = vmatprep.subr.bf16.mxu0 %v7863_v58 }
 0x14a   :  { %6999 = vmatprep.mubr.bf16.mxu1 %v7323_v17  ;;  %7031 = vmatprep.mubr.bf16.mxu0 %v7324_v18  ;;  %v7374_v17 = vld [vmem:[%s8427_s3 + $0x1e8] sm:$0xff]   ;;  %v7376_v18 = vld [vmem:[%s8427_s3 + $0x1f0] sm:$0xff]  }
 0x14c   :  { %7046 = vmatpush3.bf16.msra.mxu1 %v7863_v58  ;;  %7078 = vmatpush3.bf16.msra.mxu0 %v7863_v58 }
 0x14d   :  { %7047 = vmatprep.subr.bf16.mxu1 %v7869_v62  ;;  %7079 = vmatprep.subr.bf16.mxu0 %v7869_v62 }
 0x14f   :  { %7000 = vmatmul.mubr.bf16.gmra.mxu1 %v7325_v19  ;;  %7032 = vmatmul.mubr.bf16.gmra.mxu0 %v7326_v20  ;;  %v7394_v19 = vld [vmem:[#allocation4 + $0x20] sm:$0xff]   ;;  %v7395_v20 = vld [vmem:[#allocation4 + $0x58] sm:$0xff]  }
 0x150   :  { %7048 = vmatpush3.bf16.msra.mxu1 %v7869_v62  ;;  %7080 = vmatpush3.bf16.msra.mxu0 %v7869_v62 }
 0x151   :  { %7049 = vmatprep.subr.bf16.mxu1 %v7876_v4  ;;  %7081 = vmatprep.subr.bf16.mxu0 %v7876_v4 }
 0x152   :  { %7003 = vmatprep.mubr.bf16.mxu1 %v7327_v21  ;;  %7035 = vmatprep.mubr.bf16.mxu0 %v7328_v22  ;;  %v7377_v21 = vld [vmem:[%s8427_s3 + $0x1b8] sm:$0xff]  }
 0x153   :  { %v7378_v22 = vld [vmem:[%s8427_s3 + $0x1f8] sm:$0xff]  }
 0x154   :  { %7050 = vmatpush3.bf16.msra.mxu1 %v7876_v4  ;;  %7082 = vmatpush3.bf16.msra.mxu0 %v7876_v4 }
 0x155   :  { %7051 = vmatprep.subr.bf16.mxu1 %v7883_v7  ;;  %7083 = vmatprep.subr.bf16.mxu0 %v7883_v7 }
 0x157   :  { %7004 = vmatmul.mubr.bf16.gmra.mxu1 %v7329_v23  ;;  %7036 = vmatmul.mubr.bf16.gmra.mxu0 %v7330_v24  ;;  %v7397_v23 = vld [vmem:[#allocation4 + $0x50] sm:$0xff]  }
 0x158   :  { %7052 = vmatpush3.bf16.msra.mxu1 %v7883_v7  ;;  %7084 = vmatpush3.bf16.msra.mxu0 %v7883_v7  ;;  %v7398_v24 = vld [vmem:[#allocation4 + $0x10] sm:$0xff]  }
 0x159   :  { %7053 = vmatprep.subr.bf16.mxu1 %v7889_v10  ;;  %7085 = vmatprep.subr.bf16.mxu0 %v7889_v10 }
 0x15a   :  { %7055 = vmatprep.mubr.bf16.mxu1 %v7331_v25  ;;  %7087 = vmatprep.mubr.bf16.mxu0 %v7332_v26  ;;  %v7399_v25 = vld [vmem:[#allocation4 + $0x48] sm:$0xff]   ;;  %v7406_v26 = vld [vmem:[#allocation4 + $0xf8] sm:$0xff]  }
 0x15c   :  { %7054 = vmatpush3.bf16.msra.mxu1 %v7889_v10  ;;  %7086 = vmatpush3.bf16.msra.mxu0 %v7889_v10 }
 0x15d   :  { %7103 = vmatprep.subr.bf16.mxu1 %v7847_v44  ;;  %7135 = vmatprep.subr.bf16.mxu0 %v7847_v44 }
 0x15f   :  { %7056 = vmatmul.mubr.bf16.vlgmr.msra.gmra.mxu1 %v7333_v27  ;;  %7088 = vmatmul.mubr.bf16.vlgmr.msra.gmra.mxu0 %v7334_v28  ;;  %v7380_v27 = vld [vmem:[%s8427_s3 + $0x208] sm:$0xff]   ;;  %v7401_v28 = vld [vmem:[#allocation4 + $0x40] sm:$0xff]  }
 0x160   :  { %7104 = vmatpush3.bf16.msra.mxu1 %v7847_v44  ;;  %7136 = vmatpush3.bf16.msra.mxu0 %v7847_v44 }
 0x161   :  { %7105 = vmatprep.subr.bf16.mxu1 %v7849_v48  ;;  %7137 = vmatprep.subr.bf16.mxu0 %v7849_v48 }
 0x162   :  { %7059 = vmatprep.mubr.bf16.mxu1 %v7335_v29  ;;  %7091 = vmatprep.mubr.bf16.mxu0 %v7336_v30  ;;  %v7381_v29 = vld [vmem:[%s8427_s3 + $0x210] sm:$0xff]  }
 0x163   :  { %v7412_v30 = vld [vmem:[#allocation4 + $0xf0] sm:$0xff]  }
 0x164   :  { %7106 = vmatpush3.bf16.msra.mxu1 %v7849_v48  ;;  %7138 = vmatpush3.bf16.msra.mxu0 %v7849_v48 }
 0x165   :  { %7107 = vmatprep.subr.bf16.mxu1 %v7857_v52  ;;  %7139 = vmatprep.subr.bf16.mxu0 %v7857_v52 }
 0x167   :  { %7060 = vmatmul.mubr.bf16.gmra.mxu1 %v7337_v31  ;;  %7092 = vmatmul.mubr.bf16.gmra.mxu0 %v7338_v32  ;;  %v7402_v31 = vld [vmem:[#allocation4] sm:$0xff]   ;;  %v7407_v32 = vld [vmem:[#allocation4 + $0x178] sm:$0xff]  }
 0x168   :  { %7108 = vmatpush3.bf16.msra.mxu1 %v7857_v52  ;;  %7140 = vmatpush3.bf16.msra.mxu0 %v7857_v52 }
 0x169   :  { %7109 = vmatprep.subr.bf16.mxu1 %v7863_v58  ;;  %7141 = vmatprep.subr.bf16.mxu0 %v7863_v58 }
 0x16a   :  { %7063 = vmatprep.mubr.bf16.mxu1 %v7339_v33  ;;  %7095 = vmatprep.mubr.bf16.mxu0 %v7340_v34  ;;  %v7413_v33 = vld [vmem:[#allocation4 + $0xb0] sm:$0xff]   ;;  %v7415_v34 = vld [vmem:[#allocation4 + $0xe8] sm:$0xff]  }
 0x16c   :  { %7110 = vmatpush3.bf16.msra.mxu1 %v7863_v58  ;;  %7142 = vmatpush3.bf16.msra.mxu0 %v7863_v58 }
 0x16d   :  { %7111 = vmatprep.subr.bf16.mxu1 %v7869_v62  ;;  %7143 = vmatprep.subr.bf16.mxu0 %v7869_v62 }
 0x16f   :  { %7064 = vmatmul.mubr.bf16.gmra.mxu1 %v7341_v35  ;;  %7096 = vmatmul.mubr.bf16.gmra.mxu0 %v7342_v36  ;;  %v7383_v35 = vld [vmem:[%s8427_s3 + $0x220] sm:$0xff]   ;;  %v7419_v36 = vld [vmem:[#allocation4 + $0xa8] sm:$0xff]  }
 0x170   :  { %7112 = vmatpush3.bf16.msra.mxu1 %v7869_v62  ;;  %7144 = vmatpush3.bf16.msra.mxu0 %v7869_v62 }
 0x171   :  { %7113 = vmatprep.subr.bf16.mxu1 %v7876_v4  ;;  %7145 = vmatprep.subr.bf16.mxu0 %v7876_v4 }
 0x172   :  { %7067 = vmatprep.mubr.bf16.mxu1 %v7343_v37  ;;  %7099 = vmatprep.mubr.bf16.mxu0 %v7344_v38  ;;  %v7421_v37 = vld [vmem:[#allocation4 + $0xe0] sm:$0xff]  }
 0x173   :  { %v7422_v38 = vld [vmem:[#allocation4 + $0xa0] sm:$0xff]  }
 0x174   :  { %7114 = vmatpush3.bf16.msra.mxu1 %v7876_v4  ;;  %7146 = vmatpush3.bf16.msra.mxu0 %v7876_v4 }
 0x175   :  { %7115 = vmatprep.subr.bf16.mxu1 %v7883_v7  ;;  %7147 = vmatprep.subr.bf16.mxu0 %v7883_v7 }
 0x177   :  { %7068 = vmatmul.mubr.bf16.gmra.mxu1 %v7345_v39  ;;  %7100 = vmatmul.mubr.bf16.gmra.mxu0 %v7346_v40  ;;  %v7424_v39 = vld [vmem:[#allocation4 + $0xd8] sm:$0xff]   ;;  %v7384_v40 = vld [vmem:[%s8427_s3 + $0x228] sm:$0xff]  }
 0x178   :  { %7116 = vmatpush3.bf16.msra.mxu1 %v7883_v7  ;;  %7148 = vmatpush3.bf16.msra.mxu0 %v7883_v7 }
 0x179   :  { %7117 = vmatprep.subr.bf16.mxu1 %v7889_v10  ;;  %7149 = vmatprep.subr.bf16.mxu0 %v7889_v10 }
 0x17a   :  { %7119 = vmatprep.mubr.bf16.mxu1 %v7347_v41  ;;  %7151 = vmatprep.mubr.bf16.mxu0 %v7348_v42  ;;  %v7385_v41 = vld [vmem:[%s8427_s3 + $0x230] sm:$0xff]   ;;  %v7428_v42 = vld [vmem:[#allocation4 + $0x98] sm:$0xff]  }
 0x17c   :  { %7118 = vmatpush3.bf16.msra.mxu1 %v7889_v10  ;;  %7150 = vmatpush3.bf16.msra.mxu0 %v7889_v10 }
 0x17d   :  { %7167 = vmatprep.subr.bf16.mxu1 %v7847_v44  ;;  %7199 = vmatprep.subr.bf16.mxu0 %v7847_v44 }
 0x17f   :  { %7120 = vmatmul.mubr.bf16.vlgmr.msra.gmra.mxu1 %v7349_v43  ;;  %7152 = vmatmul.mubr.bf16.vlgmr.msra.gmra.mxu0 %v7350_v45  ;;  %v7430_v43 = vld [vmem:[#allocation4 + $0xd0] sm:$0xff]  }
 0x180   :  { %7168 = vmatpush3.bf16.msra.mxu1 %v7847_v44  ;;  %7200 = vmatpush3.bf16.msra.mxu0 %v7847_v44  ;;  %v7431_v45 = vld [vmem:[#allocation4 + $0x90] sm:$0xff]  }
 0x181   :  { %7169 = vmatprep.subr.bf16.mxu1 %v7849_v48  ;;  %7201 = vmatprep.subr.bf16.mxu0 %v7849_v48 }
 0x182   :  { %7123 = vmatprep.mubr.bf16.mxu1 %v7351_v46  ;;  %7155 = vmatprep.mubr.bf16.mxu0 %v7352_v47  ;;  %v7432_v46 = vld [vmem:[#allocation4 + $0xc8] sm:$0xff]   ;;  %v7386_v47 = vld [vmem:[%s8427_s3 + $0x238] sm:$0xff]  }
 0x184   :  { %7170 = vmatpush3.bf16.msra.mxu1 %v7849_v48  ;;  %7202 = vmatpush3.bf16.msra.mxu0 %v7849_v48 }
 0x185   :  { %7171 = vmatprep.subr.bf16.mxu1 %v7857_v52  ;;  %7203 = vmatprep.subr.bf16.mxu0 %v7857_v52 }
 0x187   :  { %7124 = vmatmul.mubr.bf16.gmra.mxu1 %v7353_v49  ;;  %7156 = vmatmul.mubr.bf16.gmra.mxu0 %v7354_v50  ;;  %v7436_v49 = vld [vmem:[#allocation4 + $0x88] sm:$0xff]   ;;  %v7438_v50 = vld [vmem:[#allocation4 + $0xc0] sm:$0xff]  }
 0x188   :  { %7172 = vmatpush3.bf16.msra.mxu1 %v7857_v52  ;;  %7204 = vmatpush3.bf16.msra.mxu0 %v7857_v52 }
 0x189   :  { %7173 = vmatprep.subr.bf16.mxu1 %v7863_v58  ;;  %7205 = vmatprep.subr.bf16.mxu0 %v7863_v58 }
 0x18a   :  { %7127 = vmatprep.mubr.bf16.mxu1 %v7355_v51  ;;  %7159 = vmatprep.mubr.bf16.mxu0 %v7356_v53  ;;  %v7439_v51 = vld [vmem:[#allocation4 + $0x80] sm:$0xff]   ;;  %v7465_v53 = vld [vmem:[#allocation4 + $0x1f8] sm:$0xff]  }
 0x18c   :  { %7174 = vmatpush3.bf16.msra.mxu1 %v7863_v58  ;;  %7206 = vmatpush3.bf16.msra.mxu0 %v7863_v58 }
 0x18d   :  { %7175 = vmatprep.subr.bf16.mxu1 %v7869_v62  ;;  %7207 = vmatprep.subr.bf16.mxu0 %v7869_v62 }
 0x18f   :  { %7128 = vmatmul.mubr.bf16.gmra.mxu1 %v7357_v54  ;;  %7160 = vmatmul.mubr.bf16.gmra.mxu0 %v7358_v55 }
 0x190   :  { %7176 = vmatpush3.bf16.msra.mxu1 %v7869_v62  ;;  %7208 = vmatpush3.bf16.msra.mxu0 %v7869_v62 }
 0x191   :  { %7177 = vmatprep.subr.bf16.mxu1 %v7876_v4  ;;  %7209 = vmatprep.subr.bf16.mxu0 %v7876_v4 }
 0x192   :  { %7131 = vmatprep.mubr.bf16.mxu1 %v7359_v56  ;;  %7163 = vmatprep.mubr.bf16.mxu0 %v7360_v57 }
 0x194   :  { %7178 = vmatpush3.bf16.msra.mxu1 %v7876_v4  ;;  %7210 = vmatpush3.bf16.msra.mxu0 %v7876_v4 }
 0x195   :  { %7179 = vmatprep.subr.bf16.mxu1 %v7883_v7  ;;  %7211 = vmatprep.subr.bf16.mxu0 %v7883_v7 }
 0x197   :  { %7132 = vmatmul.mubr.bf16.gmra.mxu1 %v7361_v59  ;;  %7164 = vmatmul.mubr.bf16.gmra.mxu0 %v7362_v60 }
 0x198   :  { %7180 = vmatpush3.bf16.msra.mxu1 %v7883_v7  ;;  %7212 = vmatpush3.bf16.msra.mxu0 %v7883_v7 }
 0x199   :  { %7181 = vmatprep.subr.bf16.mxu1 %v7889_v10  ;;  %7213 = vmatprep.subr.bf16.mxu0 %v7889_v10 }
 0x19a   :  { %7183 = vmatprep.mubr.bf16.mxu1 %v7363_v61  ;;  %7215 = vmatprep.mubr.bf16.mxu0 %v7364_v63 }
 0x19c   :  { %7182 = vmatpush3.bf16.msra.mxu1 %v7889_v10  ;;  %7214 = vmatpush3.bf16.msra.mxu0 %v7889_v10 }
 0x19d   :  { %7231 = vmatprep.subr.bf16.mxu1 %v7847_v44  ;;  %6495 = vmatprep.subr.bf16.mxu0 %v7387_v0 }
 0x19f   :  { %7184 = vmatmul.mubr.bf16.vlgmr.msra.gmra.mxu1 %v7365_v1  ;;  %7216 = vmatmul.mubr.bf16.vlgmr.msra.gmra.mxu0 %v7366_v2 }
 0x1a0   :  { %7232 = vmatpush3.bf16.msra.mxu1 %v7847_v44  ;;  %7187 = vmatprep.mubr.bf16.mxu1 %v7367_v3  ;;  %v7371_v44 = vld [vmem:[%s8427_s3 + $0x1a0] sm:$0xff]  }
 0x1a1   :  { %7233 = vmatprep.subr.bf16.mxu1 %v7849_v48  ;;  %7219 = vmatprep.mubr.bf16.mxu0 %v7368_v5 }
 0x1a2   :  { %6496 = vmatpush3.bf16.msra.mxu0 %v7388_v6 }
 0x1a3   :  { %6497 = vmatprep.subr.bf16.mxu0 %v7389_v8 }
 0x1a4   :  { %7234 = vmatpush3.bf16.msra.mxu1 %v7849_v48  ;;  %v7373_v48 = vld [vmem:[%s8427_s3 + $0x1a8] sm:$0xff]  }
 0x1a5   :  { %7235 = vmatprep.subr.bf16.mxu1 %v7857_v52 }
 0x1a6   :  { %6498 = vmatpush3.bf16.msra.mxu0 %v7390_v9 }
 0x1a7   :  { %7188 = vmatmul.mubr.bf16.gmra.mxu1 %v7369_v11  ;;  %7220 = vmatmul.mubr.bf16.gmra.mxu0 %v7370_v12 }
 0x1a8   :  { %7236 = vmatpush3.bf16.msra.mxu1 %v7857_v52  ;;  %7191 = vmatprep.mubr.bf16.mxu1 %v7371_v44  ;;  %v7375_v52 = vld [vmem:[%s8427_s3 + $0x1b0] sm:$0xff]  }
 0x1a9   :  { %7237 = vmatprep.subr.bf16.mxu1 %v7863_v58  ;;  %7223 = vmatprep.mubr.bf16.mxu0 %v7372_v13 }
 0x1aa   :  { %6499 = vmatprep.subr.bf16.mxu0 %v7391_v14 }
 0x1ab   :  { %6500 = vmatpush3.bf16.msra.mxu0 %v7392_v15 }
 0x1ac   :  { %7238 = vmatpush3.bf16.msra.mxu1 %v7863_v58  ;;  %6501 = vmatprep.subr.bf16.mxu0 %v7393_v16  ;;  %v7396_v58 = vld [vmem:[#allocation4 + $0x18] sm:$0xff]  }
 0x1ad   :  { %7239 = vmatprep.subr.bf16.mxu1 %v7869_v62 }
 0x1af   :  { %7192 = vmatmul.mubr.bf16.gmra.mxu1 %v7373_v48  ;;  %7224 = vmatmul.mubr.bf16.gmra.mxu0 %v7374_v17 }
 0x1b0   :  { %7240 = vmatpush3.bf16.msra.mxu1 %v7869_v62  ;;  %7195 = vmatprep.mubr.bf16.mxu1 %v7375_v52  ;;  %v7379_v62 = vld [vmem:[%s8427_s3 + $0x200] sm:$0xff]  }
 0x1b1   :  { %7241 = vmatprep.subr.bf16.mxu1 %v7876_v4  ;;  %7227 = vmatprep.mubr.bf16.mxu0 %v7376_v18 }
 0x1b2   :  { %6502 = vmatpush3.bf16.msra.mxu0 %v7394_v19 }
 0x1b3   :  { %6503 = vmatprep.subr.bf16.mxu0 %v7395_v20 }
 0x1b4   :  { %7242 = vmatpush3.bf16.msra.mxu1 %v7876_v4  ;;  %v7400_v4 = vld [vmem:[#allocation4 + $0x8] sm:$0xff]  }
 0x1b5   :  { %7243 = vmatprep.subr.bf16.mxu1 %v7883_v7 }
 0x1b6   :  { %6504 = vmatpush3.bf16.msra.mxu0 %v7396_v58 }
 0x1b7   :  { %7196 = vmatmul.mubr.bf16.gmra.mxu1 %v7377_v21  ;;  %7228 = vmatmul.mubr.bf16.gmra.mxu0 %v7378_v22 }
 0x1b8   :  { %7244 = vmatpush3.bf16.msra.mxu1 %v7883_v7  ;;  %7247 = vmatprep.mubr.bf16.mxu1 %v7379_v62  ;;  %v7410_v7 = vld [vmem:[#allocation4 + $0xb8] sm:$0xff]  }
 0x1b9   :  { %7245 = vmatprep.subr.bf16.mxu1 %v7889_v10  ;;  %6505 = vmatprep.subr.bf16.mxu0 %v7397_v23  ;;  %v7411_v62 = vld [vmem:[#allocation4 + $0x138] sm:$0xff]  }
 0x1ba   :  { %6506 = vmatpush3.bf16.msra.mxu0 %v7398_v24 }
 0x1bb   :  { %6507 = vmatprep.subr.bf16.mxu0 %v7399_v25 }
 0x1bc   :  { %7246 = vmatpush3.bf16.msra.mxu1 %v7889_v10  ;;  %v7382_v10 = vld [vmem:[%s8427_s3 + $0x218] sm:$0xff]  }
 0x1bd   :  { %6559 = vmatprep.subr.bf16.mxu1 %v7406_v26 }
 0x1be   :  { %6508 = vmatpush3.bf16.msra.mxu0 %v7400_v4 }
 0x1bf   :  { %7248 = vmatmul.mubr.bf16.vlgmr.msra.gmra.mxu1 %v7380_v27  ;;  %6509 = vmatprep.subr.bf16.mxu0 %v7401_v28  ;;  %v7416_v28 = vld [vmem:[#allocation4 + $0x170] sm:$0xff]  }
 0x1c0   :  { %7251 = vmatprep.mubr.bf16.mxu1 %v7381_v29  ;;  %6560 = vmatpush3.bf16.msra.mxu1 %v7410_v7 }
 0x1c1   :  { %6561 = vmatprep.subr.bf16.mxu1 %v7412_v30 }
 0x1c2   :  { %6510 = vmatpush3.bf16.msra.mxu0 %v7402_v31 }
 0x1c3   :  { %6623 = vmatprep.subr.bf16.mxu0 %v7407_v32 }
 0x1c4   :  { %6562 = vmatpush3.bf16.msra.mxu1 %v7413_v33 }
 0x1c5   :  { %6563 = vmatprep.subr.bf16.mxu1 %v7415_v34 }
 0x1c7   :  { %7252 = vmatmul.mubr.bf16.gmra.mxu1 %v7382_v10  ;;  %v7420_v10 = vld [vmem:[#allocation4 + $0x130] sm:$0xff]  }
 0x1c8   :  { %7255 = vmatprep.mubr.bf16.mxu1 %v7383_v35  ;;  %6564 = vmatpush3.bf16.msra.mxu1 %v7419_v36 }
 0x1c9   :  { %6565 = vmatprep.subr.bf16.mxu1 %v7421_v37  ;;  %v7425_v37 = vld [vmem:[#allocation4 + $0x168] sm:$0xff]  }
 0x1cc   :  { %6566 = vmatpush3.bf16.msra.mxu1 %v7422_v38 }
 0x1cd   :  { %6567 = vmatprep.subr.bf16.mxu1 %v7424_v39 }
 0x1cf   :  { %7256 = vmatmul.mubr.bf16.gmra.mxu1 %v7384_v40 }
 0x1d0   :  { %7259 = vmatprep.mubr.bf16.mxu1 %v7385_v41  ;;  %6568 = vmatpush3.bf16.msra.mxu1 %v7428_v42 }
 0x1d1   :  { %6569 = vmatprep.subr.bf16.mxu1 %v7430_v43 }
 0x1d4   :  { %6570 = vmatpush3.bf16.msra.mxu1 %v7431_v45  ;;  %v7429_v45 = vld [vmem:[#allocation4 + $0x128] sm:$0xff]  }
 0x1d5   :  { %6571 = vmatprep.subr.bf16.mxu1 %v7432_v46 }
 0x1d7   :  { %7260 = vmatmul.mubr.bf16.gmra.mxu1 %v7386_v47 }
 0x1d8   :  { %6572 = vmatpush3.bf16.msra.mxu1 %v7436_v49 }
 0x1d9   :  { %6573 = vmatprep.subr.bf16.mxu1 %v7438_v50  ;;  %v7433_v50 = vld [vmem:[#allocation4 + $0x160] sm:$0xff]  }
 0x1dc   :  { %6574 = vmatpush3.bf16.msra.mxu1 %v7439_v51 }
 0x1dd   :  { %6687 = vmatprep.subr.bf16.mxu1 %v7465_v53 }
 0x1ff   :  { %v6993_v54 = vpop.f32.mrf.mxu1  ;;  %v7025_v55 = vpop.f32.mrf.mxu0 }
 0x200   :  { %v6130_v56 = vpack.c.bf16 %v6993_v54, %v6993_v54  ;;  %v6146_v57 = vpack.c.bf16 %v7025_v55, %v7025_v55 }
 0x201   :  { %v412_v59 = vpop.f32.mrf.mxu1  ;;  %v654_v60 = vpop.f32.mrf.mxu0 }
 0x202   :  { %541 = vst [vmem:[#allocation2 + $0x48] sm:$0xf] %v6130_v56  ;;  %783 = vst [vmem:[#allocation2 + $0x4c] sm:$0xf] %v6146_v57  ;;  %v6128_v61 = vpack.c.bf16 %v412_v59, %v412_v59  ;;  %v6144_v63 = vpack.c.bf16 %v654_v60, %v654_v60  ;;  %v7437_v60 = vld [vmem:[#allocation4 + $0x120] sm:$0xff]  }
 0x203   :  { %v6994_v0 = vpop.f32.mrf.mxu1  ;;  %v7026_v1 = vpop.f32.mrf.mxu0 }
 0x204   :  { %539 = vst [vmem:[#allocation2] sm:$0xf] %v6128_v61  ;;  %781 = vst [vmem:[#allocation2 + $0x4] sm:$0xf] %v6144_v63  ;;  %v6131_v2 = vpack.c.bf16 %v6994_v0, %v6994_v0  ;;  %v6147_v3 = vpack.c.bf16 %v7026_v1, %v7026_v1  ;;  %v7444_v0 = vld [vmem:[#allocation4 + $0x158] sm:$0xff]  }
 0x205   :  { %v415_v5 = vpop.f32.mrf.mxu1  ;;  %v657_v6 = vpop.f32.mrf.mxu0 }
 0x206   :  { %542 = vst [vmem:[#allocation2 + $0x6c] sm:$0xf] %v6131_v2  ;;  %784 = vst [vmem:[#allocation2 + $0x70] sm:$0xf] %v6147_v3  ;;  %v6129_v8 = vpack.c.bf16 %v415_v5, %v415_v5  ;;  %v6145_v9 = vpack.c.bf16 %v657_v6, %v657_v6 }
 0x207   :  { %v6997_v11 = vpop.f32.mrf.mxu1  ;;  %v7029_v12 = vpop.f32.mrf.mxu0 }
 0x208   :  { %540 = vst [vmem:[#allocation2 + $0x24] sm:$0xf] %v6129_v8  ;;  %782 = vst [vmem:[#allocation2 + $0x28] sm:$0xf] %v6145_v9  ;;  %v6134_v44 = vpack.c.bf16 %v6997_v11, %v6997_v11  ;;  %v6150_v13 = vpack.c.bf16 %v7029_v12, %v7029_v12  ;;  %v7449_v9 = vld [vmem:[#allocation4 + $0x118] sm:$0xff]  }
 0x209   :  { %v428_v14 = vpop.f32.mrf.mxu1  ;;  %v670_v15 = vpop.f32.mrf.mxu0 }
 0x20a   :  { %545 = vst [vmem:[#allocation2 + $0xd8] sm:$0xf] %v6134_v44  ;;  %787 = vst [vmem:[#allocation2 + $0xdc] sm:$0xf] %v6150_v13  ;;  %v6132_v16 = vpack.c.bf16 %v428_v14, %v428_v14  ;;  %v6148_v48 = vpack.c.bf16 %v670_v15, %v670_v15  ;;  %v7452_v13 = vld [vmem:[#allocation4 + $0x150] sm:$0xff]  }
 0x20b   :  { %v6998_v17 = vpop.f32.mrf.mxu1  ;;  %v7030_v52 = vpop.f32.mrf.mxu0 }
 0x20c   :  { %543 = vst [vmem:[#allocation2 + $0x90] sm:$0xf] %v6132_v16  ;;  %785 = vst [vmem:[#allocation2 + $0x94] sm:$0xf] %v6148_v48  ;;  %v6135_v18 = vpack.c.bf16 %v6998_v17, %v6998_v17  ;;  %v6151_v19 = vpack.c.bf16 %v7030_v52, %v7030_v52 }
 0x20d   :  { %v431_v20 = vpop.f32.mrf.mxu1  ;;  %v673_v58 = vpop.f32.mrf.mxu0  ;;  %v7408_v30 = vld [vmem:[#allocation2 + $0x4c] ss:$36 sps:$4 sm:$0xff]  }
 0x20e   :  { %546 = vst [vmem:[#allocation2 + $0xfc] sm:$0xf] %v6135_v18  ;;  %788 = vst [vmem:[#allocation2 + $0x100] sm:$0xf] %v6151_v19  ;;  %v6133_v21 = vpack.c.bf16 %v431_v20, %v431_v20  ;;  %v6149_v22 = vpack.c.bf16 %v673_v58, %v673_v58  ;;  %v7414_v49 = vld [vmem:[#allocation2 + $0x48] ss:$36 sps:$4 sm:$0xff]  }
 0x20f   :  { %v7001_v23 = vpop.f32.mrf.mxu1  ;;  %v7033_v24 = vpop.f32.mrf.mxu0  ;;  %v7403_v25 = vld [vmem:[#allocation2] ss:$36 sps:$4 sm:$0xff]   ;;  %v7457_v19 = vld [vmem:[#allocation4 + $0x110] sm:$0xff]  }
 0x210   :  { %v7405_v26 = vld [vmem:[#allocation2 + $0x4] ss:$36 sps:$4 sm:$0xff]   ;;  %544 = vst [vmem:[#allocation2 + $0xb4] sm:$0xf] %v6133_v21  ;;  %786 = vst [vmem:[#allocation2 + $0xb8] sm:$0xf] %v6149_v22  ;;  %v6138_v4 = vpack.c.bf16 %v7001_v23, %v7001_v23  ;;  %v6154_v27 = vpack.c.bf16 %v7033_v24, %v7033_v24 }
 0x211   :  { %v444_v29 = vpop.f32.mrf.mxu1  ;;  %v686_v7 = vpop.f32.mrf.mxu0  ;;  %3554 = vmatprep.mubr.bf16.mxu0 %v7405_v26  ;;  %v7459_v21 = vld [vmem:[#allocation4 + $0x148] sm:$0xff]   ;;  %v2521_v26 = vld [vmem:[#allocation2 + $0xd8] sm:$0xff] }
 0x212   :  { %549 = vst [vmem:[#allocation2 + $0x168] sm:$0xf] %v6138_v4  ;;  %791 = vst [vmem:[#allocation2 + $0x16c] sm:$0xf] %v6154_v27  ;;  %v6136_v31 = vpack.c.bf16 %v444_v29, %v444_v29  ;;  %v6152_v32 = vpack.c.bf16 %v686_v7, %v686_v7  ;;  %3555 = vmatmul.mubr.bf16.vlgmr.msra.gmra.mxu0 %v7403_v25 }
 0x213   :  { %v7002_v33 = vpop.f32.mrf.mxu1  ;;  %v7034_v34 = vpop.f32.mrf.mxu0  ;;  %3562 = vmatprep.mubr.bf16.mxu0 %v7408_v30  ;;  %6624 = vmatpush3.bf16.msra.mxu0 %v7411_v62 }
 0x214   :  { %547 = vst [vmem:[#allocation2 + $0x120] sm:$0xf] %v6136_v31  ;;  %789 = vst [vmem:[#allocation2 + $0x124] sm:$0xf] %v6152_v32  ;;  %v6139_v35 = vpack.c.bf16 %v7002_v33, %v7002_v33  ;;  %v6155_v36 = vpack.c.bf16 %v7034_v34, %v7034_v34  ;;  %6625 = vmatprep.subr.bf16.mxu0 %v7416_v28  ;;  %v7464_v28 = vld [vmem:[#allocation4 + $0x108] sm:$0xff]   ;;  %v7468_v31 = vld [vmem:[#allocation4 + $0x140] sm:$0xff]  }
 0x215   :  { %v447_v38 = vpop.f32.mrf.mxu1  ;;  %v689_v39 = vpop.f32.mrf.mxu0  ;;  %v7426_v16 = vld [vmem:[#allocation2 + $0xdc] ss:$36 sps:$4 sm:$0xff]  }
 0x216   :  { %550 = vst [vmem:[#allocation2 + $0x18c] sm:$0xf] %v6139_v35  ;;  %792 = vst [vmem:[#allocation2 + $0x190] sm:$0xf] %v6155_v36  ;;  %v6137_v40 = vpack.c.bf16 %v447_v38, %v447_v38  ;;  %v6153_v41 = vpack.c.bf16 %v689_v39, %v689_v39  ;;  %v2526_v22 = vld [vmem:[#allocation2 + $0xfc] sm:$0xff] }
 0x217   :  { %v7005_v42 = vpop.f32.mrf.mxu1  ;;  %v7037_v43 = vpop.f32.mrf.mxu0  ;;  %6626 = vmatpush3.bf16.msra.mxu0 %v7420_v10  ;;  %v7417_v54 = vld [vmem:[#allocation2 + $0x94] ss:$36 sps:$4 sm:$0xff]   ;;  %v5866_v30 = vcombine.low %v2521_v26, %v2526_v22  ;;  %v7471_v38 = vld [vmem:[#allocation4 + $0x100] sm:$0xff]  }
 0x218   :  { %548 = vst [vmem:[#allocation2 + $0x144] sm:$0xf] %v6137_v40  ;;  %790 = vst [vmem:[#allocation2 + $0x148] sm:$0xf] %v6153_v41  ;;  %v6142_v46 = vpack.c.bf16 %v7005_v42, %v7005_v42  ;;  %v6158_v47 = vpack.c.bf16 %v7037_v43, %v7037_v43  ;;  %6627 = vmatprep.subr.bf16.mxu0 %v7425_v37  ;;  %v7423_v44 = vld [vmem:[#allocation2 + $0x90] ss:$36 sps:$4 sm:$0xff]  }
 0x219   :  { %v460_v51 = vpop.f32.mrf.mxu1  ;;  %v702_v53 = vpop.f32.mrf.mxu0  ;;  %v8219_v41 = vld [vmem:[#allocation4 + $0x238] sm:$0xff]  }
 0x21a   :  { %553 = vst [vmem:[#allocation2 + $0x1f8] sm:$0xf] %v6142_v46  ;;  %795 = vst [vmem:[#allocation2 + $0x1fc] sm:$0xf] %v6158_v47  ;;  %v6140_v55 = vpack.c.bf16 %v460_v51, %v460_v51  ;;  %v6156_v56 = vpack.c.bf16 %v702_v53, %v702_v53  ;;  %3563 = vmatmul.mubr.bf16.gmra.mxu0 %v7414_v49 }
 0x21b   :  { %v7006_v57 = vpop.f32.mrf.mxu1  ;;  %v7038_v59 = vpop.f32.mrf.mxu0  ;;  %3570 = vmatprep.mubr.bf16.mxu0 %v7417_v54  ;;  %6628 = vmatpush3.bf16.msra.mxu0 %v7429_v45 }
 0x21c   :  { %551 = vst [vmem:[#allocation2 + $0x1b0] sm:$0xf] %v6140_v55  ;;  %793 = vst [vmem:[#allocation2 + $0x1b4] sm:$0xf] %v6156_v56  ;;  %v6143_v61 = vpack.c.bf16 %v7006_v57, %v7006_v57  ;;  %v6159_v63 = vpack.c.bf16 %v7038_v59, %v7038_v59  ;;  %6629 = vmatprep.subr.bf16.mxu0 %v7433_v50  ;;  %v7466_v56 = vld [vmem:[#allocation4 + $0x1b8] sm:$0xff]  }
 0x21d   :  { %v463_v1 = vpop.f32.mrf.mxu1  ;;  %v705_v2 = vpop.f32.mrf.mxu0 }
 0x21e   :  { %554 = vst [vmem:[#allocation2 + $0x21c] sm:$0xf] %v6143_v61  ;;  %796 = vst [vmem:[#allocation2 + $0x220] sm:$0xf] %v6159_v63  ;;  %v6141_v3 = vpack.c.bf16 %v463_v1, %v463_v1  ;;  %v6157_v5 = vpack.c.bf16 %v705_v2, %v705_v2  ;;  %v7472_v63 = vld [vmem:[#allocation4 + $0x1f0] sm:$0xff]  }
 0x21f   :  { %v7057_v6 = vpop.f32.mrf.mxu1  ;;  %v7089_v8 = vpop.f32.mrf.mxu0  ;;  %6630 = vmatpush3.bf16.msra.mxu0 %v7437_v60  ;;  %v7434_v34 = vld [vmem:[#allocation2 + $0x124] ss:$36 sps:$4 sm:$0xff]   ;;  %v7445_v60 = vld [vmem:[#allocation2 + $0x16c] ss:$36 sps:$4 sm:$0xff]  }
 0x220   :  { %552 = vst [vmem:[#allocation2 + $0x1d4] sm:$0xf] %v6141_v3  ;;  %794 = vst [vmem:[#allocation2 + $0x1d8] sm:$0xf] %v6157_v5  ;;  %v6162_v11 = vpack.c.bf16 %v7057_v6, %v7057_v6  ;;  %v6178_v12 = vpack.c.bf16 %v7089_v8, %v7089_v8  ;;  %6631 = vmatprep.subr.bf16.mxu0 %v7444_v0  ;;  %v7443_v55 = vld [vmem:[#allocation2 + $0x120] ss:$36 sps:$4 sm:$0xff]  }
 0x221   :  { %v896_v14 = vpop.f32.mrf.mxu1  ;;  %v1138_v15 = vpop.f32.mrf.mxu0  ;;  %v7476_v8 = vld [vmem:[#allocation4 + $0x1b0] sm:$0xff]  }
 0x222   :  { %1025 = vst [vmem:[#allocation2 + $0x50] sm:$0xf] %v6162_v11  ;;  %1267 = vst [vmem:[#allocation2 + $0x54] sm:$0xf] %v6178_v12  ;;  %v6160_v48 = vpack.c.bf16 %v896_v14, %v896_v14  ;;  %v6176_v17 = vpack.c.bf16 %v1138_v15, %v1138_v15  ;;  %3571 = vmatmul.mubr.bf16.gmra.mxu0 %v7423_v44  ;;  %v7484_v12 = vld [vmem:[#allocation4 + $0x1e8] sm:$0xff]  }
 0x223   :  { %v7058_v52 = vpop.f32.mrf.mxu1  ;;  %v7090_v18 = vpop.f32.mrf.mxu0  ;;  %3578 = vmatprep.mubr.bf16.mxu0 %v7426_v16  ;;  %6632 = vmatpush3.bf16.msra.mxu0 %v7449_v9  ;;  %v7485_v16 = vld [vmem:[#allocation4 + $0x1a8] sm:$0xff]  }
 0x224   :  { %1023 = vst [vmem:[#allocation2 + $0x8] sm:$0xf] %v6160_v48  ;;  %1265 = vst [vmem:[#allocation2 + $0xc] sm:$0xf] %v6176_v17  ;;  %v6163_v20 = vpack.c.bf16 %v7058_v52, %v7058_v52  ;;  %v6179_v58 = vpack.c.bf16 %v7090_v18, %v7090_v18  ;;  %6633 = vmatprep.subr.bf16.mxu0 %v7452_v13  ;;  %v7450_v52 = vld [vmem:[#allocation2 + $0x168] ss:$36 sps:$4 sm:$0xff]  }
 0x225   :  { %v899_v62 = vpop.f32.mrf.mxu1  ;;  %v1141_v23 = vpop.f32.mrf.mxu0 }
 0x226   :  { %1026 = vst [vmem:[#allocation2 + $0x74] sm:$0xf] %v6163_v20  ;;  %1268 = vst [vmem:[#allocation2 + $0x78] sm:$0xf] %v6179_v58  ;;  %v6161_v24 = vpack.c.bf16 %v899_v62, %v899_v62  ;;  %v6177_v25 = vpack.c.bf16 %v1141_v23, %v1141_v23 }
 0x227   :  { %v7061_v4 = vpop.f32.mrf.mxu1  ;;  %v7093_v27 = vpop.f32.mrf.mxu0  ;;  %6634 = vmatpush3.bf16.msra.mxu0 %v7457_v19  ;;  %v7493_v19 = vld [vmem:[#allocation4 + $0x1e0] sm:$0xff]  }
 0x228   :  { %1024 = vst [vmem:[#allocation2 + $0x2c] sm:$0xf] %v6161_v24  ;;  %1266 = vst [vmem:[#allocation2 + $0x30] sm:$0xf] %v6177_v25  ;;  %v6166_v29 = vpack.c.bf16 %v7061_v4, %v7061_v4  ;;  %v6182_v7 = vpack.c.bf16 %v7093_v27, %v7093_v27  ;;  %6635 = vmatprep.subr.bf16.mxu0 %v7459_v21  ;;  %v7453_v21 = vld [vmem:[#allocation2 + $0x1b4] ss:$36 sps:$4 sm:$0xff]  }
 0x229   :  { %v912_v32 = vpop.f32.mrf.mxu1  ;;  %v1154_v33 = vpop.f32.mrf.mxu0  ;;  %v7494_v27 = vld [vmem:[#allocation4 + $0x1a0] sm:$0xff]  }
 0x22a   :  { %1029 = vst [vmem:[#allocation2 + $0xe0] sm:$0xf] %v6166_v29  ;;  %1271 = vst [vmem:[#allocation2 + $0xe4] sm:$0xf] %v6182_v7  ;;  %v6164_v10 = vpack.c.bf16 %v912_v32, %v912_v32  ;;  %v6180_v35 = vpack.c.bf16 %v1154_v33, %v1154_v33  ;;  %3579 = vmatmul.mubr.bf16.gmra.mxu0 %v5866_v30  ;;  %v7495_v30 = vld [vmem:[#allocation4 + $0x1d8] sm:$0xff]   ;;  %v2551_v33 = vld [vmem:[#allocation2 + $0x1b0] sm:$0xff] }
 0x22b   :  { %v7062_v36 = vpop.f32.mrf.mxu1  ;;  %v7094_v37 = vpop.f32.mrf.mxu0  ;;  %3586 = vmatprep.mubr.bf16.mxu0 %v7434_v34  ;;  %6636 = vmatpush3.bf16.msra.mxu0 %v7464_v28  ;;  %v2556_v28 = vld [vmem:[#allocation2 + $0x1d4] sm:$0xff] }
 0x22c   :  { %1027 = vst [vmem:[#allocation2 + $0x98] sm:$0xf] %v6164_v10  ;;  %1269 = vst [vmem:[#allocation2 + $0x9c] sm:$0xf] %v6180_v35  ;;  %v6167_v39 = vpack.c.bf16 %v7062_v36, %v7062_v36  ;;  %v6183_v40 = vpack.c.bf16 %v7094_v37, %v7094_v37  ;;  %6637 = vmatprep.subr.bf16.mxu0 %v7468_v31  ;;  %v5893_v37 = vcombine.low %v2551_v33, %v2556_v28 }
 0x22d   :  { %v915_v42 = vpop.f32.mrf.mxu1  ;;  %v1157_v43 = vpop.f32.mrf.mxu0  ;;  %v7447_v61 = vld [vmem:[#allocation2 + $0x54] ss:$36 sps:$4 sm:$0xff]  }
 0x22e   :  { %1030 = vst [vmem:[#allocation2 + $0x104] sm:$0xf] %v6167_v39  ;;  %1272 = vst [vmem:[#allocation2 + $0x108] sm:$0xf] %v6183_v40  ;;  %v6165_v45 = vpack.c.bf16 %v915_v42, %v915_v42  ;;  %v6181_v46 = vpack.c.bf16 %v1157_v43, %v1157_v43  ;;  %v7451_v18 = vld [vmem:[#allocation2 + $0x50] ss:$36 sps:$4 sm:$0xff]  }
 0x22f   :  { %v7065_v47 = vpop.f32.mrf.mxu1  ;;  %v7097_v49 = vpop.f32.mrf.mxu0  ;;  %v7440_v50 = vld [vmem:[#allocation2 + $0x8] ss:$36 sps:$4 sm:$0xff]   ;;  %6638 = vmatpush3.bf16.msra.mxu0 %v7471_v38  ;;  %v7502_v39 = vld [vmem:[#allocation4 + $0x198] sm:$0xff]   ;;  %v7503_v40 = vld [vmem:[#allocation4 + $0x1d0] sm:$0xff]  }
 0x230   :  { %v7442_v51 = vld [vmem:[#allocation2 + $0xc] ss:$36 sps:$4 sm:$0xff]   ;;  %1028 = vst [vmem:[#allocation2 + $0xbc] sm:$0xf] %v6165_v45  ;;  %1270 = vst [vmem:[#allocation2 + $0xc0] sm:$0xf] %v6181_v46  ;;  %v6170_v53 = vpack.c.bf16 %v7065_v47, %v7065_v47  ;;  %v6186_v54 = vpack.c.bf16 %v7097_v49, %v7097_v49  ;;  %7263 = vmatprep.subr.bf16.mxu0 %v8219_v41 }
 0x231   :  { %v928_v57 = vpop.f32.mrf.mxu1  ;;  %v1170_v59 = vpop.f32.mrf.mxu0  ;;  %3651 = vmatprep.mubr.bf16.mxu1 %v7442_v51  ;;  %v7460_v45 = vld [vmem:[#allocation2 + $0x1fc] ss:$36 sps:$4 sm:$0xff]  }
 0x232   :  { %1033 = vst [vmem:[#allocation2 + $0x170] sm:$0xf] %v6170_v53  ;;  %1275 = vst [vmem:[#allocation2 + $0x174] sm:$0xf] %v6186_v54  ;;  %v6168_v0 = vpack.c.bf16 %v928_v57, %v928_v57  ;;  %v6184_v1 = vpack.c.bf16 %v1170_v59, %v1170_v59  ;;  %3587 = vmatmul.mubr.bf16.gmra.mxu0 %v7443_v55  ;;  %3652 = vmatmul.mubr.bf16.vlgmr.msra.gmra.mxu1 %v7440_v50  ;;  %v7504_v55 = vld [vmem:[#allocation4 + $0x190] sm:$0xff]  }
 0x233   :  { %v7066_v2 = vpop.f32.mrf.mxu1  ;;  %v7098_v3 = vpop.f32.mrf.mxu0  ;;  %3594 = vmatprep.mubr.bf16.mxu0 %v7445_v60  ;;  %3659 = vmatprep.mubr.bf16.mxu1 %v7447_v61  ;;  %v7506_v60 = vld [vmem:[#allocation4 + $0x1c8] sm:$0xff]  }
 0x234   :  { %1031 = vst [vmem:[#allocation2 + $0x128] sm:$0xf] %v6168_v0  ;;  %1273 = vst [vmem:[#allocation2 + $0x12c] sm:$0xf] %v6184_v1  ;;  %v6171_v5 = vpack.c.bf16 %v7066_v2, %v7066_v2  ;;  %v6187_v6 = vpack.c.bf16 %v7098_v3, %v7098_v3  ;;  %6688 = vmatpush3.bf16.msra.mxu1 %v7466_v56  ;;  %v2522_v0 = vld [vmem:[#allocation2 + $0xe0] sm:$0xff] }
 0x235   :  { %v931_v9 = vpop.f32.mrf.mxu1  ;;  %v1173_v11 = vpop.f32.mrf.mxu0  ;;  %6689 = vmatprep.subr.bf16.mxu1 %v7472_v63  ;;  %v7462_v46 = vld [vmem:[#allocation2 + $0xe4] ss:$36 sps:$4 sm:$0xff]  }
 0x236   :  { %1034 = vst [vmem:[#allocation2 + $0x194] sm:$0xf] %v6171_v5  ;;  %1276 = vst [vmem:[#allocation2 + $0x198] sm:$0xf] %v6187_v6  ;;  %v6169_v44 = vpack.c.bf16 %v931_v9, %v931_v9  ;;  %v6185_v13 = vpack.c.bf16 %v1173_v11, %v1173_v11  ;;  %v2527_v56 = vld [vmem:[#allocation2 + $0x104] sm:$0xff] }
 0x237   :  { %v7069_v14 = vpop.f32.mrf.mxu1  ;;  %v7101_v15 = vpop.f32.mrf.mxu0  ;;  %v7455_v22 = vld [vmem:[#allocation2 + $0x9c] ss:$36 sps:$4 sm:$0xff]   ;;  %v7511_v9 = vld [vmem:[#allocation4 + $0x188] sm:$0xff]  }
 0x238   :  { %1032 = vst [vmem:[#allocation2 + $0x14c] sm:$0xf] %v6169_v44  ;;  %1274 = vst [vmem:[#allocation2 + $0x150] sm:$0xf] %v6185_v13  ;;  %v6174_v48 = vpack.c.bf16 %v7069_v14, %v7069_v14  ;;  %v6190_v17 = vpack.c.bf16 %v7101_v15, %v7101_v15  ;;  %6690 = vmatpush3.bf16.msra.mxu1 %v7476_v8  ;;  %v7458_v38 = vld [vmem:[#allocation2 + $0x98] ss:$36 sps:$4 sm:$0xff]   ;;  %v5868_v8 = vcombine.low %v2522_v0, %v2527_v56 }
 0x239   :  { %v944_v20 = vpop.f32.mrf.mxu1  ;;  %v1186_v58 = vpop.f32.mrf.mxu0  ;;  %6691 = vmatprep.subr.bf16.mxu1 %v7484_v12  ;;  %v7467_v6 = vld [vmem:[#allocation2 + $0x1f8] ss:$36 sps:$4 sm:$0xff]   ;;  %v7512_v13 = vld [vmem:[#allocation4 + $0x1c0] sm:$0xff]  }
 0x23a   :  { %1037 = vst [vmem:[#allocation2 + $0x200] sm:$0xf] %v6174_v48  ;;  %1279 = vst [vmem:[#allocation2 + $0x204] sm:$0xf] %v6190_v17  ;;  %v6172_v62 = vpack.c.bf16 %v944_v20, %v944_v20  ;;  %v6188_v23 = vpack.c.bf16 %v1186_v58, %v1186_v58  ;;  %3595 = vmatmul.mubr.bf16.gmra.mxu0 %v7450_v52  ;;  %3660 = vmatmul.mubr.bf16.gmra.mxu1 %v7451_v18  ;;  %v7513_v18 = vld [vmem:[#allocation4 + $0x180] sm:$0xff]  }
 0x23b   :  { %v7070_v24 = vpop.f32.mrf.mxu1  ;;  %v7102_v25 = vpop.f32.mrf.mxu0  ;;  %3602 = vmatprep.mubr.bf16.mxu0 %v7453_v21  ;;  %3667 = vmatprep.mubr.bf16.mxu1 %v7455_v22 }
 0x23c   :  { %1035 = vst [vmem:[#allocation2 + $0x1b8] sm:$0xf] %v6172_v62  ;;  %1277 = vst [vmem:[#allocation2 + $0x1bc] sm:$0xf] %v6188_v23  ;;  %v6175_v26 = vpack.c.bf16 %v7070_v24, %v7070_v24  ;;  %v6191_v4 = vpack.c.bf16 %v7102_v25, %v7102_v25  ;;  %6692 = vmatpush3.bf16.msra.mxu1 %v7485_v16 }
 0x23d   :  { %v947_v29 = vpop.f32.mrf.mxu1  ;;  %v1189_v7 = vpop.f32.mrf.mxu0  ;;  %6693 = vmatprep.subr.bf16.mxu1 %v7493_v19 }
 0x23e   :  { %1038 = vst [vmem:[#allocation2 + $0x224] sm:$0xf] %v6175_v26  ;;  %1280 = vst [vmem:[#allocation2 + $0x228] sm:$0xf] %v6191_v4  ;;  %v6173_v31 = vpack.c.bf16 %v947_v29, %v947_v29  ;;  %v6189_v32 = vpack.c.bf16 %v1189_v7, %v1189_v7  ;;  %v7479_v7 = vld [vmem:[#allocation2 + $0x174] ss:$36 sps:$4 sm:$0xff]  }
 0x23f   :  { %v7121_v34 = vpop.f32.mrf.mxu1  ;;  %v7153_v10 = vpop.f32.mrf.mxu0  ;;  %v7469_v44 = vld [vmem:[#allocation2 + $0x12c] ss:$36 sps:$4 sm:$0xff]  }
 0x240   :  { %1036 = vst [vmem:[#allocation2 + $0x1dc] sm:$0xf] %v6173_v31  ;;  %1278 = vst [vmem:[#allocation2 + $0x1e0] sm:$0xf] %v6189_v32  ;;  %v6194_v35 = vpack.c.bf16 %v7121_v34, %v7121_v34  ;;  %v6210_v36 = vpack.c.bf16 %v7153_v10, %v7153_v10  ;;  %6694 = vmatpush3.bf16.msra.mxu1 %v7494_v27  ;;  %v7477_v4 = vld [vmem:[#allocation2 + $0x128] ss:$36 sps:$4 sm:$0xff]  }
 0x241   :  { %v1380_v42 = vpop.f32.mrf.mxu1  ;;  %v1622_v43 = vpop.f32.mrf.mxu0  ;;  %6695 = vmatprep.subr.bf16.mxu1 %v7495_v30  ;;  %v7487_v27 = vld [vmem:[#allocation4 + $0x230] sm:$0xff]  }
 0x242   :  { %1509 = vst [vmem:[#allocation2 + $0x58] sm:$0xf] %v6194_v35  ;;  %1751 = vst [vmem:[#allocation2 + $0x5c] sm:$0xf] %v6210_v36  ;;  %v6192_v47 = vpack.c.bf16 %v1380_v42, %v1380_v42  ;;  %v6208_v49 = vpack.c.bf16 %v1622_v43, %v1622_v43  ;;  %3603 = vmatmul.mubr.bf16.gmra.mxu0 %v5893_v37  ;;  %3668 = vmatmul.mubr.bf16.gmra.mxu1 %v7458_v38  ;;  %v7496_v38 = vld [vmem:[#allocation4 + $0x228] sm:$0xff]  }
 0x243   :  { %v7122_v50 = vpop.f32.mrf.mxu1  ;;  %v7154_v51 = vpop.f32.mrf.mxu0  ;;  %3610 = vmatprep.mubr.bf16.mxu0 %v7460_v45  ;;  %3675 = vmatprep.mubr.bf16.mxu1 %v7462_v46 }
 0x244   :  { %1507 = vst [vmem:[#allocation2 + $0x10] sm:$0xf] %v6192_v47  ;;  %1749 = vst [vmem:[#allocation2 + $0x14] sm:$0xf] %v6208_v49  ;;  %v6195_v53 = vpack.c.bf16 %v7122_v50, %v7122_v50  ;;  %v6211_v54 = vpack.c.bf16 %v7154_v51, %v7154_v51  ;;  %6696 = vmatpush3.bf16.msra.mxu1 %v7502_v39  ;;  %v7486_v49 = vld [vmem:[#allocation2 + $0x170] ss:$36 sps:$4 sm:$0xff]  }
 0x245   :  { %v1383_v57 = vpop.f32.mrf.mxu1  ;;  %v1625_v59 = vpop.f32.mrf.mxu0  ;;  %6697 = vmatprep.subr.bf16.mxu1 %v7503_v40  ;;  %v7507_v50 = vld [vmem:[#allocation4 + $0x220] sm:$0xff]  }
 0x246   :  { %1510 = vst [vmem:[#allocation2 + $0x7c] sm:$0xf] %v6195_v53  ;;  %1752 = vst [vmem:[#allocation2 + $0x80] sm:$0xf] %v6211_v54  ;;  %v6193_v61 = vpack.c.bf16 %v1383_v57, %v1383_v57  ;;  %v6209_v63 = vpack.c.bf16 %v1625_v59, %v1625_v59 }
 0x247   :  { %v7125_v1 = vpop.f32.mrf.mxu1  ;;  %v7157_v2 = vpop.f32.mrf.mxu0  ;;  %v7488_v53 = vld [vmem:[#allocation2 + $0x1bc] ss:$36 sps:$4 sm:$0xff]  }
 0x248   :  { %1508 = vst [vmem:[#allocation2 + $0x34] sm:$0xf] %v6193_v61  ;;  %1750 = vst [vmem:[#allocation2 + $0x38] sm:$0xf] %v6209_v63  ;;  %v6198_v3 = vpack.c.bf16 %v7125_v1, %v7125_v1  ;;  %v6214_v5 = vpack.c.bf16 %v7157_v2, %v7157_v2  ;;  %6698 = vmatpush3.bf16.msra.mxu1 %v7504_v55  ;;  %v2557_v63 = vld [vmem:[#allocation2 + $0x1dc] sm:$0xff] }
 0x249   :  { %v1396_v11 = vpop.f32.mrf.mxu1  ;;  %v1638_v12 = vpop.f32.mrf.mxu0  ;;  %6699 = vmatprep.subr.bf16.mxu1 %v7506_v60  ;;  %v7517_v2 = vld [vmem:[#allocation4 + $0x218] sm:$0xff]  }
 0x24a   :  { %1513 = vst [vmem:[#allocation2 + $0xe8] sm:$0xf] %v6198_v3  ;;  %1755 = vst [vmem:[#allocation2 + $0xec] sm:$0xf] %v6214_v5  ;;  %v6196_v14 = vpack.c.bf16 %v1396_v11, %v1396_v11  ;;  %v6212_v15 = vpack.c.bf16 %v1638_v12, %v1638_v12  ;;  %3611 = vmatmul.mubr.bf16.gmra.mxu0 %v7467_v6  ;;  %3676 = vmatmul.mubr.bf16.gmra.mxu1 %v5868_v8  ;;  %v2552_v6 = vld [vmem:[#allocation2 + $0x1b8] sm:$0xff] }
 0x24b   :  { %v7126_v16 = vpop.f32.mrf.mxu1  ;;  %v7158_v48 = vpop.f32.mrf.mxu0  ;;  %3683 = vmatprep.mubr.bf16.mxu1 %v7469_v44 }
 0x24c   :  { %1511 = vst [vmem:[#allocation2 + $0xa0] sm:$0xf] %v6196_v14  ;;  %1753 = vst [vmem:[#allocation2 + $0xa4] sm:$0xf] %v6212_v15  ;;  %v6199_v17 = vpack.c.bf16 %v7126_v16, %v7126_v16  ;;  %v6215_v52 = vpack.c.bf16 %v7158_v48, %v7158_v48  ;;  %6700 = vmatpush3.bf16.msra.mxu1 %v7511_v9  ;;  %v7524_v14 = vld [vmem:[#allocation4 + $0x210] sm:$0xff]  }
 0x24d   :  { %v1399_v19 = vpop.f32.mrf.mxu1  ;;  %v1641_v20 = vpop.f32.mrf.mxu0  ;;  %6701 = vmatprep.subr.bf16.mxu1 %v7512_v13  ;;  %v7483_v30 = vld [vmem:[#allocation2 + $0x5c] ss:$36 sps:$4 sm:$0xff]   ;;  %v5895_v13 = vcombine.low %v2552_v6, %v2557_v63  ;;  %v7497_v48 = vld [vmem:[#allocation2 + $0x204] ss:$36 sps:$4 sm:$0xff]  }
 0x24e   :  { %1514 = vst [vmem:[#allocation2 + $0x10c] sm:$0xf] %v6199_v17  ;;  %1756 = vst [vmem:[#allocation2 + $0x110] sm:$0xf] %v6215_v52  ;;  %v6197_v58 = vpack.c.bf16 %v1399_v19, %v1399_v19  ;;  %v6213_v21 = vpack.c.bf16 %v1641_v20, %v1641_v20  ;;  %v7481_v45 = vld [vmem:[#allocation2 + $0x58] ss:$36 sps:$4 sm:$0xff]  }
 0x24f   :  { %v7129_v22 = vpop.f32.mrf.mxu1  ;;  %v7161_v62 = vpop.f32.mrf.mxu0  ;;  %v7473_v23 = vld [vmem:[#allocation2 + $0x10] ss:$36 sps:$4 sm:$0xff]  }
 0x250   :  { %v7475_v24 = vld [vmem:[#allocation2 + $0x14] ss:$36 sps:$4 sm:$0xff]   ;;  %1512 = vst [vmem:[#allocation2 + $0xc4] sm:$0xf] %v6197_v58  ;;  %1754 = vst [vmem:[#allocation2 + $0xc8] sm:$0xf] %v6213_v21  ;;  %v6202_v25 = vpack.c.bf16 %v7129_v22, %v7129_v22  ;;  %v6218_v26 = vpack.c.bf16 %v7161_v62, %v7161_v62  ;;  %6702 = vmatpush3.bf16.msra.mxu1 %v7513_v18 }
 0x251   :  { %v1412_v28 = vpop.f32.mrf.mxu1  ;;  %v1654_v29 = vpop.f32.mrf.mxu0  ;;  %3748 = vmatprep.mubr.bf16.mxu0 %v7475_v24 }
 0x252   :  { %1517 = vst [vmem:[#allocation2 + $0x178] sm:$0xf] %v6202_v25  ;;  %1759 = vst [vmem:[#allocation2 + $0x17c] sm:$0xf] %v6218_v26  ;;  %v6200_v31 = vpack.c.bf16 %v1412_v28, %v1412_v28  ;;  %v6216_v32 = vpack.c.bf16 %v1654_v29, %v1654_v29  ;;  %3684 = vmatmul.mubr.bf16.gmra.mxu1 %v7477_v4  ;;  %3749 = vmatmul.mubr.bf16.vlgmr.msra.gmra.mxu0 %v7473_v23  ;;  %v7531_v23 = vld [vmem:[#allocation4 + $0x208] sm:$0xff]  }
 0x253   :  { %v7130_v33 = vpop.f32.mrf.mxu1  ;;  %v7162_v34 = vpop.f32.mrf.mxu0  ;;  %3691 = vmatprep.mubr.bf16.mxu1 %v7479_v7  ;;  %3756 = vmatprep.mubr.bf16.mxu0 %v7483_v30  ;;  %v7505_v7 = vld [vmem:[#allocation2 + $0x200] ss:$36 sps:$4 sm:$0xff]  }
 0x254   :  { %1515 = vst [vmem:[#allocation2 + $0x130] sm:$0xf] %v6200_v31  ;;  %1757 = vst [vmem:[#allocation2 + $0x134] sm:$0xf] %v6216_v32  ;;  %v6203_v10 = vpack.c.bf16 %v7130_v33, %v7130_v33  ;;  %v6219_v35 = vpack.c.bf16 %v7162_v34, %v7162_v34  ;;  %7264 = vmatpush3.bf16.msra.mxu0 %v8219_v41  ;;  %v7538_v33 = vld [vmem:[#allocation4 + $0x200] sm:$0xff]  }
 0x255   :  { %v1415_v36 = vpop.f32.mrf.mxu1  ;;  %v1657_v37 = vpop.f32.mrf.mxu0  ;;  %7265 = vmatprep.subr.bf16.mxu0 %v7487_v27  ;;  %v7501_v17 = vld [vmem:[#allocation2 + $0xec] ss:$36 sps:$4 sm:$0xff]  }
 0x256   :  { %1518 = vst [vmem:[#allocation2 + $0x19c] sm:$0xf] %v6203_v10  ;;  %1760 = vst [vmem:[#allocation2 + $0x1a0] sm:$0xf] %v6219_v35  ;;  %v6201_v39 = vpack.c.bf16 %v1415_v36, %v1415_v36  ;;  %v6217_v40 = vpack.c.bf16 %v1657_v37, %v1657_v37 }
 0x257   :  { %v7133_v42 = vpop.f32.mrf.mxu1  ;;  %v7165_v43 = vpop.f32.mrf.mxu0  ;;  %v7492_v54 = vld [vmem:[#allocation2 + $0xa4] ss:$36 sps:$4 sm:$0xff]  }
 0x258   :  { %1516 = vst [vmem:[#allocation2 + $0x154] sm:$0xf] %v6201_v39  ;;  %1758 = vst [vmem:[#allocation2 + $0x158] sm:$0xf] %v6217_v40  ;;  %v6206_v46 = vpack.c.bf16 %v7133_v42, %v7133_v42  ;;  %v6222_v47 = vpack.c.bf16 %v7165_v43, %v7165_v43  ;;  %7266 = vmatpush3.bf16.msra.mxu0 %v7487_v27  ;;  %v7490_v11 = vld [vmem:[#allocation2 + $0xa0] ss:$36 sps:$4 sm:$0xff]  }
 0x259   :  { %v1428_v51 = vpop.f32.mrf.mxu1  ;;  %v1670_v41 = vpop.f32.mrf.mxu0  ;;  %7267 = vmatprep.subr.bf16.mxu0 %v7496_v38  ;;  %v7499_v27 = vld [vmem:[#allocation2 + $0xe8] ss:$36 sps:$4 sm:$0xff]  }
 0x25a   :  { %1521 = vst [vmem:[#allocation2 + $0x208] sm:$0xf] %v6206_v46  ;;  %1763 = vst [vmem:[#allocation2 + $0x20c] sm:$0xf] %v6222_v47  ;;  %v6204_v55 = vpack.c.bf16 %v1428_v51, %v1428_v51  ;;  %v6220_v56 = vpack.c.bf16 %v1670_v41, %v1670_v41  ;;  %3692 = vmatmul.mubr.bf16.gmra.mxu1 %v7486_v49  ;;  %3757 = vmatmul.mubr.bf16.gmra.mxu0 %v7481_v45 }
 0x25b   :  { %v7134_v57 = vpop.f32.mrf.mxu1  ;;  %v7166_v59 = vpop.f32.mrf.mxu0  ;;  %3699 = vmatprep.mubr.bf16.mxu1 %v7488_v53  ;;  %3764 = vmatprep.mubr.bf16.mxu0 %v7492_v54 }
 0x25c   :  { %1519 = vst [vmem:[#allocation2 + $0x1c0] sm:$0xf] %v6204_v55  ;;  %1761 = vst [vmem:[#allocation2 + $0x1c4] sm:$0xf] %v6220_v56  ;;  %v6207_v60 = vpack.c.bf16 %v7134_v57, %v7134_v57  ;;  %v6223_v61 = vpack.c.bf16 %v7166_v59, %v7166_v59  ;;  %7268 = vmatpush3.bf16.msra.mxu0 %v7496_v38 }
 0x25d   :  { %v1431_v0 = vpop.f32.mrf.mxu1  ;;  %v1673_v1 = vpop.f32.mrf.mxu0  ;;  %7269 = vmatprep.subr.bf16.mxu0 %v7507_v50  ;;  %v7520_v55 = vld [vmem:[#allocation2 + $0x17c] ss:$36 sps:$4 sm:$0xff]  }
 0x25e   :  { %1522 = vst [vmem:[#allocation2 + $0x22c] sm:$0xf] %v6207_v60  ;;  %1764 = vst [vmem:[#allocation2 + $0x230] sm:$0xf] %v6223_v61  ;;  %v6205_v3 = vpack.c.bf16 %v1431_v0, %v1431_v0  ;;  %v6221_v5 = vpack.c.bf16 %v1673_v1, %v1673_v1 }
 0x25f   :  { %v7185_v8 = vpop.f32.mrf.mxu1  ;;  %v7217_v9 = vpop.f32.mrf.mxu0  ;;  %v7510_v32 = vld [vmem:[#allocation2 + $0x134] ss:$36 sps:$4 sm:$0xff]  }
 0x260   :  { %1520 = vst [vmem:[#allocation2 + $0x1e4] sm:$0xf] %v6205_v3  ;;  %1762 = vst [vmem:[#allocation2 + $0x1e8] sm:$0xf] %v6221_v5  ;;  %v6226_v12 = vpack.c.bf16 %v7185_v8, %v7185_v8  ;;  %v6242_v44 = vpack.c.bf16 %v7217_v9, %v7217_v9  ;;  %7270 = vmatpush3.bf16.msra.mxu0 %v7507_v50  ;;  %v7508_v50 = vld [vmem:[#allocation2 + $0x130] ss:$36 sps:$4 sm:$0xff]  }
 0x261   :  { %v1864_v15 = vpop.f32.mrf.mxu1  ;;  %v2106_v16 = vpop.f32.mrf.mxu0  ;;  %7271 = vmatprep.subr.bf16.mxu0 %v7517_v2  ;;  %v7518_v9 = vld [vmem:[#allocation2 + $0x178] ss:$36 sps:$4 sm:$0xff]  }
 0x262   :  { %1993 = vst [vmem:[#allocation2 + $0x60] sm:$0xf] %v6226_v12  ;;  %2235 = vst [vmem:[#allocation2 + $0x64] sm:$0xf] %v6242_v44  ;;  %v6224_v52 = vpack.c.bf16 %v1864_v15, %v1864_v15  ;;  %v6240_v18 = vpack.c.bf16 %v2106_v16, %v2106_v16  ;;  %3700 = vmatmul.mubr.bf16.gmra.mxu1 %v5895_v13  ;;  %3765 = vmatmul.mubr.bf16.gmra.mxu0 %v7490_v11 }
 0x263   :  { %v7186_v19 = vpop.f32.mrf.mxu1  ;;  %v7218_v20 = vpop.f32.mrf.mxu0  ;;  %3707 = vmatprep.mubr.bf16.mxu1 %v7497_v48  ;;  %3772 = vmatprep.mubr.bf16.mxu0 %v7501_v17 }
 0x264   :  { %1991 = vst [vmem:[#allocation2 + $0x18] sm:$0xf] %v6224_v52  ;;  %2233 = vst [vmem:[#allocation2 + $0x1c] sm:$0xf] %v6240_v18  ;;  %v6227_v58 = vpack.c.bf16 %v7186_v19, %v7186_v19  ;;  %v6243_v21 = vpack.c.bf16 %v7218_v20, %v7218_v20  ;;  %7272 = vmatpush3.bf16.msra.mxu0 %v7517_v2 }
 0x265   :  { %v1867_v22 = vpop.f32.mrf.mxu1  ;;  %v2109_v62 = vpop.f32.mrf.mxu0  ;;  %7273 = vmatprep.subr.bf16.mxu0 %v7524_v14 }
 0x266   :  { %1994 = vst [vmem:[#allocation2 + $0x84] sm:$0xf] %v6227_v58  ;;  %2236 = vst [vmem:[#allocation2 + $0x88] sm:$0xf] %v6243_v21  ;;  %v6225_v24 = vpack.c.bf16 %v1867_v22, %v1867_v22  ;;  %v6241_v25 = vpack.c.bf16 %v2109_v62, %v2109_v62 }
 0x267   :  { %v7189_v26 = vpop.f32.mrf.mxu1  ;;  %v7221_v4 = vpop.f32.mrf.mxu0  ;;  %v7527_v15 = vld [vmem:[#allocation2 + $0x1c4] ss:$36 sps:$4 sm:$0xff]  }
 0x268   :  { %1992 = vst [vmem:[#allocation2 + $0x3c] sm:$0xf] %v6225_v24  ;;  %2234 = vst [vmem:[#allocation2 + $0x40] sm:$0xf] %v6241_v25  ;;  %v6230_v28 = vpack.c.bf16 %v7189_v26, %v7189_v26  ;;  %v6246_v29 = vpack.c.bf16 %v7221_v4, %v7221_v4  ;;  %7274 = vmatpush3.bf16.msra.mxu0 %v7524_v14  ;;  %v7525_v24 = vld [vmem:[#allocation2 + $0x1c0] ss:$36 sps:$4 sm:$0xff]  }
 0x269   :  { %v1880_v30 = vpop.f32.mrf.mxu1  ;;  %v2122_v31 = vpop.f32.mrf.mxu0  ;;  %7275 = vmatprep.subr.bf16.mxu0 %v7531_v23 }
 0x26a   :  { %1997 = vst [vmem:[#allocation2 + $0xf0] sm:$0xf] %v6230_v28  ;;  %2239 = vst [vmem:[#allocation2 + $0xf4] sm:$0xf] %v6246_v29  ;;  %v6228_v34 = vpack.c.bf16 %v1880_v30, %v1880_v30  ;;  %v6244_v10 = vpack.c.bf16 %v2122_v31, %v2122_v31  ;;  %3708 = vmatmul.mubr.bf16.gmra.mxu1 %v7505_v7  ;;  %3773 = vmatmul.mubr.bf16.gmra.mxu0 %v7499_v27  ;;  %v7534_v27 = vld [vmem:[#allocation2 + $0x20c] ss:$36 sps:$4 sm:$0xff]  }
 0x26b   :  { %v7190_v35 = vpop.f32.mrf.mxu1  ;;  %v7222_v36 = vpop.f32.mrf.mxu0  ;;  %3780 = vmatprep.mubr.bf16.mxu0 %v7510_v32 }
 0x26c   :  { %1995 = vst [vmem:[#allocation2 + $0xa8] sm:$0xf] %v6228_v34  ;;  %2237 = vst [vmem:[#allocation2 + $0xac] sm:$0xf] %v6244_v10  ;;  %v6231_v37 = vpack.c.bf16 %v7190_v35, %v7190_v35  ;;  %v6247_v38 = vpack.c.bf16 %v7222_v36, %v7222_v36  ;;  %7276 = vmatpush3.bf16.msra.mxu0 %v7531_v23  ;;  %v7532_v34 = vld [vmem:[#allocation2 + $0x208] ss:$36 sps:$4 sm:$0xff]  }
 0x26d   :  { %v1883_v39 = vpop.f32.mrf.mxu1  ;;  %v2125_v40 = vpop.f32.mrf.mxu0  ;;  %7277 = vmatprep.subr.bf16.mxu0 %v7538_v33  ;;  %v7523_v56 = vld [vmem:[#allocation2 + $0x64] ss:$36 sps:$4 sm:$0xff]  }
 0x26e   :  { %1998 = vst [vmem:[#allocation2 + $0x114] sm:$0xf] %v6231_v37  ;;  %2240 = vst [vmem:[#allocation2 + $0x118] sm:$0xf] %v6247_v38  ;;  %v6229_v42 = vpack.c.bf16 %v1883_v39, %v1883_v39  ;;  %v6245_v43 = vpack.c.bf16 %v2125_v40, %v2125_v40  ;;  %v7521_v11 = vld [vmem:[#allocation2 + $0x60] ss:$36 sps:$4 sm:$0xff]  }
 0x26f   :  { %v7193_v45 = vpop.f32.mrf.mxu1  ;;  %v7225_v46 = vpop.f32.mrf.mxu0  ;;  %v7514_v47 = vld [vmem:[#allocation2 + $0x18] ss:$36 sps:$4 sm:$0xff]  }
 0x270   :  { %v7516_v49 = vld [vmem:[#allocation2 + $0x1c] ss:$36 sps:$4 sm:$0xff]   ;;  %1996 = vst [vmem:[#allocation2 + $0xcc] sm:$0xf] %v6229_v42  ;;  %2238 = vst [vmem:[#allocation2 + $0xd0] sm:$0xf] %v6245_v43  ;;  %v6234_v51 = vpack.c.bf16 %v7193_v45, %v7193_v45  ;;  %v6250_v41 = vpack.c.bf16 %v7225_v46, %v7225_v46  ;;  %7278 = vmatpush3.bf16.msra.mxu0 %v7538_v33 }
 0x271   :  { %v1896_v53 = vpop.f32.mrf.mxu1  ;;  %v2138_v54 = vpop.f32.mrf.mxu0  ;;  %3845 = vmatprep.mubr.bf16.mxu1 %v7516_v49 }
 0x272   :  { %2001 = vst [vmem:[#allocation2 + $0x180] sm:$0xf] %v6234_v51  ;;  %2243 = vst [vmem:[#allocation2 + $0x184] sm:$0xf] %v6250_v41  ;;  %v6232_v57 = vpack.c.bf16 %v1896_v53, %v1896_v53  ;;  %v6248_v59 = vpack.c.bf16 %v2138_v54, %v2138_v54  ;;  %3781 = vmatmul.mubr.bf16.gmra.mxu0 %v7508_v50  ;;  %3846 = vmatmul.mubr.bf16.vlgmr.msra.gmra.mxu1 %v7514_v47 }
 0x273   :  { %v7194_v60 = vpop.f32.mrf.mxu1  ;;  %v7226_v61 = vpop.f32.mrf.mxu0  ;;  %3788 = vmatprep.mubr.bf16.mxu0 %v7520_v55  ;;  %3853 = vmatprep.mubr.bf16.mxu1 %v7523_v56 }
 0x274   :  { %1999 = vst [vmem:[#allocation2 + $0x138] sm:$0xf] %v6232_v57  ;;  %2241 = vst [vmem:[#allocation2 + $0x13c] sm:$0xf] %v6248_v59  ;;  %v6235_v63 = vpack.c.bf16 %v7194_v60, %v7194_v60  ;;  %v6251_v0 = vpack.c.bf16 %v7226_v61, %v7226_v61 }
 0x275   :  { %v1899_v1 = vpop.f32.mrf.mxu1  ;;  %v2141_v2 = vpop.f32.mrf.mxu0  ;;  %v7537_v28 = vld [vmem:[#allocation2 + $0xf4] ss:$36 sps:$4 sm:$0xff]  }
 0x276   :  { %2002 = vst [vmem:[#allocation2 + $0x1a4] sm:$0xf] %v6235_v63  ;;  %2244 = vst [vmem:[#allocation2 + $0x1a8] sm:$0xf] %v6251_v0  ;;  %v6233_v3 = vpack.c.bf16 %v1899_v1, %v1899_v1  ;;  %v6249_v5 = vpack.c.bf16 %v2141_v2, %v2141_v2  ;;  %v7535_v10 = vld [vmem:[#allocation2 + $0xf0] ss:$36 sps:$4 sm:$0xff]  }
 0x277   :  { %v7197_v6 = vpop.f32.mrf.mxu1  ;;  %v7229_v8 = vpop.f32.mrf.mxu0  ;;  %v7530_v16 = vld [vmem:[#allocation2 + $0xac] ss:$36 sps:$4 sm:$0xff]  }
 0x278   :  { %2000 = vst [vmem:[#allocation2 + $0x15c] sm:$0xf] %v6233_v3  ;;  %2242 = vst [vmem:[#allocation2 + $0x160] sm:$0xf] %v6249_v5  ;;  %v6238_v12 = vpack.c.bf16 %v7197_v6, %v7197_v6  ;;  %v6254_v44 = vpack.c.bf16 %v7229_v8, %v7229_v8  ;;  %v7528_v25 = vld [vmem:[#allocation2 + $0xa8] ss:$36 sps:$4 sm:$0xff]  }
 0x279   :  { %v1912_v13 = vpop.f32.mrf.mxu1  ;;  %v2154_v14 = vpop.f32.mrf.mxu0 }
 0x27a   :  { %2005 = vst [vmem:[#allocation2 + $0x210] sm:$0xf] %v6238_v12  ;;  %2247 = vst [vmem:[#allocation2 + $0x214] sm:$0xf] %v6254_v44  ;;  %v6236_v48 = vpack.c.bf16 %v1912_v13, %v1912_v13  ;;  %v6252_v17 = vpack.c.bf16 %v2154_v14, %v2154_v14  ;;  %3789 = vmatmul.mubr.bf16.gmra.mxu0 %v7518_v9  ;;  %3854 = vmatmul.mubr.bf16.gmra.mxu1 %v7521_v11  ;;  %v7559_v14 = vld [vmem:[#allocation6 + $0x78] sm:$0xff]  }
 0x27b   :  { %v7198_v52 = vpop.f32.mrf.mxu1  ;;  %v7230_v18 = vpop.f32.mrf.mxu0  ;;  %3796 = vmatprep.mubr.bf16.mxu0 %v7527_v15  ;;  %3861 = vmatprep.mubr.bf16.mxu1 %v7530_v16  ;;  %v7560_v15 = vld [vmem:[#allocation6 + $0x38] sm:$0xff]  }
 0x27c   :  { %2003 = vst [vmem:[#allocation2 + $0x1c8] sm:$0xf] %v6236_v48  ;;  %2245 = vst [vmem:[#allocation2 + $0x1cc] sm:$0xf] %v6252_v17  ;;  %v6239_v19 = vpack.c.bf16 %v7198_v52, %v7198_v52  ;;  %v6255_v20 = vpack.c.bf16 %v7230_v18, %v7230_v18  ;;  %6767 = vmatprep.subr.bf16.mxu1 %v7559_v14  ;;  %v7561_v52 = vld [vmem:[#allocation6 + $0x70] sm:$0xff]  }
 0x27d   :  { %v1915_v58 = vpop.f32.mrf.mxu1  ;;  %v2157_v21 = vpop.f32.mrf.mxu0  ;;  %v7546_v41 = vld [vmem:[#allocation2 + $0x184] ss:$36 sps:$4 sm:$0xff]   ;;  %6768 = vmatpush3.bf16.msra.mxu1 %v7560_v15  ;;  %v7562_v18 = vld [vmem:[#allocation6 + $0x30] sm:$0xff]  }
 0x27e   :  { %2006 = vst [vmem:[#allocation2 + $0x234] sm:$0xf] %v6239_v19  ;;  %2248 = vst [vmem:[#allocation2 + $0x238] sm:$0xf] %v6255_v20  ;;  %v6237_v22 = vpack.c.bf16 %v1915_v58, %v1915_v58  ;;  %v6253_v62 = vpack.c.bf16 %v2157_v21, %v2157_v21  ;;  %v7544_v63 = vld [vmem:[#allocation2 + $0x180] ss:$36 sps:$4 sm:$0xff]   ;;  %6769 = vmatprep.subr.bf16.mxu1 %v7561_v52 }
 0x27f   :  { %v7249_v23 = vpop.f32.mrf.mxu1  ;;  %v7541_v37 = vld [vmem:[#allocation2 + $0x13c] ss:$36 sps:$4 sm:$0xff]   ;;  %v7563_v19 = vld [vmem:[#allocation6 + $0x68] sm:$0xff]  }
 0x280   :  { %2004 = vst [vmem:[#allocation2 + $0x1ec] sm:$0xf] %v6237_v22  ;;  %2246 = vst [vmem:[#allocation2 + $0x1f0] sm:$0xf] %v6253_v62  ;;  %v6258_v26 = vpack.c.bf16 %v7249_v23, %v7249_v23  ;;  %v7539_v47 = vld [vmem:[#allocation2 + $0x138] ss:$36 sps:$4 sm:$0xff]  }
 0x281   :  { %v2348_v4 = vpop.f32.mrf.mxu1  ;;  %6770 = vmatpush3.bf16.msra.mxu1 %v7562_v18  ;;  %v7564_v20 = vld [vmem:[#allocation6 + $0x28] sm:$0xff]   ;;  %v7565_v58 = vld [vmem:[#allocation6 + $0x60] sm:$0xff]   ;;  %v7567_v22 = vld [vmem:[#allocation6 + $0xf8] sm:$0xff]  }
 0x282   :  { %2477 = vst [vmem:[#allocation2 + $0x68] sm:$0xf] %v6258_v26  ;;  %v6256_v29 = vpack.c.bf16 %v2348_v4, %v2348_v4  ;;  %3797 = vmatmul.mubr.bf16.gmra.mxu0 %v7525_v24  ;;  %3862 = vmatmul.mubr.bf16.gmra.mxu1 %v7528_v25  ;;  %v7566_v21 = vld [vmem:[#allocation6 + $0x20] sm:$0xff]   ;;  %v7568_v62 = vld [vmem:[#allocation6 + $0xb8] sm:$0xff]   ;;  %v7571_v23 = vld [vmem:[#allocation6 + $0xf0] sm:$0xff]  }
 0x283   :  { %v7250_v7 = vpop.f32.mrf.mxu1  ;;  %3804 = vmatprep.mubr.bf16.mxu0 %v7534_v27  ;;  %3869 = vmatprep.mubr.bf16.mxu1 %v7537_v28  ;;  %v7572_v24 = vld [vmem:[#allocation6 + $0xb0] sm:$0xff]   ;;  %v7569_v25 = vld [vmem:[#allocation6 + $0x58] sm:$0xff]   ;;  %v7573_v4 = vld [vmem:[#allocation6 + $0xe8] sm:$0xff]  }
 0x284   :  { %2475 = vst [vmem:[#allocation2 + $0x20] sm:$0xf] %v6256_v29  ;;  %v6259_v30 = vpack.c.bf16 %v7250_v7, %v7250_v7  ;;  %6771 = vmatprep.subr.bf16.mxu1 %v7563_v19  ;;  %6789 = vmatprep.subr.bf16.mxu0 %v7567_v22  ;;  %v7570_v26 = vld [vmem:[#allocation6 + $0x18] sm:$0xff]   ;;  %v7574_v27 = vld [vmem:[#allocation6 + $0xa8] sm:$0xff]   ;;  %v7577_v28 = vld [vmem:[#allocation6 + $0xe0] sm:$0xff]  }
 0x285   :  { %v2351_v31 = vpop.f32.mrf.mxu1  ;;  %v7556_v13 = vld [vmem:[#allocation2 + $0x214] ss:$36 sps:$4 sm:$0xff]   ;;  %6772 = vmatpush3.bf16.msra.mxu1 %v7564_v20  ;;  %v7578_v29 = vld [vmem:[#allocation6 + $0xa0] sm:$0xff]  }
 0x286   :  { %2478 = vst [vmem:[#allocation2 + $0x8c] sm:$0xf] %v6259_v30  ;;  %v6257_v32 = vpack.c.bf16 %v2351_v31, %v2351_v31  ;;  %v7554_v17 = vld [vmem:[#allocation2 + $0x210] ss:$36 sps:$4 sm:$0xff]   ;;  %6773 = vmatprep.subr.bf16.mxu1 %v7565_v58  ;;  %v7579_v31 = vld [vmem:[#allocation6 + $0xd8] sm:$0xff]  }
 0x287   :  { %v7253_v33 = vpop.f32.mrf.mxu1  ;;  %v7551_v2 = vld [vmem:[#allocation2 + $0x1cc] ss:$36 sps:$4 sm:$0xff]  }
 0x288   :  { %2476 = vst [vmem:[#allocation2 + $0x44] sm:$0xf] %v6257_v32  ;;  %v6262_v35 = vpack.c.bf16 %v7253_v33, %v7253_v33  ;;  %v7549_v44 = vld [vmem:[#allocation2 + $0x1c8] ss:$36 sps:$4 sm:$0xff]   ;;  %v7575_v7 = vld [vmem:[#allocation6 + $0x50] sm:$0xff]   ;;  %v7580_v32 = vld [vmem:[#allocation6 + $0x98] sm:$0xff]  }
 0x289   :  { %v2364_v36 = vpop.f32.mrf.mxu1  ;;  %6774 = vmatpush3.bf16.msra.mxu1 %v7566_v21  ;;  %v7576_v30 = vld [vmem:[#allocation6 + $0x10] sm:$0xff]  }
 0x28a   :  { %2481 = vst [vmem:[#allocation2 + $0xf8] sm:$0xf] %v6262_v35  ;;  %v6260_v38 = vpack.c.bf16 %v2364_v36, %v2364_v36  ;;  %3805 = vmatmul.mubr.bf16.gmra.mxu0 %v7532_v34  ;;  %3870 = vmatmul.mubr.bf16.gmra.mxu1 %v7535_v10  ;;  %v7583_v33 = vld [vmem:[#allocation6 + $0xd0] sm:$0xff]   ;;  %v7581_v35 = vld [vmem:[#allocation6 + $0x48] sm:$0xff]  }
 0x28b   :  { %v7254_v39 = vpop.f32.mrf.mxu1  ;;  %3877 = vmatprep.mubr.bf16.mxu1 %v7541_v37  ;;  %6775 = vmatprep.subr.bf16.mxu1 %v7569_v25  ;;  %v7584_v34 = vld [vmem:[#allocation6 + $0x90] sm:$0xff]   ;;  %v7582_v36 = vld [vmem:[#allocation6 + $0x8] sm:$0xff]  }
 0x28c   :  { %2479 = vst [vmem:[#allocation2 + $0xb0] sm:$0xf] %v6260_v38  ;;  %v6263_v40 = vpack.c.bf16 %v7254_v39, %v7254_v39  ;;  %v7585_v37 = vld [vmem:[#allocation6 + $0xc8] sm:$0xff]  }
 0x28d   :  { %v2367_v42 = vpop.f32.mrf.mxu1  ;;  %v7543_v50 = vld [vmem:[#allocation2 + $0x68] ss:$36 sps:$4 sm:$0xff]   ;;  %6776 = vmatpush3.bf16.msra.mxu1 %v7570_v26 }
 0x28e   :  { %2482 = vst [vmem:[#allocation2 + $0x11c] sm:$0xf] %v6263_v40  ;;  %v6261_v43 = vpack.c.bf16 %v2367_v42, %v2367_v42  ;;  %6777 = vmatprep.subr.bf16.mxu1 %v7575_v7  ;;  %v7586_v39 = vld [vmem:[#allocation6 + $0x88] sm:$0xff]  }
 0x28f   :  { %v7257_v45 = vpop.f32.mrf.mxu1  ;;  %v7542_v46 = vld [vmem:[#allocation2 + $0x20] ss:$36 sps:$4 sm:$0xff]  }
 0x290   :  { %2480 = vst [vmem:[#allocation2 + $0xd4] sm:$0xf] %v6261_v43  ;;  %v6266_v49 = vpack.c.bf16 %v7257_v45, %v7257_v45  ;;  %7279 = vmatprep.mubr.bf16.mxu0 %v7542_v46  ;;  %v7589_v43 = vld [vmem:[#allocation6 + $0xc0] sm:$0xff]  }
 0x291   :  { %v2380_v51 = vpop.f32.mrf.mxu1  ;;  %6778 = vmatpush3.bf16.msra.mxu1 %v7576_v30  ;;  %v7590_v46 = vld [vmem:[#allocation6 + $0x80] sm:$0xff]  }
 0x292   :  { %2485 = vst [vmem:[#allocation2 + $0x188] sm:$0xf] %v6266_v49  ;;  %v6264_v53 = vpack.c.bf16 %v2380_v51, %v2380_v51  ;;  %3878 = vmatmul.mubr.bf16.gmra.mxu1 %v7539_v47  ;;  %7280 = vmatmul.mubr.bf16.vlgmr.msra.gmra.mxu0 %v7543_v50  ;;  %v7587_v49 = vld [vmem:[#allocation6 + $0x40] sm:$0xff]  }
 0x293   :  { %v7258_v54 = vpop.f32.mrf.mxu1  ;;  %3885 = vmatprep.mubr.bf16.mxu1 %v7546_v41  ;;  %6790 = vmatpush3.bf16.msra.mxu0 %v7568_v62  ;;  %v7588_v51 = vld [vmem:[#allocation6] sm:$0xff]   ;;  %v7591_v41 = vld [vmem:[#allocation6 + $0x1f8] sm:$0xff]  }
 0x294   :  { %2483 = vst [vmem:[#allocation2 + $0x140] sm:$0xf] %v6264_v53  ;;  %v6267_v55 = vpack.c.bf16 %v7258_v54, %v7258_v54  ;;  %6791 = vmatprep.subr.bf16.mxu0 %v7571_v23  ;;  %6779 = vmatprep.subr.bf16.mxu1 %v7581_v35 }
 0x295   :  { %v2383_v56 = vpop.f32.mrf.mxu1  ;;  %v7548_v59 = vld [vmem:[#allocation2 + $0xf8] ss:$36 sps:$4 sm:$0xff]   ;;  %6780 = vmatpush3.bf16.msra.mxu1 %v7582_v36 }
 0x296   :  { %2486 = vst [vmem:[#allocation2 + $0x1ac] sm:$0xf] %v6267_v55  ;;  %v6265_v57 = vpack.c.bf16 %v2383_v56, %v2383_v56  ;;  %6781 = vmatprep.subr.bf16.mxu1 %v7587_v49  ;;  %v7593_v56 = vld [vmem:[#allocation6 + $0x178] sm:$0xff]  }
 0x297   :  { %v7261_v60 = vpop.f32.mrf.mxu1  ;;  %v7547_v61 = vld [vmem:[#allocation2 + $0xb0] ss:$36 sps:$4 sm:$0xff]   ;;  %6792 = vmatpush3.bf16.msra.mxu0 %v7572_v24 }
 0x298   :  { %2484 = vst [vmem:[#allocation2 + $0x164] sm:$0xf] %v6265_v57  ;;  %v6270_v0 = vpack.c.bf16 %v7261_v60, %v7261_v60  ;;  %7283 = vmatprep.mubr.bf16.mxu0 %v7547_v61  ;;  %6793 = vmatprep.subr.bf16.mxu0 %v7573_v4 }
 0x299   :  { %v2396_v1 = vpop.f32.mrf.mxu1  ;;  %6782 = vmatpush3.bf16.msra.mxu1 %v7588_v51 }
 0x29a   :  { %2489 = vst [vmem:[#allocation2 + $0x218] sm:$0xf] %v6270_v0  ;;  %v6268_v3 = vpack.c.bf16 %v2396_v1, %v2396_v1  ;;  %3886 = vmatmul.mubr.bf16.gmra.mxu1 %v7544_v63  ;;  %7284 = vmatmul.mubr.bf16.gmra.mxu0 %v7548_v59 }
 0x29b   :  { %v7262_v5 = vpop.f32.mrf.mxu1  ;;  %3893 = vmatprep.mubr.bf16.mxu1 %v7551_v2  ;;  %6794 = vmatpush3.bf16.msra.mxu0 %v7574_v27 }
 0x29c   :  { %2487 = vst [vmem:[#allocation2 + $0x1d0] sm:$0xf] %v6268_v3  ;;  %v6271_v6 = vpack.c.bf16 %v7262_v5, %v7262_v5  ;;  %6795 = vmatprep.subr.bf16.mxu0 %v7577_v28  ;;  %6811 = vmatprep.subr.bf16.mxu1 %v7593_v56 }
 0x29d   :  { %v2399_v8 = vpop.f32.mrf.mxu1  ;;  %v7553_v11 = vld [vmem:[#allocation2 + $0x188] ss:$36 sps:$4 sm:$0xff]  }
 0x29e   :  { %2490 = vst [vmem:[#allocation2 + $0x23c] sm:$0xf] %v6271_v6  ;;  %v6269_v9 = vpack.c.bf16 %v2399_v8, %v2399_v8 }
 0x29f   :  { %v7552_v12 = vld [vmem:[#allocation2 + $0x140] ss:$36 sps:$4 sm:$0xff]   ;;  %6796 = vmatpush3.bf16.msra.mxu0 %v7578_v29 }
 0x2a0   :  { %2488 = vst [vmem:[#allocation2 + $0x1f4] sm:$0xf] %v6269_v9  ;;  %7287 = vmatprep.mubr.bf16.mxu0 %v7552_v12  ;;  %6797 = vmatprep.subr.bf16.mxu0 %v7579_v31  ;;  %v8228_v12 = vld [vmem:[%s8429_s5] ss:$0 sm:$0xff] }
 0x2a2   :  { %3894 = vmatmul.mubr.bf16.gmra.mxu1 %v7549_v44  ;;  %7288 = vmatmul.mubr.bf16.gmra.mxu0 %v7553_v11 }
 0x2a3   :  { %3901 = vmatprep.mubr.bf16.mxu1 %v7556_v13  ;;  %6798 = vmatpush3.bf16.msra.mxu0 %v7580_v32 }
 0x2a4   :  { %6799 = vmatprep.subr.bf16.mxu0 %v7583_v33 }
 0x2a5   :  { %v7558_v16 = vld [vmem:[#allocation2 + $0x218] ss:$36 sps:$4 sm:$0xff]  }
 0x2a7   :  { %v7557_v48 = vld [vmem:[#allocation2 + $0x1d0] ss:$36 sps:$4 sm:$0xff]   ;;  %6800 = vmatpush3.bf16.msra.mxu0 %v7584_v34 }
 0x2a8   :  { %7291 = vmatprep.mubr.bf16.mxu0 %v7557_v48  ;;  %6801 = vmatprep.subr.bf16.mxu0 %v7585_v37 }
 0x2aa   :  { %3902 = vmatmul.mubr.bf16.gmra.mxu1 %v7554_v17  ;;  %7292 = vmatmul.mubr.bf16.gmra.mxu0 %v7558_v16 }
 0x2ab   :  { %6802 = vmatpush3.bf16.msra.mxu0 %v7586_v39 }
 0x2ac   :  { %6803 = vmatprep.subr.bf16.mxu0 %v7589_v43 }
 0x2af   :  { %6804 = vmatpush3.bf16.msra.mxu0 %v7590_v46 }
 0x2b0   :  { %6833 = vmatprep.subr.bf16.mxu0 %v7591_v41 }
 0x2d2   :  { %v6511_v10 = vpop.f32.mrf.mxu0 }
 0x2d4   :  { %v6512_v38 = vpop.f32.mrf.mxu0 }
 0x2d5   :  { %v6513_v40 = vadd.f32 %v6512_v38, %v6511_v10 }
 0x2d6   :  { %v6514_v42 = vpop.f32.mrf.mxu0 }
 0x2d7   :  { %v3557_v16 = vadd.f32 %v6513_v40, %v8228_v12 }
 0x2d8   :  { %v6515_v45 = vpop.f32.mrf.mxu0 }
 0x2d9   :  { %v6516_v47 = vadd.f32 %v6515_v45, %v6514_v42 }
 0x2da   :  { %v6517_v50 = vpop.f32.mrf.mxu0 }
 0x2db   :  { %v3560_v22 = vadd.f32 %v6516_v47, %v8228_v12 }
 0x2dc   :  { %v6518_v53 = vpop.f32.mrf.mxu0 }
 0x2dd   :  { %v6519_v54 = vadd.f32 %v6518_v53, %v6517_v50 }
 0x2de   :  { %v6520_v55 = vpop.f32.mrf.mxu0 }
 0x2df   :  { %v3565_v28 = vadd.f32 %v6519_v54, %v8228_v12 }
 0x2e0   :  { %v6521_v57 = vpop.f32.mrf.mxu0 }
 0x2e1   :  { %v6522_v59 = vadd.f32 %v6521_v57, %v6520_v55 }
 0x2e2   :  { %v6523_v60 = vpop.f32.mrf.mxu0 }
 0x2e3   :  { %v3568_v35 = vadd.f32 %v6522_v59, %v8228_v12 }
 0x2e4   :  { %v6524_v61 = vpop.f32.mrf.mxu0 }
 0x2e5   :  { %v6525_v63 = vadd.f32 %v6524_v61, %v6523_v60 }
 0x2e6   :  { %v6526_v0 = vpop.f32.mrf.mxu0 }
 0x2e7   :  { %v3573_v45 = vadd.f32 %v6525_v63, %v8228_v12 }
 0x2e8   :  { %v6527_v1 = vpop.f32.mrf.mxu0 }
 0x2e9   :  { %v6528_v2 = vadd.f32 %v6527_v1, %v6526_v0 }
 0x2ea   :  { %v6529_v3 = vpop.f32.mrf.mxu0 }
 0x2eb   :  { %v3576_v55 = vadd.f32 %v6528_v2, %v8228_v12 }
 0x2ec   :  { %v6530_v5 = vpop.f32.mrf.mxu0 }
 0x2ed   :  { %v6531_v6 = vadd.f32 %v6530_v5, %v6529_v3 }
 0x2ee   :  { %v6532_v8 = vpop.f32.mrf.mxu0 }
 0x2ef   :  { %v3581_v3 = vadd.f32 %v6531_v6, %v8228_v12 }
 0x2f0   :  { %v6533_v9 = vpop.f32.mrf.mxu0 }
 0x2f1   :  { %v8223_v11 = vadd.f32 %v6533_v9, %v6532_v8 }
 0x2f2   :  { %v6535_v44 = vpop.f32.mrf.mxu0  ;;  %v6575_v13 = vpop.f32.mrf.mxu1 }
 0x2f4   :  { %v6536_v14 = vpop.f32.mrf.mxu0  ;;  %v6576_v15 = vpop.f32.mrf.mxu1 }
 0x2f5   :  { %v6537_v48 = vadd.f32 %v6536_v14, %v6535_v44  ;;  %v6577_v17 = vadd.f32 %v6576_v15, %v6575_v13 }
 0x2f6   :  { %v6538_v52 = vpop.f32.mrf.mxu0  ;;  %v6578_v18 = vpop.f32.mrf.mxu1 }
 0x2f7   :  { %v8232_v19 = vadd.f32 %v6537_v48, %v8228_v12  ;;  %v8234_v20 = vadd.f32 %v6577_v17, %v3557_v16 }
 0x2f8   :  { %v6539_v58 = vpop.f32.mrf.mxu0  ;;  %v6579_v21 = vpop.f32.mrf.mxu1 }
 0x2f9   :  { %v8237_v62 = vadd.f32 %v6539_v58, %v6538_v52  ;;  %v6580_v23 = vadd.f32 %v6579_v21, %v6578_v18 }
 0x2fa   :  { %v6541_v24 = vpop.f32.mrf.mxu0  ;;  %v6581_v25 = vpop.f32.mrf.mxu1 }
 0x2fb   :  { %v8239_v26 = vadd.f32 %v6580_v23, %v3560_v22 }
 0x2fc   :  { %v6542_v4 = vpop.f32.mrf.mxu0  ;;  %v6582_v27 = vpop.f32.mrf.mxu1 }
 0x2fd   :  { %v6543_v29 = vadd.f32 %v6542_v4, %v6541_v24  ;;  %v6583_v7 = vadd.f32 %v6582_v27, %v6581_v25 }
 0x2fe   :  { %v6544_v30 = vpop.f32.mrf.mxu0  ;;  %v6584_v31 = vpop.f32.mrf.mxu1 }
 0x2ff   :  { %v8243_v32 = vadd.f32 %v6543_v29, %v8228_v12  ;;  %v8245_v33 = vadd.f32 %v6583_v7, %v3565_v28  ;;  %v3592_v28 = vadd.f32 %v8237_v62, %v8228_v12 }
 0x300   :  { %v6545_v34 = vpop.f32.mrf.mxu0  ;;  %v6585_v10 = vpop.f32.mrf.mxu1 }
 0x301   :  { %v6546_v36 = vadd.f32 %v6545_v34, %v6544_v30  ;;  %v6586_v37 = vadd.f32 %v6585_v10, %v6584_v31 }
 0x302   :  { %v6547_v38 = vpop.f32.mrf.mxu0  ;;  %v6587_v39 = vpop.f32.mrf.mxu1 }
 0x303   :  { %v8248_v40 = vadd.f32 %v6586_v37, %v3568_v35  ;;  %v3600_v62 = vadd.f32 %v6546_v36, %v8228_v12 }
 0x304   :  { %v6548_v42 = vpop.f32.mrf.mxu0  ;;  %v6588_v43 = vpop.f32.mrf.mxu1 }
 0x305   :  { %v6549_v46 = vadd.f32 %v6548_v42, %v6547_v38  ;;  %v6589_v47 = vadd.f32 %v6588_v43, %v6587_v39 }
 0x306   :  { %v6550_v49 = vpop.f32.mrf.mxu0  ;;  %v6590_v50 = vpop.f32.mrf.mxu1 }
 0x307   :  { %v3605_v51 = vadd.f32 %v6549_v46, %v8228_v12  ;;  %v3670_v41 = vadd.f32 %v6589_v47, %v3573_v45 }
 0x308   :  { %v6551_v53 = vpop.f32.mrf.mxu0  ;;  %v6591_v54 = vpop.f32.mrf.mxu1 }
 0x309   :  { %v6552_v56 = vadd.f32 %v6551_v53, %v6550_v49  ;;  %v6592_v57 = vadd.f32 %v6591_v54, %v6590_v50 }
 0x30a   :  { %v6553_v59 = vpop.f32.mrf.mxu0  ;;  %v6593_v60 = vpop.f32.mrf.mxu1 }
 0x30b   :  { %v3608_v61 = vadd.f32 %v6552_v56, %v8228_v12  ;;  %v8254_v0 = vadd.f32 %v6592_v57, %v3576_v55 }
 0x30c   :  { %v6554_v63 = vpop.f32.mrf.mxu0  ;;  %v6594_v1 = vpop.f32.mrf.mxu1 }
 0x30d   :  { %v6555_v5 = vadd.f32 %v6554_v63, %v6553_v59  ;;  %v6595_v8 = vadd.f32 %v6594_v1, %v6593_v60 }
 0x30e   :  { %v6556_v9 = vpop.f32.mrf.mxu0  ;;  %v8257_v44 = vpop.f32.mrf.mxu1 }
 0x30f   :  { %v3613_v13 = vadd.f32 %v6555_v5, %v8228_v12  ;;  %v3678_v2 = vadd.f32 %v6595_v8, %v3581_v3 }
 0x310   :  { %v6557_v14 = vpop.f32.mrf.mxu0  ;;  %v8260_v15 = vpop.f32.mrf.mxu1 }
 0x311   :  { %v6558_v16 = vadd.f32 %v6557_v14, %v6556_v9 }
 0x312   :  { %v6599_v48 = vpop.f32.mrf.mxu1  ;;  %v6639_v17 = vpop.f32.mrf.mxu0 }
 0x313   :  { %v3616_v52 = vadd.f32 %v6558_v16, %v8228_v12 }
 0x314   :  { %v6600_v18 = vpop.f32.mrf.mxu1  ;;  %v6640_v58 = vpop.f32.mrf.mxu0 }
 0x315   :  { %v6601_v21 = vadd.f32 %v6600_v18, %v6599_v48  ;;  %v6641_v6 = vadd.f32 %v6640_v58, %v6639_v17 }
 0x316   :  { %v6602_v22 = vpop.f32.mrf.mxu1  ;;  %v8263_v23 = vpop.f32.mrf.mxu0 }
 0x317   :  { %v3686_v24 = vadd.f32 %v6601_v21, %v8232_v19  ;;  %v8267_v25 = vadd.f32 %v6641_v6, %v8234_v20 }
 0x318   :  { %v6603_v4 = vpop.f32.mrf.mxu1  ;;  %v8269_v27 = vpop.f32.mrf.mxu0 }
 0x319   :  { %v6604_v29 = vadd.f32 %v6603_v4, %v6602_v22 }
 0x31a   :  { %v6605_v7 = vpop.f32.mrf.mxu1  ;;  %v8273_v30 = vpop.f32.mrf.mxu0 }
 0x31b   :  { %v8275_v31 = vadd.f32 %v6604_v29, %v3592_v28 }
 0x31c   :  { %v6606_v34 = vpop.f32.mrf.mxu1  ;;  %v8277_v10 = vpop.f32.mrf.mxu0 }
 0x31d   :  { %v6607_v35 = vadd.f32 %v6606_v34, %v6605_v7 }
 0x31e   :  { %v6608_v19 = vpop.f32.mrf.mxu1  ;;  %v8279_v37 = vpop.f32.mrf.mxu0 }
 0x31f   :  { %v3694_v20 = vadd.f32 %v6607_v35, %v8243_v32 }
 0x320   :  { %v6609_v38 = vpop.f32.mrf.mxu1  ;;  %v8282_v39 = vpop.f32.mrf.mxu0 }
 0x321   :  { %v6610_v42 = vadd.f32 %v6609_v38, %v6608_v19 }
 0x322   :  { %v6611_v43 = vpop.f32.mrf.mxu1  ;;  %v6651_v45 = vpop.f32.mrf.mxu0 }
 0x323   :  { %v8285_v46 = vadd.f32 %v6610_v42, %v3600_v62 }
 0x324   :  { %v6612_v47 = vpop.f32.mrf.mxu1  ;;  %v6652_v49 = vpop.f32.mrf.mxu0 }
 0x325   :  { %v6613_v50 = vadd.f32 %v6612_v47, %v6611_v43  ;;  %v6653_v53 = vadd.f32 %v6652_v49, %v6651_v45 }
 0x326   :  { %v6614_v54 = vpop.f32.mrf.mxu1  ;;  %v8287_v55 = vpop.f32.mrf.mxu0 }
 0x327   :  { %v3702_v56 = vadd.f32 %v6613_v50, %v3605_v51  ;;  %v8289_v57 = vadd.f32 %v6653_v53, %v3670_v41 }
 0x328   :  { %v6615_v32 = vpop.f32.mrf.mxu1  ;;  %v8291_v59 = vpop.f32.mrf.mxu0 }
 0x329   :  { %v6616_v60 = vadd.f32 %v6615_v32, %v6614_v54 }
 0x32a   :  { %v6617_v36 = vpop.f32.mrf.mxu1  ;;  %v6657_v63 = vpop.f32.mrf.mxu0 }
 0x32b   :  { %v3705_v1 = vadd.f32 %v6616_v60, %v3608_v61 }
 0x32c   :  { %v6618_v3 = vpop.f32.mrf.mxu1  ;;  %v6658_v5 = vpop.f32.mrf.mxu0 }
 0x32d   :  { %v6619_v8 = vadd.f32 %v6618_v3, %v6617_v36  ;;  %v6659_v9 = vadd.f32 %v6658_v5, %v6657_v63 }
 0x32e   :  { %v6620_v14 = vpop.f32.mrf.mxu1  ;;  %v8293_v16 = vpop.f32.mrf.mxu0 }
 0x32f   :  { %v3710_v48 = vadd.f32 %v6619_v8, %v3613_v13  ;;  %v8295_v17 = vadd.f32 %v6659_v9, %v3678_v2 }
 0x330   :  { %v6621_v51 = vpop.f32.mrf.mxu1  ;;  %v8297_v41 = vpop.f32.mrf.mxu0 }
 0x331   :  { %v6622_v18 = vadd.f32 %v6621_v51, %v6620_v14  ;;  %v6647_v14 = vadd.f32 %v8277_v10, %v8273_v30  ;;  %v6644_v30 = vadd.f32 %v8269_v27, %v8263_v23 }
 0x332   :  { %v6663_v58 = vpop.f32.mrf.mxu0  ;;  %v6703_v21 = vpop.f32.mrf.mxu1 }
 0x333   :  { %v3713_v6 = vadd.f32 %v6622_v18, %v3616_v52  ;;  %v3754_v27 = vadd.f32 %v6644_v30, %v8239_v26  ;;  %v7595_v30 = vld [vmem:[#allocation6 + $0x1f0] sm:$0xff]  }
 0x334   :  { %v6664_v22 = vpop.f32.mrf.mxu0  ;;  %v6704_v4 = vpop.f32.mrf.mxu1 }
 0x335   :  { %v6665_v61 = vadd.f32 %v6664_v22, %v6663_v58 }
 0x336   :  { %v8299_v28 = vpop.f32.mrf.mxu0  ;;  %v6706_v29 = vpop.f32.mrf.mxu1 }
 0x337   :  { %v8301_v7 = vadd.f32 %v6665_v61, %v3686_v24 }
 0x338   :  { %v8303_v34 = vpop.f32.mrf.mxu0  ;;  %v6707_v13 = vpop.f32.mrf.mxu1 }
 0x33a   :  { %v6669_v2 = vpop.f32.mrf.mxu0  ;;  %v6709_v35 = vpop.f32.mrf.mxu1 }
 0x33c   :  { %v6670_v19 = vpop.f32.mrf.mxu0  ;;  %v6710_v38 = vpop.f32.mrf.mxu1 }
 0x33d   :  { %v6671_v62 = vadd.f32 %v6670_v19, %v6669_v2  ;;  %v6711_v22 = vadd.f32 %v6710_v38, %v6709_v35 }
 0x33e   :  { %v8305_v42 = vpop.f32.mrf.mxu0  ;;  %v6712_v43 = vpop.f32.mrf.mxu1 }
 0x33f   :  { %v8307_v52 = vadd.f32 %v6671_v62, %v3694_v20  ;;  %v3759_v62 = vadd.f32 %v6647_v14, %v8245_v33  ;;  %v6598_v33 = vadd.f32 %v8260_v15, %v8257_v44 }
 0x340   :  { %v8309_v45 = vpop.f32.mrf.mxu0  ;;  %v6713_v47 = vpop.f32.mrf.mxu1 }
 0x341   :  { %v6714_v10 = vadd.f32 %v6713_v47, %v6712_v43  ;;  %v3856_v35 = vadd.f32 %v6711_v22, %v3759_v62  ;;  %v3584_v43 = vadd.f32 %v8223_v11, %v8228_v12 }
 0x342   :  { %v6675_v49 = vpop.f32.mrf.mxu0  ;;  %v8311_v50 = vpop.f32.mrf.mxu1 }
 0x344   :  { %v6676_v24 = vpop.f32.mrf.mxu0  ;;  %v8313_v53 = vpop.f32.mrf.mxu1 }
 0x345   :  { %v6677_v54 = vadd.f32 %v6676_v24, %v6675_v49  ;;  %v6705_v49 = vadd.f32 %v6704_v4, %v6703_v21 }
 0x346   :  { %v6678_v32 = vpop.f32.mrf.mxu0  ;;  %v6718_v60 = vpop.f32.mrf.mxu1 }
 0x347   :  { %v8315_v36 = vadd.f32 %v6677_v54, %v3702_v56  ;;  %v6650_v56 = vadd.f32 %v8282_v39, %v8279_v37  ;;  %v3848_v21 = vadd.f32 %v6705_v49, %v8267_v25  ;;  %v6656_v25 = vadd.f32 %v8291_v59, %v8287_v55 }
 0x348   :  { %v6679_v63 = vpop.f32.mrf.mxu0  ;;  %v6719_v3 = vpop.f32.mrf.mxu1 }
 0x349   :  { %v6680_v5 = vadd.f32 %v6679_v63, %v6678_v32  ;;  %v3762_v63 = vadd.f32 %v6650_v56, %v8248_v40  ;;  %v6720_v56 = vadd.f32 %v6719_v3, %v6718_v60 }
 0x34a   :  { %v6681_v8 = vpop.f32.mrf.mxu0  ;;  %v8317_v20 = vpop.f32.mrf.mxu1 }
 0x34b   :  { %v8319_v9 = vadd.f32 %v6680_v5, %v3705_v1  ;;  %v6708_v5 = vadd.f32 %v6707_v13, %v6706_v29  ;;  %v3859_v4 = vadd.f32 %v6714_v10, %v3762_v63  ;;  %v6662_v29 = vadd.f32 %v8297_v41, %v8293_v16  ;;  %v7592_v41 = vld [vmem:[#allocation6 + $0x1b8] sm:$0xff]   ;;  %v7596_v63 = vld [vmem:[#allocation6 + $0x1b0] sm:$0xff]  }
 0x34c   :  { %v6682_v51 = vpop.f32.mrf.mxu0  ;;  %v8323_v18 = vpop.f32.mrf.mxu1  ;;  %v3681_v13 = vadd.f32 %v6598_v33, %v3584_v43  ;;  %v3770_v10 = vadd.f32 %v6656_v25, %v8254_v0  ;;  %v7599_v33 = vld [vmem:[#allocation6 + $0x1e8] sm:$0xff]   ;;  %v7607_v25 = vld [vmem:[#allocation6 + $0x1d8] sm:$0xff]  }
 0x34d   :  { %v6683_v58 = vadd.f32 %v6682_v51, %v6681_v8  ;;  %v3851_v15 = vadd.f32 %v6708_v5, %v3754_v27  ;;  %v7601_v27 = vld [vmem:[#allocation6 + $0x168] sm:$0xff]  }
 0x34e   :  { %v6684_v61 = vpop.f32.mrf.mxu0  ;;  %v6724_v2 = vpop.f32.mrf.mxu1  ;;  %v3867_v3 = vadd.f32 %v6720_v56, %v3770_v10  ;;  %v7611_v56 = vld [vmem:[#allocation6 + $0x1d0] sm:$0xff]   ;;  %v6668_v10 = vadd.f32 %v8303_v34, %v8299_v28  ;;  %v7617_v28 = vld [vmem:[#allocation6 + $0x148] sm:$0xff]  }
 0x34f   :  { %v8327_v19 = vadd.f32 %v6683_v58, %v3710_v48 }
 0x350   :  { %v6685_v1 = vpop.f32.mrf.mxu0  ;;  %v6725_v24 = vpop.f32.mrf.mxu1  ;;  %v3786_v34 = vadd.f32 %v6668_v10, %v8275_v31  ;;  %v7621_v31 = vld [vmem:[#allocation6 + $0x140] sm:$0xff]   ;;  %v7634_v10 = vld [vmem:[#allocation6 + $0x228] sm:$0xff]  }
 0x351   :  { %v6686_v54 = vadd.f32 %v6685_v1, %v6684_v61  ;;  %v6726_v26 = vadd.f32 %v6725_v24, %v6724_v2  ;;  %v3778_v61 = vadd.f32 %v6662_v29, %v3681_v13  ;;  %v7594_v2 = vld [vmem:[#allocation6 + $0x138] sm:$0xff]   ;;  %v7605_v13 = vld [vmem:[#allocation6 + $0x160] sm:$0xff]  }
 0x352   :  { %v8332_v32 = vpop.f32.mrf.mxu1  ;;  %v7281_v38 = vpop.f32.mrf.mxu0 }
 0x353   :  { %v8335_v37 = vadd.f32 %v6686_v54, %v3713_v6  ;;  %v3953_v39 = vadd.f32 %v7281_v38, %v3856_v35  ;;  %v3875_v59 = vadd.f32 %v6726_v26, %v3778_v61  ;;  %v7597_v38 = vld [vmem:[#allocation6 + $0x170] sm:$0xff]   ;;  %v7606_v26 = vld [vmem:[#allocation6 + $0x120] sm:$0xff]  }
 0x354   :  { %v8339_v48 = vpop.f32.mrf.mxu1  ;;  %v3944_v23 = vpop.f32.mrf.mxu0 }
 0x355   :  { %v3945_v47 = vadd.f32 %v3944_v23, %v3848_v21  ;;  %v4009_v8 = vmax.f32 %v3953_v39, 0.0  ;;  %v7598_v21 = vld [vmem:[#allocation6 + $0x130] sm:$0xff]  }
 0x356   :  { %v8345_v40 = vpop.f32.mrf.mxu1  ;;  %v7282_v6 = vpop.f32.mrf.mxu0 }
 0x357   :  { %v3956_v44 = vadd.f32 %v7282_v6, %v3859_v4  ;;  %v4007_v22 = vmax.f32 %v3945_v47, 0.0  ;;  %v6321_v49 = vpack.c.bf16 %v4009_v8, %v4009_v8  ;;  %v7600_v47 = vld [vmem:[#allocation6 + $0x1a8] sm:$0xff]   ;;  %v7603_v6 = vld [vmem:[#allocation6 + $0x1e0] sm:$0xff]  }
 0x358   :  { %v3947_v14 = vpop.f32.mrf.mxu0  ;;  %v8351_v11 = vpop.f32.mrf.mxu1  ;;  %v7604_v8 = vld [vmem:[#allocation6 + $0x1a0] sm:$0xff]  }
 0x359   :  { %v4010_v51 = vmax.f32 %v3956_v44, 0.0  ;;  %v3948_v58 = vadd.f32 %v3947_v14, %v3851_v15  ;;  %v6319_v24 = vpack.c.bf16 %v4007_v22, %v4007_v22  ;;  %v7602_v44 = vld [vmem:[#allocation6 + $0x128] sm:$0xff]   ;;  %v7608_v22 = vld [vmem:[#allocation6 + $0x198] sm:$0xff]  }
 0x35a   :  { %v8353_v12 = vpop.f32.mrf.mxu0  ;;  %v8358_v54 = vpop.f32.mrf.mxu1 }
 0x35b   :  { %v6322_v62 = vpack.c.bf16 %v4010_v51, %v4010_v51  ;;  %v4008_v16 = vmax.f32 %v3948_v58, 0.0  ;;  %v7609_v58 = vld [vmem:[#allocation6 + $0x158] sm:$0xff]  }
 0x35c   :  { %v8355_v1 = vpop.f32.mrf.mxu0  ;;  %v8360_v23 = vpop.f32.mrf.mxu1 }
 0x35d   :  { %v6320_v55 = vpack.c.bf16 %v4008_v16, %v4008_v16  ;;  %5222 = vmatprep.mubr.bf16.mxu0 %v6322_v62  ;;  %v6674_v62 = vadd.f32 %v8309_v45, %v8305_v42  ;;  %v7610_v16 = vld [vmem:[#allocation6 + $0x118] sm:$0xff]   ;;  %v7615_v42 = vld [vmem:[#allocation6 + $0x1c8] sm:$0xff]  }
 0x35e   :  { %v7286_v35 = vpop.f32.mrf.mxu0  ;;  %5223 = vmatmul.mubr.bf16.vlgmr.msra.gmra.mxu0 %v6321_v49  ;;  %v6736_v15 = vpop.f32.mrf.mxu1 }
 0x35f   :  { %v3972_v60 = vadd.f32 %v7286_v35, %v3875_v59  ;;  %6834 = vmatpush3.bf16.msra.mxu0 %v7592_v41  ;;  %5182 = vmatprep.mubr.bf16.mxu1 %v6320_v55  ;;  %v6723_v41 = vadd.f32 %v8323_v18, %v8317_v20  ;;  %v7612_v59 = vld [vmem:[#allocation6 + $0x190] sm:$0xff]   ;;  %v3794_v45 = vadd.f32 %v6674_v62, %v8285_v46 }
 0x360   :  { %v3963_v5 = vpop.f32.mrf.mxu0  ;;  %5183 = vmatmul.mubr.bf16.vlgmr.msra.gmra.mxu1 %v6319_v24  ;;  %6835 = vmatprep.subr.bf16.mxu0 %v7595_v30  ;;  %v6737_v51 = vpop.f32.mrf.mxu1  ;;  %v7613_v30 = vld [vmem:[#allocation6 + $0x150] sm:$0xff]   ;;  %v6732_v20 = vadd.f32 %v8351_v11, %v8345_v40  ;;  %v7619_v40 = vld [vmem:[#allocation6 + $0x1c0] sm:$0xff]  }
 0x361   :  { %v4014_v0 = vmax.f32 %v3972_v60, 0.0  ;;  %v3964_v39 = vadd.f32 %v3963_v5, %v3867_v3  ;;  %6812 = vmatpush3.bf16.msra.mxu1 %v7594_v2  ;;  %v6738_v55 = vadd.f32 %v6737_v51, %v6736_v15  ;;  %v6717_v2 = vadd.f32 %v8313_v53, %v8311_v50  ;;  %v7614_v18 = vld [vmem:[#allocation6 + $0x110] sm:$0xff]   ;;  %v7616_v50 = vld [vmem:[#allocation6 + $0x188] sm:$0xff]  }
 0x362   :  { %6813 = vmatprep.subr.bf16.mxu1 %v7597_v38  ;;  %v8362_v14 = vpop.f32.mrf.mxu0  ;;  %v8370_v49 = vpop.f32.mrf.mxu1  ;;  %v3872_v35 = vadd.f32 %v6723_v41, %v8295_v17  ;;  %v7618_v17 = vld [vmem:[#allocation6 + $0x108] sm:$0xff]  }
 0x363   :  { %v6326_v4 = vpack.c.bf16 %v4014_v0, %v4014_v0  ;;  %v4012_v43 = vmax.f32 %v3964_v39, 0.0  ;;  %6836 = vmatpush3.bf16.msra.mxu0 %v7596_v63  ;;  %v3891_v60 = vadd.f32 %v6738_v55, %v3794_v45  ;;  %v3864_v46 = vadd.f32 %v6717_v2, %v8289_v57  ;;  %v7620_v39 = vld [vmem:[#allocation6 + $0x180] sm:$0xff]   ;;  %v7632_v41 = vld [vmem:[#allocation6 + $0x2a8] sm:$0xff]  }
 0x364   :  { %6837 = vmatprep.subr.bf16.mxu0 %v7599_v33  ;;  %v8364_v61 = vpop.f32.mrf.mxu0  ;;  %v8380_v38 = vpop.f32.mrf.mxu1  ;;  %v3969_v53 = vadd.f32 %v8353_v12, %v3872_v35  ;;  %v3883_v63 = vadd.f32 %v6732_v20, %v3786_v34  ;;  %v7623_v12 = vld [vmem:[#allocation6 + $0x2f8] sm:$0xff]   ;;  %v7636_v2 = vld [vmem:[#allocation6 + $0x2a0] sm:$0xff]   ;;  %v7643_v34 = vld [vmem:[#allocation6 + $0x2d0] sm:$0xff]  }
 0x365   :  { %v6324_v29 = vpack.c.bf16 %v4012_v43, %v4012_v43  ;;  %6814 = vmatpush3.bf16.msra.mxu1 %v7598_v21  ;;  %5302 = vmatprep.mubr.bf16.mxu0 %v6326_v4  ;;  %v3961_v5 = vadd.f32 %v8355_v1, %v3864_v46  ;;  %v7624_v1 = vld [vmem:[#allocation6 + $0x2b8] sm:$0xff]   ;;  %v7638_v45 = vld [vmem:[#allocation6 + $0x220] sm:$0xff]   ;;  %v7645_v46 = vld [vmem:[#allocation6 + $0x250] sm:$0xff]  }
 0x366   :  { %6815 = vmatprep.subr.bf16.mxu1 %v7601_v27  ;;  %v7290_v24 = vpop.f32.mrf.mxu0  ;;  %v8386_v33 = vpop.f32.mrf.mxu1  ;;  %v4013_v21 = vmax.f32 %v3969_v53, 0.0  ;;  %v7622_v27 = vld [vmem:[#allocation6 + $0x100] sm:$0xff]   ;;  %v7640_v35 = vld [vmem:[#allocation6 + $0x298] sm:$0xff]   ;;  %v6735_v53 = vadd.f32 %v8360_v23, %v8358_v54  ;;  %v7649_v54 = vld [vmem:[#allocation6 + $0x248] sm:$0xff]  }
 0x367   :  { %6838 = vmatpush3.bf16.msra.mxu0 %v7600_v47  ;;  %5262 = vmatprep.mubr.bf16.mxu1 %v6324_v29  ;;  %v3988_v11 = vadd.f32 %v7290_v24, %v3891_v60  ;;  %v4011_v4 = vmax.f32 %v3961_v5, 0.0  ;;  %v7625_v47 = vld [vmem:[#allocation6 + $0x278] sm:$0xff]   ;;  %v7648_v23 = vld [vmem:[#allocation6 + $0x288] sm:$0xff]  }
 0x368   :  { %6839 = vmatprep.subr.bf16.mxu0 %v7603_v6  ;;  %v3979_v3 = vpop.f32.mrf.mxu0  ;;  %v8388_v43 = vpop.f32.mrf.mxu1  ;;  %v6325_v29 = vpack.c.bf16 %v4013_v21, %v4013_v21  ;;  %v7651_v21 = vld [vmem:[#allocation6 + $0x2c0] sm:$0xff]  }
 0x369   :  { %6816 = vmatpush3.bf16.msra.mxu1 %v7602_v44  ;;  %v3980_v0 = vadd.f32 %v3979_v3, %v3883_v63  ;;  %v4018_v57 = vmax.f32 %v3988_v11, 0.0  ;;  %v7627_v44 = vld [vmem:[#allocation6 + $0x2f0] sm:$0xff]   ;;  %v7647_v63 = vld [vmem:[#allocation6 + $0x2c8] sm:$0xff]  }
 0x36a   :  { %6817 = vmatprep.subr.bf16.mxu1 %v7605_v13  ;;  %v7626_v13 = vld [vmem:[#allocation6 + $0x238] sm:$0xff]   ;;  %v8394_v24 = vpop.f32.mrf.mxu0  ;;  %v7644_v3 = vld [vmem:[#allocation6 + $0x290] sm:$0xff]  }
 0x36b   :  { %6840 = vmatpush3.bf16.msra.mxu0 %v7604_v8  ;;  %v4016_v6 = vmax.f32 %v3980_v0, 0.0  ;;  %v6330_v15 = vpack.c.bf16 %v4018_v57, %v4018_v57  ;;  %v6323_v8 = vpack.c.bf16 %v4011_v4, %v4011_v4  ;;  %v3888_v0 = vadd.f32 %v6735_v53, %v8307_v52  ;;  %v7653_v52 = vld [vmem:[#allocation6 + $0x240] sm:$0xff]  }
 0x36c   :  { %6841 = vmatprep.subr.bf16.mxu0 %v7607_v25  ;;  %v8390_v25 = vpop.f32.mrf.mxu1  ;;  %v7652_v4 = vld [vmem:[#allocation6 + $0x280] sm:$0xff]   ;;  %v6741_v53 = vadd.f32 %v8380_v38, %v8370_v49 }
 0x36d   :  { %6818 = vmatpush3.bf16.msra.mxu1 %v7606_v26  ;;  %v7629_v26 = vld [vmem:[#allocation6 + $0x270] sm:$0xff]   ;;  %v6328_v51 = vpack.c.bf16 %v4016_v6, %v4016_v6  ;;  %v7684_v38 = vld [vmem:[#allocation6 + $0x380] sm:$0xff]  }
 0x36e   :  { %6819 = vmatprep.subr.bf16.mxu1 %v7609_v58  ;;  %v7628_v58 = vld [vmem:[#allocation6 + $0x2b0] sm:$0xff]   ;;  %v8392_v62 = vpop.f32.mrf.mxu1 }
 0x36f   :  { %6842 = vmatpush3.bf16.msra.mxu0 %v7608_v22  ;;  %v7631_v22 = vld [vmem:[#allocation6 + $0x2e8] sm:$0xff]  }
 0x370   :  { %6843 = vmatprep.subr.bf16.mxu0 %v7611_v56  ;;  %v7630_v56 = vld [vmem:[#allocation6 + $0x230] sm:$0xff]   ;;  %v6748_v55 = vpop.f32.mrf.mxu1 }
 0x371   :  { %6820 = vmatpush3.bf16.msra.mxu1 %v7610_v16  ;;  %v7633_v16 = vld [vmem:[#allocation6 + $0x268] sm:$0xff]  }
 0x372   :  { %6821 = vmatprep.subr.bf16.mxu1 %v7613_v30  ;;  %v7635_v30 = vld [vmem:[#allocation6 + $0x2e0] sm:$0xff]   ;;  %v6749_v20 = vpop.f32.mrf.mxu1 }
 0x373   :  { %6844 = vmatpush3.bf16.msra.mxu0 %v7612_v59  ;;  %v7637_v59 = vld [vmem:[#allocation6 + $0x260] sm:$0xff]   ;;  %v6750_v60 = vadd.f32 %v6749_v20, %v6748_v55  ;;  %v7672_v20 = vld [vmem:[#allocation6 + $0x398] sm:$0xff]  }
 0x374   :  { %6845 = vmatprep.subr.bf16.mxu0 %v7615_v42  ;;  %v7639_v42 = vld [vmem:[#allocation6 + $0x2d8] sm:$0xff]   ;;  %v7669_v55 = vld [vmem:[#allocation6 + $0x360] sm:$0xff]  }
 0x375   :  { %6822 = vmatpush3.bf16.msra.mxu1 %v7614_v18  ;;  %v7641_v18 = vld [vmem:[#allocation6 + $0x258] sm:$0xff]   ;;  %v3907_v5 = vadd.f32 %v6750_v60, %v8335_v37  ;;  %v7650_v37 = vld [vmem:[#allocation6 + $0x208] sm:$0xff]   ;;  %v7677_v60 = vld [vmem:[#allocation6 + $0x350] sm:$0xff]  }
 0x376   :  { %6823 = vmatprep.subr.bf16.mxu1 %v7617_v28  ;;  %v8396_v28 = vpop.f32.mrf.mxu0 }
 0x377   :  { %6846 = vmatpush3.bf16.msra.mxu0 %v7616_v50  ;;  %v7642_v50 = vld [vmem:[#allocation6 + $0x218] sm:$0xff]  }
 0x378   :  { %6847 = vmatprep.subr.bf16.mxu0 %v7619_v40  ;;  %v6729_v40 = vadd.f32 %v8339_v48, %v8332_v32  ;;  %v7294_v11 = vpop.f32.mrf.mxu0 }
 0x379   :  { %6824 = vmatpush3.bf16.msra.mxu1 %v7618_v17  ;;  %v6744_v17 = vadd.f32 %v8388_v43, %v8386_v33 }
 0x37a   :  { %6825 = vmatprep.subr.bf16.mxu1 %v7621_v31  ;;  %v7646_v31 = vld [vmem:[#allocation6 + $0x210] sm:$0xff]   ;;  %v3880_v32 = vadd.f32 %v6729_v40, %v8301_v7  ;;  %v3995_v48 = vpop.f32.mrf.mxu0  ;;  %v7654_v7 = vld [vmem:[#allocation6 + $0x200] sm:$0xff]  }
 0x37b   :  { %6848 = vmatpush3.bf16.msra.mxu0 %v7620_v39  ;;  %v3985_v39 = vadd.f32 %v8362_v14, %v3888_v0  ;;  %v3899_v33 = vadd.f32 %v6744_v17, %v8319_v9  ;;  %v7655_v14 = vld [vmem:[#allocation6 + $0x3f8] sm:$0xff]   ;;  %v7678_v40 = vld [vmem:[#allocation6 + $0x310] sm:$0xff]   ;;  %v7683_v17 = vld [vmem:[#allocation6 + $0x3c0] sm:$0xff]  }
 0x37c   :  { %6877 = vmatprep.subr.bf16.mxu0 %v7623_v12  ;;  %v4004_v12 = vadd.f32 %v7294_v11, %v3907_v5  ;;  %v3977_v57 = vadd.f32 %v8364_v61, %v3880_v32  ;;  %v7656_v9 = vld [vmem:[#allocation6 + $0x3b8] sm:$0xff]   ;;  %v7659_v61 = vld [vmem:[#allocation6 + $0x3f0] sm:$0xff]   ;;  %v7681_v11 = vld [vmem:[#allocation6 + $0x348] sm:$0xff]  }
 0x37d   :  { %6826 = vmatpush3.bf16.msra.mxu1 %v7622_v27  ;;  %v3996_v27 = vadd.f32 %v3995_v48, %v3899_v33  ;;  %v4017_v43 = vmax.f32 %v3985_v39, 0.0  ;;  %v7682_v5 = vld [vmem:[#allocation6 + $0x308] sm:$0xff]   ;;  %v7686_v0 = vld [vmem:[#allocation6 + $0x300] sm:$0xff]  }
 0x37e   :  { %5303 = vmatmul.mubr.bf16.vlgmr.msra.gmra.mxu0 %v6325_v29  ;;  %6855 = vmatprep.subr.bf16.mxu1 %v7625_v47  ;;  %v4022_v47 = vmax.f32 %v4004_v12, 0.0  ;;  %v4015_v6 = vmax.f32 %v3977_v57, 0.0  ;;  %v5983_v48 = vld [vmem:[%s8431_s7] ss:$0 sm:$0xff] }
 0x37f   :  { %6878 = vmatpush3.bf16.msra.mxu0 %v7624_v1  ;;  %5382 = vmatprep.mubr.bf16.mxu0 %v6330_v15  ;;  %v7657_v1 = vld [vmem:[#allocation6 + $0x378] sm:$0xff]   ;;  %v4020_v29 = vmax.f32 %v3996_v27, 0.0 }
 0x380   :  { %5263 = vmatmul.mubr.bf16.vlgmr.msra.gmra.mxu1 %v6323_v8  ;;  %6879 = vmatprep.subr.bf16.mxu0 %v7627_v44  ;;  %v6329_v44 = vpack.c.bf16 %v4017_v43, %v4017_v43  ;;  %v6334_v15 = vpack.c.bf16 %v4022_v47, %v4022_v47  ;;  %v6327_v8 = vpack.c.bf16 %v4015_v6, %v4015_v6 }
 0x381   :  { %6856 = vmatpush3.bf16.msra.mxu1 %v7626_v13  ;;  %5342 = vmatprep.mubr.bf16.mxu1 %v6328_v51  ;;  %v7658_v13 = vld [vmem:[#allocation6 + $0x338] sm:$0xff]   ;;  %v6332_v51 = vpack.c.bf16 %v4020_v29, %v4020_v29 }
 0x382   :  { %6857 = vmatprep.subr.bf16.mxu1 %v7629_v26  ;;  %v7661_v26 = vld [vmem:[#allocation6 + $0x370] sm:$0xff]  }
 0x383   :  { %6880 = vmatpush3.bf16.msra.mxu0 %v7628_v58  ;;  %v7660_v58 = vld [vmem:[#allocation6 + $0x3b0] sm:$0xff]  }
 0x384   :  { %6881 = vmatprep.subr.bf16.mxu0 %v7631_v22  ;;  %v7663_v22 = vld [vmem:[#allocation6 + $0x3e8] sm:$0xff]  }
 0x385   :  { %6858 = vmatpush3.bf16.msra.mxu1 %v7630_v56  ;;  %v7662_v56 = vld [vmem:[#allocation6 + $0x330] sm:$0xff]  }
 0x386   :  { %6859 = vmatprep.subr.bf16.mxu1 %v7633_v16  ;;  %v7665_v16 = vld [vmem:[#allocation6 + $0x368] sm:$0xff]  }
 0x387   :  { %6882 = vmatpush3.bf16.msra.mxu0 %v7632_v41  ;;  %v7664_v41 = vld [vmem:[#allocation6 + $0x3a8] sm:$0xff]  }
 0x388   :  { %6883 = vmatprep.subr.bf16.mxu0 %v7635_v30  ;;  %v7667_v30 = vld [vmem:[#allocation6 + $0x3e0] sm:$0xff]  }
 0x389   :  { %6860 = vmatpush3.bf16.msra.mxu1 %v7634_v10  ;;  %v7666_v10 = vld [vmem:[#allocation6 + $0x328] sm:$0xff]  }
 0x38a   :  { %6861 = vmatprep.subr.bf16.mxu1 %v7637_v59  ;;  %v7668_v59 = vld [vmem:[#allocation6 + $0x3a0] sm:$0xff]  }
 0x38b   :  { %6884 = vmatpush3.bf16.msra.mxu0 %v7636_v2  ;;  %v7671_v2 = vld [vmem:[#allocation6 + $0x3d8] sm:$0xff]  }
 0x38c   :  { %6885 = vmatprep.subr.bf16.mxu0 %v7639_v42  ;;  %v7670_v42 = vld [vmem:[#allocation6 + $0x320] sm:$0xff]  }
 0x38d   :  { %6862 = vmatpush3.bf16.msra.mxu1 %v7638_v45  ;;  %v7673_v45 = vld [vmem:[#allocation6 + $0x358] sm:$0xff]  }
 0x38e   :  { %6863 = vmatprep.subr.bf16.mxu1 %v7641_v18  ;;  %v6747_v18 = vadd.f32 %v8392_v62, %v8390_v25  ;;  %v7680_v25 = vld [vmem:[#allocation6 + $0x388] sm:$0xff]  }
 0x38f   :  { %6886 = vmatpush3.bf16.msra.mxu0 %v7640_v35  ;;  %v7675_v35 = vld [vmem:[#allocation6 + $0x3d0] sm:$0xff]  }
 0x390   :  { %6887 = vmatprep.subr.bf16.mxu0 %v7643_v34  ;;  %v7674_v34 = vld [vmem:[#allocation6 + $0x318] sm:$0xff]  }
 0x391   :  { %6864 = vmatpush3.bf16.msra.mxu1 %v7642_v50  ;;  %v7676_v50 = vld [vmem:[#allocation6 + $0x390] sm:$0xff]  }
 0x392   :  { %6865 = vmatprep.subr.bf16.mxu1 %v7645_v46  ;;  %v3904_v46 = vadd.f32 %v6747_v18, %v8327_v19  ;;  %v7685_v19 = vld [vmem:[#allocation6 + $0x340] sm:$0xff]  }
 0x393   :  { %6888 = vmatpush3.bf16.msra.mxu0 %v7644_v3  ;;  %v7679_v3 = vld [vmem:[#allocation6 + $0x3c8] sm:$0xff]  }
 0x394   :  { %6889 = vmatprep.subr.bf16.mxu0 %v7647_v63  ;;  %v4001_v62 = vadd.f32 %v8394_v24, %v3904_v46  ;;  %v3896_v63 = vadd.f32 %v6741_v53, %v8315_v36 }
 0x395   :  { %6866 = vmatpush3.bf16.msra.mxu1 %v7646_v31 }
 0x396   :  { %6867 = vmatprep.subr.bf16.mxu1 %v7649_v54  ;;  %v3993_v49 = vadd.f32 %v8396_v28, %v3896_v63  ;;  %v4021_v31 = vmax.f32 %v4001_v62, 0.0 }
 0x397   :  { %6890 = vmatpush3.bf16.msra.mxu0 %v7648_v23 }
 0x398   :  { %6891 = vmatprep.subr.bf16.mxu0 %v7651_v21  ;;  %v4019_v54 = vmax.f32 %v3993_v49, 0.0  ;;  %v6333_v24 = vpack.c.bf16 %v4021_v31, %v4021_v31 }
 0x399   :  { %6868 = vmatpush3.bf16.msra.mxu1 %v7650_v37 }
 0x39a   :  { %6869 = vmatprep.subr.bf16.mxu1 %v7653_v52  ;;  %v6331_v36 = vpack.c.bf16 %v4019_v54, %v4019_v54 }
 0x39b   :  { %6892 = vmatpush3.bf16.msra.mxu0 %v7652_v4 }
 0x39c   :  { %6921 = vmatprep.subr.bf16.mxu0 %v7655_v14 }
 0x39d   :  { %6870 = vmatpush3.bf16.msra.mxu1 %v7654_v7 }
 0x39e   :  { %5383 = vmatmul.mubr.bf16.vlgmr.msra.gmra.mxu0 %v6329_v44  ;;  %6899 = vmatprep.subr.bf16.mxu1 %v7657_v1 }
 0x39f   :  { %6922 = vmatpush3.bf16.msra.mxu0 %v7656_v9  ;;  %5462 = vmatprep.mubr.bf16.mxu0 %v6334_v15 }
 0x3a0   :  { %5343 = vmatmul.mubr.bf16.vlgmr.msra.gmra.mxu1 %v6327_v8  ;;  %6923 = vmatprep.subr.bf16.mxu0 %v7659_v61 }
 0x3a1   :  { %6900 = vmatpush3.bf16.msra.mxu1 %v7658_v13  ;;  %5422 = vmatprep.mubr.bf16.mxu1 %v6332_v51 }
 0x3a2   :  { %6901 = vmatprep.subr.bf16.mxu1 %v7661_v26 }
 0x3a3   :  { %6924 = vmatpush3.bf16.msra.mxu0 %v7660_v58 }
 0x3a4   :  { %6925 = vmatprep.subr.bf16.mxu0 %v7663_v22 }
 0x3a5   :  { %6902 = vmatpush3.bf16.msra.mxu1 %v7662_v56 }
 0x3a6   :  { %6903 = vmatprep.subr.bf16.mxu1 %v7665_v16 }
 0x3a7   :  { %6926 = vmatpush3.bf16.msra.mxu0 %v7664_v41 }
 0x3a8   :  { %6927 = vmatprep.subr.bf16.mxu0 %v7667_v30 }
 0x3a9   :  { %6904 = vmatpush3.bf16.msra.mxu1 %v7666_v10 }
 0x3aa   :  { %6905 = vmatprep.subr.bf16.mxu1 %v7669_v55 }
 0x3ab   :  { %6928 = vmatpush3.bf16.msra.mxu0 %v7668_v59 }
 0x3ac   :  { %6929 = vmatprep.subr.bf16.mxu0 %v7671_v2 }
 0x3ad   :  { %6906 = vmatpush3.bf16.msra.mxu1 %v7670_v42 }
 0x3ae   :  { %6907 = vmatprep.subr.bf16.mxu1 %v7673_v45 }
 0x3af   :  { %6930 = vmatpush3.bf16.msra.mxu0 %v7672_v20 }
 0x3b0   :  { %6931 = vmatprep.subr.bf16.mxu0 %v7675_v35 }
 0x3b1   :  { %6908 = vmatpush3.bf16.msra.mxu1 %v7674_v34 }
 0x3b2   :  { %6909 = vmatprep.subr.bf16.mxu1 %v7677_v60 }
 0x3b3   :  { %6932 = vmatpush3.bf16.msra.mxu0 %v7676_v50 }
 0x3b4   :  { %6933 = vmatprep.subr.bf16.mxu0 %v7679_v3 }
 0x3b5   :  { %6910 = vmatpush3.bf16.msra.mxu1 %v7678_v40 }
 0x3b6   :  { %6911 = vmatprep.subr.bf16.mxu1 %v7681_v11 }
 0x3b7   :  { %6934 = vmatpush3.bf16.msra.mxu0 %v7680_v25 }
 0x3b8   :  { %6935 = vmatprep.subr.bf16.mxu0 %v7683_v17 }
 0x3b9   :  { %6912 = vmatpush3.bf16.msra.mxu1 %v7682_v5 }
 0x3ba   :  { %6913 = vmatprep.subr.bf16.mxu1 %v7685_v19 }
 0x3bb   :  { %6936 = vmatpush3.bf16.msra.mxu0 %v7684_v38 }
 0x3bd   :  { %6914 = vmatpush3.bf16.msra.mxu1 %v7686_v0 }
 0x3be   :  { %5463 = vmatmul.mubr.bf16.vlgmr.msra.gmra.mxu0 %v6333_v24 }
 0x3c0   :  { %5423 = vmatmul.mubr.bf16.vlgmr.msra.gmra.mxu1 %v6331_v36 }
 0x41e   :  { %v6805_v23 = vpop.f32.mrf.mxu0 }
 0x420   :  { %v6783_v39 = vpop.f32.mrf.mxu1  ;;  %v6806_v32 = vpop.f32.mrf.mxu0 }
 0x421   :  { %v6807_v28 = vadd.f32 %v6806_v32, %v6805_v23 }
 0x422   :  { %v6784_v21 = vpop.f32.mrf.mxu1  ;;  %v6808_v12 = vpop.f32.mrf.mxu0 }
 0x423   :  { %v6785_v33 = vadd.f32 %v6784_v21, %v6783_v39 }
 0x424   :  { %v6786_v37 = vpop.f32.mrf.mxu1  ;;  %v6809_v57 = vpop.f32.mrf.mxu0 }
 0x425   :  { %v5185_v52 = vadd.f32 %v6785_v33, %v5983_v48 }
 0x426   :  { %v6787_v27 = vpop.f32.mrf.mxu1 }
 0x427   :  { %v5225_v4 = vadd.f32 %v6807_v28, %v5185_v52 }
 0x43e   :  { %v6849_v43 = vpop.f32.mrf.mxu0 }
 0x440   :  { %v6827_v14 = vpop.f32.mrf.mxu1  ;;  %v6850_v7 = vpop.f32.mrf.mxu0 }
 0x441   :  { %v6851_v16 = vadd.f32 %v6850_v7, %v6849_v43 }
 0x442   :  { %v6828_v47 = vpop.f32.mrf.mxu1  ;;  %v6852_v6 = vpop.f32.mrf.mxu0 }
 0x443   :  { %v6829_v22 = vadd.f32 %v6828_v47, %v6827_v14 }
 0x444   :  { %v6830_v1 = vpop.f32.mrf.mxu1  ;;  %v6853_v29 = vpop.f32.mrf.mxu0 }
 0x445   :  { %v5265_v56 = vadd.f32 %v6829_v22, %v5225_v4 }
 0x446   :  { %v6831_v9 = vpop.f32.mrf.mxu1 }
 0x447   :  { %v5305_v30 = vadd.f32 %v6851_v16, %v5265_v56 }
 0x45e   :  { %v6893_v44 = vpop.f32.mrf.mxu0 }
 0x460   :  { %v6871_v61 = vpop.f32.mrf.mxu1  ;;  %v6894_v15 = vpop.f32.mrf.mxu0 }
 0x461   :  { %v6895_v42 = vadd.f32 %v6894_v15, %v6893_v44 }
 0x462   :  { %v6872_v13 = vpop.f32.mrf.mxu1  ;;  %v6896_v8 = vpop.f32.mrf.mxu0 }
 0x463   :  { %v6873_v41 = vadd.f32 %v6872_v13, %v6871_v61 }
 0x464   :  { %v6874_v26 = vpop.f32.mrf.mxu1  ;;  %v6897_v51 = vpop.f32.mrf.mxu0 }
 0x465   :  { %v5345_v55 = vadd.f32 %v6873_v41, %v5305_v30 }
 0x466   :  { %v6875_v58 = vpop.f32.mrf.mxu1 }
 0x467   :  { %v5385_v18 = vadd.f32 %v6895_v42, %v5345_v55 }
 0x47e   :  { %v6937_v10 = vpop.f32.mrf.mxu0 }
 0x480   :  { %v6915_v59 = vpop.f32.mrf.mxu1  ;;  %v6938_v2 = vpop.f32.mrf.mxu0 }
 0x481   :  { %v6939_v50 = vadd.f32 %v6938_v2, %v6937_v10 }
 0x482   :  { %v6916_v45 = vpop.f32.mrf.mxu1  ;;  %v6940_v20 = vpop.f32.mrf.mxu0 }
 0x483   :  { %v6917_v35 = vadd.f32 %v6916_v45, %v6915_v59 }
 0x484   :  { %v6918_v34 = vpop.f32.mrf.mxu1  ;;  %v6941_v60 = vpop.f32.mrf.mxu0 }
 0x485   :  { %v5425_v53 = vadd.f32 %v6917_v35, %v5385_v18 }
 0x486   :  { %v6919_v46 = vpop.f32.mrf.mxu1 }
 0x487   :  { %v5465_v3 = vadd.f32 %v6939_v50, %v5425_v53 }
 0x489   :  { %5470 = vst [vmem:[%s8432_s8] sm:$0xff] %v5465_v3 }
 0x48a   :  { %5475 = vsyncpa [#allocation5], 1 }
 0x48b   :  { %5476 = vsyncpa [#allocation7], 1 }

</bundles_post_ra>
